<compile_context>
chip_gen: v6e
topology: v6e:2x2x1
jax: 0.10.0
libtpu: 0.0.40
codegen_flags: <defaults>
</compile_context>

<pallas_src>
import functools

import jax
import jax.numpy as jnp
from jax.experimental import pallas as pl
from jax.experimental.pallas import tpu as pltpu

_BN_EPS = 1e-5
_LEAK = 0.2


# ----------------------------------------------------------------------------
# Generation-aware scoped-VMEM budget.
# ----------------------------------------------------------------------------
_VMEM_LIMIT_CACHE = []


def _vmem_limit_bytes():
    if not _VMEM_LIMIT_CACHE:
        cap = None
        try:
            cap = getattr(pltpu.get_tpu_info(), "vmem_capacity_bytes", None)
        except Exception:
            cap = None
        if cap:
            # 64 MiB on v5e/v6e (128 MiB VMEM), 32 MiB on v7x (64 MiB VMEM).
            lim = int(min(int(cap) // 2, 64 * 1024 * 1024))
        else:
            lim = 32 * 1024 * 1024  # safe on every generation
        _VMEM_LIMIT_CACHE.append(lim)
    return _VMEM_LIMIT_CACHE[0]


def _cparams(parallel):
    return pltpu.CompilerParams(
        dimension_semantics=("parallel",) if parallel else ("arbitrary",),
        vmem_limit_bytes=_vmem_limit_bytes(),
    )


# ----------------------------------------------------------------------------
# XLA-side glue: zero-pad (pad=1) + 2x2 space-to-depth.  Pure relayout, no
# data duplication (vs. the 16x im2col patch expansion it replaces).
# Channel layout: k = (2*p + q)*C + c, with p/q the parity of the padded
# (h, w) coordinate.
# ----------------------------------------------------------------------------
def pad_s2d(x_nhwc):
    n, h, w, c = x_nhwc.shape
    xp = jnp.pad(x_nhwc, ((0, 0), (1, 1), (1, 1), (0, 0)))
    hh, wh = (h + 2) // 2, (w + 2) // 2
    xs = xp.reshape(n, hh, 2, wh, 2, c).transpose(0, 1, 3, 2, 4, 5)
    return xs.reshape(n, hh, wh, 4 * c)


# ----------------------------------------------------------------------------
# Pallas kernels
# ----------------------------------------------------------------------------
def _tap_gemm(x, w_ref, ho, wo):
    """In-kernel im2col for a 4x4 / stride-2 / pad-1 conv on s2d input.

    x:     (1, ho+1, wo+1, 4*Cin) bf16, VMEM resident (one image).
    w_ref: (4, 4*Cin, Cout) bf16, tap index t = 2*ah + aw.
    Returns the f32 conv response of shape (ho*wo, Cout).
    """
    kc, co = w_ref.shape[1], w_ref.shape[2]
    acc = jnp.zeros((ho * wo, co), jnp.float32)
    t = 0
    for ah in range(2):
        for aw in range(2):
            win = x[0, ah:ah + ho, aw:aw + wo, :]          # (ho, wo, 4*Cin)
            acc = acc + jnp.dot(win.reshape(ho * wo, kc), w_ref[t],
                                preferred_element_type=jnp.float32)
            t += 1
    return acc


def _conv_leaky_kernel(xs_ref, w_ref, b_ref, o_ref, *, ho, wo):
    z = _tap_gemm(xs_ref[...], w_ref, ho, wo) + b_ref[...]
    o_ref[...] = jnp.maximum(z, _LEAK * z).astype(o_ref.dtype)


def _conv_stats_kernel(xs_ref, w_ref, b_ref, z_ref, s_ref, q_ref, *, ho, wo):
    # BN pass 1: conv GEMM + bias; accumulate global per-channel sum and
    # sum-of-squares across the ("arbitrary") batch grid axis.
    z = _tap_gemm(xs_ref[...], w_ref, ho, wo) + b_ref[...]
    z_ref[...] = z

    @pl.when(pl.program_id(0) == 0)
    def _init():
        s_ref[...] = jnp.zeros_like(s_ref)
        q_ref[...] = jnp.zeros_like(q_ref)

    s_ref[...] += jnp.sum(z, axis=0, keepdims=True)
    q_ref[...] += jnp.sum(z * z, axis=0, keepdims=True)


def _bn_from_sums(z, s, q, g, bt, inv_m):
    mean = s * inv_m
    var = jnp.maximum(q * inv_m - mean * mean, 0.0)   # biased batch variance
    return (z - mean) * (jax.lax.rsqrt(var + _BN_EPS) * g) + bt


def _bn_leaky_kernel(z_ref, s_ref, q_ref, g_ref, bt_ref, o_ref, *, inv_m):
    zn = _bn_from_sums(z_ref[...], s_ref[...], q_ref[...], g_ref[...],
                       bt_ref[...], inv_m)
    o_ref[...] = jnp.maximum(zn, _LEAK * zn).astype(o_ref.dtype)


def _bn_leaky_conv4_lsm_kernel(z_ref, s_ref, q_ref, g_ref, bt_ref, w4_ref,
                               b4_ref, o_ref, *, inv_m):
    # BN pass 2 for conv3, fused with conv4 (k4 s1 p0 on the whole 4x4 map)
    # and the channel log_softmax.  One image per grid step.
    zn = _bn_from_sums(z_ref[...], s_ref[...], q_ref[...], g_ref[...],
                       bt_ref[...], inv_m)
    a = jnp.maximum(zn, _LEAK * zn).astype(jnp.bfloat16)          # (16, c3)
    c4 = w4_ref.shape[2]
    acc = jnp.zeros((1, c4), jnp.float32)
    for r in range(z_ref.shape[0]):                                # 16 taps
        acc = acc + jnp.dot(a[r:r + 1, :], w4_ref[r],
                            preferred_element_type=jnp.float32)
    z4 = acc + b4_ref[...]
    m = jnp.max(z4, axis=-1, keepdims=True)
    lse = jnp.log(jnp.sum(jnp.exp(z4 - m), axis=-1, keepdims=True)) + m
    o_ref[...] = (z4 - lse).reshape(1, 1, c4).astype(o_ref.dtype)


# ----------------------------------------------------------------------------
# pallas_call wrappers (grid over images; per-image blocks)
# ----------------------------------------------------------------------------
def conv_leaky(xs, w, b, ho, wo):
    n = xs.shape[0]
    co = w.shape[2]
    return pl.pallas_call(
        functools.partial(_conv_leaky_kernel, ho=ho, wo=wo),
        out_shape=jax.ShapeDtypeStruct((n * ho * wo, co), jnp.bfloat16),
        grid=(n,),
        in_specs=[
            pl.BlockSpec((1,) + xs.shape[1:], lambda i: (i, 0, 0, 0)),
            pl.BlockSpec(w.shape, lambda i: (0, 0, 0)),
            pl.BlockSpec(b.shape, lambda i: (0, 0)),
        ],
        out_specs=pl.BlockSpec((ho * wo, co), lambda i: (i, 0)),
        compiler_params=_cparams(parallel=True),
    )(xs, w, b)


def conv_bias_stats(xs, w, b, ho, wo):
    n = xs.shape[0]
    co = w.shape[2]
    return pl.pallas_call(
        functools.partial(_conv_stats_kernel, ho=ho, wo=wo),
        out_shape=(
            jax.ShapeDtypeStruct((n * ho * wo, co), jnp.float32),
            jax.ShapeDtypeStruct((1, co), jnp.float32),   # sum
            jax.ShapeDtypeStruct((1, co), jnp.float32),   # sum of squares
        ),
        grid=(n,),
        in_specs=[
            pl.BlockSpec((1,) + xs.shape[1:], lambda i: (i, 0, 0, 0)),
            pl.BlockSpec(w.shape, lambda i: (0, 0, 0)),
            pl.BlockSpec(b.shape, lambda i: (0, 0)),
        ],
        out_specs=(
            pl.BlockSpec((ho * wo, co), lambda i: (i, 0)),
            pl.BlockSpec((1, co), lambda i: (0, 0)),
            pl.BlockSpec((1, co), lambda i: (0, 0)),
        ),
        compiler_params=_cparams(parallel=False),   # stats accumulate -> arbitrary
    )(xs, w, b)


def bn_leaky(z, s, q, g, bt, rows_per_img, m_total):
    n = z.shape[0] // rows_per_img
    c = z.shape[1]
    vspec = pl.BlockSpec((1, c), lambda i: (0, 0))
    return pl.pallas_call(
        functools.partial(_bn_leaky_kernel, inv_m=1.0 / m_total),
        out_shape=jax.ShapeDtypeStruct(z.shape, jnp.bfloat16),
        grid=(n,),
        in_specs=[pl.BlockSpec((rows_per_img, c), lambda i: (i, 0)),
                  vspec, vspec, vspec, vspec],
        out_specs=pl.BlockSpec((rows_per_img, c), lambda i: (i, 0)),
        compiler_params=_cparams(parallel=True),
    )(z, s, q, g, bt)


def bn_leaky_conv4_lsm(z, s, q, g, bt, w4, b4, rows_per_img, m_total):
    n = z.shape[0] // rows_per_img
    c3 = z.shape[1]
    c4 = w4.shape[2]
    vspec = pl.BlockSpec((1, c3), lambda i: (0, 0))
    return pl.pallas_call(
        functools.partial(_bn_leaky_conv4_lsm_kernel, inv_m=1.0 / m_total),
        out_shape=jax.ShapeDtypeStruct((n, 1, c4), jnp.float32),
        grid=(n,),
        in_specs=[pl.BlockSpec((rows_per_img, c3), lambda i: (i, 0)),
                  vspec, vspec, vspec, vspec,
                  pl.BlockSpec(w4.shape, lambda i: (0, 0, 0)),
                  pl.BlockSpec(b4.shape, lambda i: (0, 0))],
        out_specs=pl.BlockSpec((1, 1, c4), lambda i: (i, 0, 0)),
        compiler_params=_cparams(parallel=True),
    )(z, s, q, g, bt, w4, b4)


# ----------------------------------------------------------------------------
# Forward pass (public interface is NCHW, like the PyTorch module)
# ----------------------------------------------------------------------------
def classifier_forward(x_nchw, params, cfg):
    n = x_nchw.shape[0]
    c1, c2, c4 = cfg["c1"], cfg["c2"], cfg["c"]
    x = x_nchw.transpose(0, 2, 3, 1).astype(jnp.bfloat16)   # one NCHW->NHWC
    h, w = x.shape[1], x.shape[2]

    # conv1_1 (1 -> d/2, k4 s2 p1) + leaky_relu(0.2)
    h1, w1 = h // 2, w // 2
    a1 = conv_leaky(pad_s2d(x), params["w1"], params["b1"], h1, w1)

    # conv2 (d/2 -> 2d) + BatchNorm2d + leaky_relu: two-pass, batch-tiled,
    # global (N,H,W) batch statistics via sum / sum-of-squares accumulators.
    h2, w2 = h1 // 2, w1 // 2
    z2, s2, q2 = conv_bias_stats(pad_s2d(a1.reshape(n, h1, w1, c1)),
                                 params["w2"], params["b2"], h2, w2)
    a2 = bn_leaky(z2, s2, q2, params["g2"], params["bt2"], h2 * w2, n * h2 * w2)

    # conv3 (2d -> 4d) + BatchNorm2d + leaky_relu, with conv4 (4d -> c, k4 s1
    # p0) + log_softmax fused into the normalize pass (the whole 4x4 conv3
    # map is exactly one conv4 patch).
    h3, w3 = h2 // 2, w2 // 2
    assert h3 == 4 and w3 == 4, "conv4+log_softmax fusion assumes 32x32 inputs"
    z3, s3, q3 = conv_bias_stats(pad_s2d(a2.reshape(n, h2, w2, c2)),
                                 params["w3"], params["b3"], h3, w3)
    out = bn_leaky_conv4_lsm(z3, s3, q3, params["g3"], params["bt3"],
                             params["w4"], params["b4"], h3 * w3, n * h3 * w3)
    return out.reshape(n, c4, 1, 1)                          # NCHW (N, c, 1, 1)


# ----------------------------------------------------------------------------
# Parameters: normal_init(0, 0.02) conv weights, zero conv biases, BN gamma=1
# beta=0.  Stride-2 conv weights are pre-arranged into the space-to-depth tap
# layout (4, 4*Cin, Cout); conv4 into (16, c3, c).  All conv weights bf16.
# ----------------------------------------------------------------------------
def make_params(key, d=16, c=6):
    c1, c2, c3 = d // 2, d * 2, d * 4
    k1, k2, k3, k4 = jax.random.split(key, 4)

    def w_init(k, cout, cin, ks):
        return 0.02 * jax.random.normal(k, (cout, cin, ks, ks), jnp.float32)

    tw = {  # torch-layout f32 weights (source of truth for kernel & reference)
        "w1": w_init(k1, c1, 1, 4), "w2": w_init(k2, c2, c1, 4),
        "w3": w_init(k3, c3, c2, 4), "w4": w_init(k4, c, c3, 4),
    }

    def prep_s2(wt):  # (cout, cin, 4, 4) -> (4 taps, 4*cin, cout)
        cout, cin = wt.shape[:2]
        w6 = wt.reshape(cout, cin, 2, 2, 2, 2).transpose(2, 4, 3, 5, 1, 0)
        return w6.reshape(4, 4 * cin, cout).astype(jnp.bfloat16)

    params = {
        "w1": prep_s2(tw["w1"]), "b1": jnp.zeros((1, c1), jnp.float32),
        "w2": prep_s2(tw["w2"]), "b2": jnp.zeros((1, c2), jnp.float32),
        "g2": jnp.ones((1, c2), jnp.float32),
        "bt2": jnp.zeros((1, c2), jnp.float32),
        "w3": prep_s2(tw["w3"]), "b3": jnp.zeros((1, c3), jnp.float32),
        "g3": jnp.ones((1, c3), jnp.float32),
        "bt3": jnp.zeros((1, c3), jnp.float32),
        "w4": tw["w4"].transpose(2, 3, 1, 0).reshape(16, c3, c).astype(jnp.bfloat16),
        "b4": jnp.zeros((1, c), jnp.float32),
    }
    cfg = {"c": c, "c1": c1, "c2": c2, "c3": c3}
    return params, cfg, tw


# ----------------------------------------------------------------------------
# Pure-XLA reference with the same bf16-operand / f32-accumulate quantization
# (conv biases are zero, BN gamma=1 / beta=0, so they are omitted).
# ----------------------------------------------------------------------------
def reference_forward(x_nchw, tw):
    def conv(x, wt, stride, pad):
        w = jnp.transpose(wt, (2, 3, 1, 0)).astype(jnp.bfloat16)   # HWIO
        return jax.lax.conv_general_dilated(
            x.astype(jnp.bfloat16), w, (stride, stride),
            [(pad, pad), (pad, pad)],
            dimension_numbers=("NHWC", "HWIO", "NHWC"),
            preferred_element_type=jnp.float32)

    def bn_lrelu(z):   # training-mode BN, biased batch variance
        mean = jnp.mean(z, axis=(0, 1, 2), keepdims=True)
        var = jnp.mean(jnp.square(z - mean), axis=(0, 1, 2), keepdims=True)
        zn = (z - mean) * jax.lax.rsqrt(var + _BN_EPS)
        return jnp.maximum(zn, _LEAK * zn)

    x = x_nchw.transpose(0, 2, 3, 1)
    h1 = conv(x, tw["w1"], 2, 1)
    a1 = jnp.maximum(h1, _LEAK * h1)
    a2 = bn_lrelu(conv(a1, tw["w2"], 2, 1))
    a3 = bn_lrelu(conv(a2, tw["w3"], 2, 1))
    z4 = conv(a3, tw["w4"], 1, 0)                        # (N, 1, 1, c)
    return jax.nn.log_softmax(z4, axis=-1).transpose(0, 3, 1, 2)


if __name__ == "__main__":
    key = jax.random.PRNGKey(0)
    kp, kx = jax.random.split(key)

    d, c = 16, 6                  # small d (module default 128); c fixed to 6
    n, h, w = 2, 32, 32           # (N, 1, H, W): 32 -> 16 -> 8 -> 4 -> 1
    params, cfg, tw = make_params(kp, d=d, c=c)
    x = jax.random.normal(kx, (n, 1, h, w), jnp.float32)

    fwd = jax.jit(lambda xx: classifier_forward(xx, params, cfg))
    out = jax.block_until_ready(fwd(x))

    assert out.shape == (n, c, 1, 1), out.shape
    assert bool(jnp.all(jnp.isfinite(out)))
    # log_softmax output: non-positive log-probs whose exp sums to 1 per pixel.
    assert bool(jnp.all(out <= 1e-4))
    lse = jax.nn.logsumexp(out, axis=1)
    assert bool(jnp.all(jnp.abs(lse) < 1e-3))

    # Cross-check against an XLA reference using identical bf16 quantization.
    ref = reference_forward(x, tw)
    err = float(jnp.max(jnp.abs(out - ref)))
    assert err < 3e-2, f"max |kernel - reference| = {err}"

    print("KERNEL_OK")
</pallas_src>

<mosaic_0001>
module attributes {stable_mosaic.version = 11 : i64} {
  func.func @_conv_leaky_kernel(%arg0: i32, %arg1: memref<1x17x17x4xbf16, #tpu.memory_space<vmem>>, %arg2: memref<4x4x8xbf16, #tpu.memory_space<vmem>>, %arg3: memref<1x8xf32, #tpu.memory_space<vmem>>, %arg4: memref<256x8xbf16, #tpu.memory_space<vmem>>) attributes {dimension_semantics = [#tpu.dimension_semantics<parallel>], iteration_bounds = array<i64: 2>, scalar_prefetch = 0 : i64, scratch_operands = 0 : i64, tpu.core_type = #tpu.core_type<tc>, window_params = [{transform_indices = @transform_0, window_bounds = array<i64: 1, 17, 17, 4>}, {pipeline_mode = #tpu.pipeline_mode<synchronous>, transform_indices = @transform_1, window_bounds = array<i64: 4, 4, 8>}, {pipeline_mode = #tpu.pipeline_mode<synchronous>, transform_indices = @transform_2, window_bounds = array<i64: 1, 8>}, {transform_indices = @transform_3, window_bounds = array<i64: 256, 8>}]} {
    %c0 = arith.constant 0 : index
    %c0_0 = arith.constant 0 : index
    %c0_1 = arith.constant 0 : index
    %c0_2 = arith.constant 0 : index
    %0 = vector.load %arg1[%c0, %c0_0, %c0_1, %c0_2] : memref<1x17x17x4xbf16, #tpu.memory_space<vmem>>, vector<1x17x17x4xbf16>
    %cst = arith.constant 0.000000e+00 : f32
    %1 = vector.broadcast %cst : f32 to vector<256x8xf32>
    %2 = vector.extract_strided_slice %0 {offsets = [0, 0, 0, 0], sizes = [1, 16, 16, 4], strides = [1, 1, 1, 1]} : vector<1x17x17x4xbf16> to vector<1x16x16x4xbf16>
    %3 = vector.shape_cast %2 : vector<1x16x16x4xbf16> to vector<16x16x4xbf16>
    %4 = vector.shape_cast %3 : vector<16x16x4xbf16> to vector<256x4xbf16>
    %c0_3 = arith.constant 0 : index
    %c0_4 = arith.constant 0 : index
    %c0_5 = arith.constant 0 : index
    %5 = vector.load %arg2[%c0_3, %c0_4, %c0_5] : memref<4x4x8xbf16, #tpu.memory_space<vmem>>, vector<1x4x8xbf16>
    %6 = vector.shape_cast %5 : vector<1x4x8xbf16> to vector<4x8xbf16>
    %cst_6 = arith.constant dense<0.000000e+00> : vector<256x8xf32>
    %7 = tpu.matmul %4, %6, %cst_6 {dimension_numbers = #tpu.dot_dimension_numbers<[1], [0], [0], [1], [0, 0, 1, 1], [], []>} : vector<256x4xbf16>, vector<4x8xbf16>, vector<256x8xf32> -> vector<256x8xf32>
    %8 = arith.addf %1, %7 : vector<256x8xf32>
    %9 = vector.extract_strided_slice %0 {offsets = [0, 0, 1, 0], sizes = [1, 16, 16, 4], strides = [1, 1, 1, 1]} : vector<1x17x17x4xbf16> to vector<1x16x16x4xbf16>
    %10 = vector.shape_cast %9 : vector<1x16x16x4xbf16> to vector<16x16x4xbf16>
    %11 = vector.shape_cast %10 : vector<16x16x4xbf16> to vector<256x4xbf16>
    %c1 = arith.constant 1 : index
    %c0_7 = arith.constant 0 : index
    %c0_8 = arith.constant 0 : index
    %12 = vector.load %arg2[%c1, %c0_7, %c0_8] : memref<4x4x8xbf16, #tpu.memory_space<vmem>>, vector<1x4x8xbf16>
    %13 = vector.shape_cast %12 : vector<1x4x8xbf16> to vector<4x8xbf16>
    %cst_9 = arith.constant dense<0.000000e+00> : vector<256x8xf32>
    %14 = tpu.matmul %11, %13, %cst_9 {dimension_numbers = #tpu.dot_dimension_numbers<[1], [0], [0], [1], [0, 0, 1, 1], [], []>} : vector<256x4xbf16>, vector<4x8xbf16>, vector<256x8xf32> -> vector<256x8xf32>
    %15 = arith.addf %8, %14 : vector<256x8xf32>
    %16 = vector.extract_strided_slice %0 {offsets = [0, 1, 0, 0], sizes = [1, 16, 16, 4], strides = [1, 1, 1, 1]} : vector<1x17x17x4xbf16> to vector<1x16x16x4xbf16>
    %17 = vector.shape_cast %16 : vector<1x16x16x4xbf16> to vector<16x16x4xbf16>
    %18 = vector.shape_cast %17 : vector<16x16x4xbf16> to vector<256x4xbf16>
    %c2 = arith.constant 2 : index
    %c0_10 = arith.constant 0 : index
    %c0_11 = arith.constant 0 : index
    %19 = vector.load %arg2[%c2, %c0_10, %c0_11] : memref<4x4x8xbf16, #tpu.memory_space<vmem>>, vector<1x4x8xbf16>
    %20 = vector.shape_cast %19 : vector<1x4x8xbf16> to vector<4x8xbf16>
    %cst_12 = arith.constant dense<0.000000e+00> : vector<256x8xf32>
    %21 = tpu.matmul %18, %20, %cst_12 {dimension_numbers = #tpu.dot_dimension_numbers<[1], [0], [0], [1], [0, 0, 1, 1], [], []>} : vector<256x4xbf16>, vector<4x8xbf16>, vector<256x8xf32> -> vector<256x8xf32>
    %22 = arith.addf %15, %21 : vector<256x8xf32>
    %23 = vector.extract_strided_slice %0 {offsets = [0, 1, 1, 0], sizes = [1, 16, 16, 4], strides = [1, 1, 1, 1]} : vector<1x17x17x4xbf16> to vector<1x16x16x4xbf16>
    %24 = vector.shape_cast %23 : vector<1x16x16x4xbf16> to vector<16x16x4xbf16>
    %25 = vector.shape_cast %24 : vector<16x16x4xbf16> to vector<256x4xbf16>
    %c3 = arith.constant 3 : index
    %c0_13 = arith.constant 0 : index
    %c0_14 = arith.constant 0 : index
    %26 = vector.load %arg2[%c3, %c0_13, %c0_14] : memref<4x4x8xbf16, #tpu.memory_space<vmem>>, vector<1x4x8xbf16>
    %27 = vector.shape_cast %26 : vector<1x4x8xbf16> to vector<4x8xbf16>
    %cst_15 = arith.constant dense<0.000000e+00> : vector<256x8xf32>
    %28 = tpu.matmul %25, %27, %cst_15 {dimension_numbers = #tpu.dot_dimension_numbers<[1], [0], [0], [1], [0, 0, 1, 1], [], []>} : vector<256x4xbf16>, vector<4x8xbf16>, vector<256x8xf32> -> vector<256x8xf32>
    %29 = arith.addf %22, %28 : vector<256x8xf32>
    %c0_16 = arith.constant 0 : index
    %c0_17 = arith.constant 0 : index
    %30 = vector.load %arg3[%c0_16, %c0_17] : memref<1x8xf32, #tpu.memory_space<vmem>>, vector<1x8xf32>
    %31 = vector.broadcast %30 : vector<1x8xf32> to vector<256x8xf32>
    %32 = arith.addf %29, %31 : vector<256x8xf32>
    %cst_18 = arith.constant 2.000000e-01 : f32
    %33 = vector.broadcast %cst_18 : f32 to vector<256x8xf32>
    %34 = arith.mulf %33, %32 : vector<256x8xf32>
    %35 = arith.maximumf %32, %34 : vector<256x8xf32>
    %36 = arith.truncf %35 : vector<256x8xf32> to vector<256x8xbf16>
    %c0_19 = arith.constant 0 : index
    %c0_20 = arith.constant 0 : index
    %37 = vector.load %arg4[%c0_19, %c0_20] : memref<256x8xbf16, #tpu.memory_space<vmem>>, vector<256x8xbf16>
    tpu.vector_store %arg4[%c0_19, %c0_20], %36 {strides = array<i32>} : memref<256x8xbf16, #tpu.memory_space<vmem>>, vector<256x8xbf16>,
    return
  }
  func.func @transform_0(%arg0: i32) -> (i32, i32, i32, i32) {
    %c0_i32 = arith.constant 0 : i32
    %c0_i32_0 = arith.constant 0 : i32
    %c0_i32_1 = arith.constant 0 : i32
    %c0_i32_2 = arith.constant 0 : i32
    return %arg0, %c0_i32, %c0_i32_0, %c0_i32_1 : i32, i32, i32, i32
  }
  func.func @transform_1(%arg0: i32) -> (i32, i32, i32) {
    %c0_i32 = arith.constant 0 : i32
    %c0_i32_0 = arith.constant 0 : i32
    %c0_i32_1 = arith.constant 0 : i32
    %c0_i32_2 = arith.constant 0 : i32
    return %c0_i32, %c0_i32_0, %c0_i32_1 : i32, i32, i32
  }
  func.func @transform_2(%arg0: i32) -> (i32, i32) {
    %c0_i32 = arith.constant 0 : i32
    %c0_i32_0 = arith.constant 0 : i32
    %c0_i32_1 = arith.constant 0 : i32
    return %c0_i32, %c0_i32_0 : i32, i32
  }
  func.func @transform_3(%arg0: i32) -> (i32, i32) {
    %c0_i32 = arith.constant 0 : i32
    %c0_i32_0 = arith.constant 0 : i32
    return %arg0, %c0_i32 : i32, i32
  }
}

module attributes {stable_mosaic.version = 11 : i64} {
  func.func @_bn_leaky_kernel(%arg0: i32, %arg1: memref<64x32xf32, #tpu.memory_space<vmem>>, %arg2: memref<1x32xf32, #tpu.memory_space<vmem>>, %arg3: memref<1x32xf32, #tpu.memory_space<vmem>>, %arg4: memref<1x32xf32, #tpu.memory_space<vmem>>, %arg5: memref<1x32xf32, #tpu.memory_space<vmem>>, %arg6: memref<64x32xbf16, #tpu.memory_space<vmem>>) attributes {dimension_semantics = [#tpu.dimension_semantics<parallel>], iteration_bounds = array<i64: 2>, scalar_prefetch = 0 : i64, scratch_operands = 0 : i64, tpu.core_type = #tpu.core_type<tc>, window_params = [{transform_indices = @transform_0, window_bounds = array<i64: 64, 32>}, {pipeline_mode = #tpu.pipeline_mode<synchronous>, transform_indices = @transform_1, window_bounds = array<i64: 1, 32>}, {pipeline_mode = #tpu.pipeline_mode<synchronous>, transform_indices = @transform_2, window_bounds = array<i64: 1, 32>}, {pipeline_mode = #tpu.pipeline_mode<synchronous>, transform_indices = @transform_3, window_bounds = array<i64: 1, 32>}, {pipeline_mode = #tpu.pipeline_mode<synchronous>, transform_indices = @transform_4, window_bounds = array<i64: 1, 32>}, {transform_indices = @transform_5, window_bounds = array<i64: 64, 32>}]} {
    %c0 = arith.constant 0 : index
    %c0_0 = arith.constant 0 : index
    %0 = vector.load %arg1[%c0, %c0_0] : memref<64x32xf32, #tpu.memory_space<vmem>>, vector<64x32xf32>
    %c0_1 = arith.constant 0 : index
    %c0_2 = arith.constant 0 : index
    %1 = vector.load %arg2[%c0_1, %c0_2] : memref<1x32xf32, #tpu.memory_space<vmem>>, vector<1x32xf32>
    %c0_3 = arith.constant 0 : index
    %c0_4 = arith.constant 0 : index
    %2 = vector.load %arg3[%c0_3, %c0_4] : memref<1x32xf32, #tpu.memory_space<vmem>>, vector<1x32xf32>
    %c0_5 = arith.constant 0 : index
    %c0_6 = arith.constant 0 : index
    %3 = vector.load %arg4[%c0_5, %c0_6] : memref<1x32xf32, #tpu.memory_space<vmem>>, vector<1x32xf32>
    %c0_7 = arith.constant 0 : index
    %c0_8 = arith.constant 0 : index
    %4 = vector.load %arg5[%c0_7, %c0_8] : memref<1x32xf32, #tpu.memory_space<vmem>>, vector<1x32xf32>
    %cst = arith.constant 7.812500e-03 : f32
    %5 = vector.broadcast %cst : f32 to vector<1x32xf32>
    %6 = arith.mulf %1, %5 : vector<1x32xf32>
    %cst_9 = arith.constant 7.812500e-03 : f32
    %7 = vector.broadcast %cst_9 : f32 to vector<1x32xf32>
    %8 = arith.mulf %2, %7 : vector<1x32xf32>
    %9 = arith.mulf %6, %6 : vector<1x32xf32>
    %10 = arith.subf %8, %9 : vector<1x32xf32>
    %cst_10 = arith.constant 0.000000e+00 : f32
    %11 = vector.broadcast %cst_10 : f32 to vector<1x32xf32>
    %12 = arith.maximumf %10, %11 : vector<1x32xf32>
    %13 = vector.broadcast %6 : vector<1x32xf32> to vector<64x32xf32>
    %14 = arith.subf %0, %13 : vector<64x32xf32>
    %cst_11 = arith.constant 9.99999974E-6 : f32
    %15 = vector.broadcast %cst_11 : f32 to vector<1x32xf32>
    %16 = arith.addf %12, %15 : vector<1x32xf32>
    %17 = math.rsqrt %16 : vector<1x32xf32>
    %18 = arith.mulf %17, %3 : vector<1x32xf32>
    %19 = vector.broadcast %18 : vector<1x32xf32> to vector<64x32xf32>
    %20 = arith.mulf %14, %19 : vector<64x32xf32>
    %21 = vector.broadcast %4 : vector<1x32xf32> to vector<64x32xf32>
    %22 = arith.addf %20, %21 : vector<64x32xf32>
    %cst_12 = arith.constant 2.000000e-01 : f32
    %23 = vector.broadcast %cst_12 : f32 to vector<64x32xf32>
    %24 = arith.mulf %23, %22 : vector<64x32xf32>
    %25 = arith.maximumf %22, %24 : vector<64x32xf32>
    %26 = arith.truncf %25 : vector<64x32xf32> to vector<64x32xbf16>
    %c0_13 = arith.constant 0 : index
    %c0_14 = arith.constant 0 : index
    %27 = vector.load %arg6[%c0_13, %c0_14] : memref<64x32xbf16, #tpu.memory_space<vmem>>, vector<64x32xbf16>
    tpu.vector_store %arg6[%c0_13, %c0_14], %26 {strides = array<i32>} : memref<64x32xbf16, #tpu.memory_space<vmem>>, vector<64x32xbf16>,
    return
  }
  func.func @transform_0(%arg0: i32) -> (i32, i32) {
    %c0_i32 = arith.constant 0 : i32
    %c0_i32_0 = arith.constant 0 : i32
    return %arg0, %c0_i32 : i32, i32
  }
  func.func @transform_1(%arg0: i32) -> (i32, i32) {
    %c0_i32 = arith.constant 0 : i32
    %c0_i32_0 = arith.constant 0 : i32
    %c0_i32_1 = arith.constant 0 : i32
    return %c0_i32, %c0_i32_0 : i32, i32
  }
  func.func @transform_2(%arg0: i32) -> (i32, i32) {
    %c0_i32 = arith.constant 0 : i32
    %c0_i32_0 = arith.constant 0 : i32
    %c0_i32_1 = arith.constant 0 : i32
    return %c0_i32, %c0_i32_0 : i32, i32
  }
  func.func @transform_3(%arg0: i32) -> (i32, i32) {
    %c0_i32 = arith.constant 0 : i32
    %c0_i32_0 = arith.constant 0 : i32
    %c0_i32_1 = arith.constant 0 : i32
    return %c0_i32, %c0_i32_0 : i32, i32
  }
  func.func @transform_4(%arg0: i32) -> (i32, i32) {
    %c0_i32 = arith.constant 0 : i32
    %c0_i32_0 = arith.constant 0 : i32
    %c0_i32_1 = arith.constant 0 : i32
    return %c0_i32, %c0_i32_0 : i32, i32
  }
  func.func @transform_5(%arg0: i32) -> (i32, i32) {
    %c0_i32 = arith.constant 0 : i32
    %c0_i32_0 = arith.constant 0 : i32
    return %arg0, %c0_i32 : i32, i32
  }
}

module attributes {stable_mosaic.version = 11 : i64} {
  func.func @_conv_stats_kernel(%arg0: i32, %arg1: memref<1x9x9x32xbf16, #tpu.memory_space<vmem>>, %arg2: memref<4x32x32xbf16, #tpu.memory_space<vmem>>, %arg3: memref<1x32xf32, #tpu.memory_space<vmem>>, %arg4: memref<64x32xf32, #tpu.memory_space<vmem>>, %arg5: memref<1x32xf32, #tpu.memory_space<vmem>>, %arg6: memref<1x32xf32, #tpu.memory_space<vmem>>) attributes {dimension_semantics = [#tpu.dimension_semantics<arbitrary>], iteration_bounds = array<i64: 2>, scalar_prefetch = 0 : i64, scratch_operands = 0 : i64, tpu.core_type = #tpu.core_type<tc>, window_params = [{transform_indices = @transform_0, window_bounds = array<i64: 1, 9, 9, 32>}, {pipeline_mode = #tpu.pipeline_mode<synchronous>, transform_indices = @transform_1, window_bounds = array<i64: 4, 32, 32>}, {pipeline_mode = #tpu.pipeline_mode<synchronous>, transform_indices = @transform_2, window_bounds = array<i64: 1, 32>}, {transform_indices = @transform_3, window_bounds = array<i64: 64, 32>}, {pipeline_mode = #tpu.pipeline_mode<synchronous>, transform_indices = @transform_4, window_bounds = array<i64: 1, 32>}, {pipeline_mode = #tpu.pipeline_mode<synchronous>, transform_indices = @transform_5, window_bounds = array<i64: 1, 32>}]} {
    %c0 = arith.constant 0 : index
    %c0_0 = arith.constant 0 : index
    %c0_1 = arith.constant 0 : index
    %c0_2 = arith.constant 0 : index
    %0 = vector.load %arg1[%c0, %c0_0, %c0_1, %c0_2] : memref<1x9x9x32xbf16, #tpu.memory_space<vmem>>, vector<1x9x9x32xbf16>
    %cst = arith.constant 0.000000e+00 : f32
    %1 = vector.broadcast %cst : f32 to vector<64x32xf32>
    %2 = vector.extract_strided_slice %0 {offsets = [0, 0, 0, 0], sizes = [1, 8, 8, 32], strides = [1, 1, 1, 1]} : vector<1x9x9x32xbf16> to vector<1x8x8x32xbf16>
    %3 = vector.shape_cast %2 : vector<1x8x8x32xbf16> to vector<8x8x32xbf16>
    %4 = vector.shape_cast %3 : vector<8x8x32xbf16> to vector<64x32xbf16>
    %c0_3 = arith.constant 0 : index
    %c0_4 = arith.constant 0 : index
    %c0_5 = arith.constant 0 : index
    %5 = vector.load %arg2[%c0_3, %c0_4, %c0_5] : memref<4x32x32xbf16, #tpu.memory_space<vmem>>, vector<1x32x32xbf16>
    %6 = vector.shape_cast %5 : vector<1x32x32xbf16> to vector<32x32xbf16>
    %cst_6 = arith.constant dense<0.000000e+00> : vector<64x32xf32>
    %7 = tpu.matmul %4, %6, %cst_6 {dimension_numbers = #tpu.dot_dimension_numbers<[1], [0], [0], [1], [0, 0, 1, 1], [], []>} : vector<64x32xbf16>, vector<32x32xbf16>, vector<64x32xf32> -> vector<64x32xf32>
    %8 = arith.addf %1, %7 : vector<64x32xf32>
    %9 = vector.extract_strided_slice %0 {offsets = [0, 0, 1, 0], sizes = [1, 8, 8, 32], strides = [1, 1, 1, 1]} : vector<1x9x9x32xbf16> to vector<1x8x8x32xbf16>
    %10 = vector.shape_cast %9 : vector<1x8x8x32xbf16> to vector<8x8x32xbf16>
    %11 = vector.shape_cast %10 : vector<8x8x32xbf16> to vector<64x32xbf16>
    %c1 = arith.constant 1 : index
    %c0_7 = arith.constant 0 : index
    %c0_8 = arith.constant 0 : index
    %12 = vector.load %arg2[%c1, %c0_7, %c0_8] : memref<4x32x32xbf16, #tpu.memory_space<vmem>>, vector<1x32x32xbf16>
    %13 = vector.shape_cast %12 : vector<1x32x32xbf16> to vector<32x32xbf16>
    %cst_9 = arith.constant dense<0.000000e+00> : vector<64x32xf32>
    %14 = tpu.matmul %11, %13, %cst_9 {dimension_numbers = #tpu.dot_dimension_numbers<[1], [0], [0], [1], [0, 0, 1, 1], [], []>} : vector<64x32xbf16>, vector<32x32xbf16>, vector<64x32xf32> -> vector<64x32xf32>
    %15 = arith.addf %8, %14 : vector<64x32xf32>
    %16 = vector.extract_strided_slice %0 {offsets = [0, 1, 0, 0], sizes = [1, 8, 8, 32], strides = [1, 1, 1, 1]} : vector<1x9x9x32xbf16> to vector<1x8x8x32xbf16>
    %17 = vector.shape_cast %16 : vector<1x8x8x32xbf16> to vector<8x8x32xbf16>
    %18 = vector.shape_cast %17 : vector<8x8x32xbf16> to vector<64x32xbf16>
    %c2 = arith.constant 2 : index
    %c0_10 = arith.constant 0 : index
    %c0_11 = arith.constant 0 : index
    %19 = vector.load %arg2[%c2, %c0_10, %c0_11] : memref<4x32x32xbf16, #tpu.memory_space<vmem>>, vector<1x32x32xbf16>
    %20 = vector.shape_cast %19 : vector<1x32x32xbf16> to vector<32x32xbf16>
    %cst_12 = arith.constant dense<0.000000e+00> : vector<64x32xf32>
    %21 = tpu.matmul %18, %20, %cst_12 {dimension_numbers = #tpu.dot_dimension_numbers<[1], [0], [0], [1], [0, 0, 1, 1], [], []>} : vector<64x32xbf16>, vector<32x32xbf16>, vector<64x32xf32> -> vector<64x32xf32>
    %22 = arith.addf %15, %21 : vector<64x32xf32>
    %23 = vector.extract_strided_slice %0 {offsets = [0, 1, 1, 0], sizes = [1, 8, 8, 32], strides = [1, 1, 1, 1]} : vector<1x9x9x32xbf16> to vector<1x8x8x32xbf16>
    %24 = vector.shape_cast %23 : vector<1x8x8x32xbf16> to vector<8x8x32xbf16>
    %25 = vector.shape_cast %24 : vector<8x8x32xbf16> to vector<64x32xbf16>
    %c3 = arith.constant 3 : index
    %c0_13 = arith.constant 0 : index
    %c0_14 = arith.constant 0 : index
    %26 = vector.load %arg2[%c3, %c0_13, %c0_14] : memref<4x32x32xbf16, #tpu.memory_space<vmem>>, vector<1x32x32xbf16>
    %27 = vector.shape_cast %26 : vector<1x32x32xbf16> to vector<32x32xbf16>
    %cst_15 = arith.constant dense<0.000000e+00> : vector<64x32xf32>
    %28 = tpu.matmul %25, %27, %cst_15 {dimension_numbers = #tpu.dot_dimension_numbers<[1], [0], [0], [1], [0, 0, 1, 1], [], []>} : vector<64x32xbf16>, vector<32x32xbf16>, vector<64x32xf32> -> vector<64x32xf32>
    %29 = arith.addf %22, %28 : vector<64x32xf32>
    %c0_16 = arith.constant 0 : index
    %c0_17 = arith.constant 0 : index
    %30 = vector.load %arg3[%c0_16, %c0_17] : memref<1x32xf32, #tpu.memory_space<vmem>>, vector<1x32xf32>
    %31 = vector.broadcast %30 : vector<1x32xf32> to vector<64x32xf32>
    %32 = arith.addf %29, %31 : vector<64x32xf32>
    %c0_18 = arith.constant 0 : index
    %c0_19 = arith.constant 0 : index
    %33 = vector.load %arg4[%c0_18, %c0_19] : memref<64x32xf32, #tpu.memory_space<vmem>>, vector<64x32xf32>
    tpu.vector_store %arg4[%c0_18, %c0_19], %32 {strides = array<i32>} : memref<64x32xf32, #tpu.memory_space<vmem>>, vector<64x32xf32>,
    %c0_i32 = arith.constant 0 : i32
    %34 = arith.cmpi eq, %arg0, %c0_i32 : i32
    %35 = arith.extui %34 : i1 to i32
    %c0_i32_20 = arith.constant 0 : i32
    %36 = arith.cmpi ne, %35, %c0_i32_20 : i32
    scf.if %36 {
      %cst_31 = arith.constant 0.000000e+00 : f32
      %48 = vector.broadcast %cst_31 : f32 to vector<1x32xf32>
      %c0_32 = arith.constant 0 : index
      %c0_33 = arith.constant 0 : index
      %49 = vector.load %arg5[%c0_32, %c0_33] : memref<1x32xf32, #tpu.memory_space<vmem>>, vector<1x32xf32>
      tpu.vector_store %arg5[%c0_32, %c0_33], %48 {strides = array<i32>} : memref<1x32xf32, #tpu.memory_space<vmem>>, vector<1x32xf32>,
      %cst_34 = arith.constant 0.000000e+00 : f32
      %50 = vector.broadcast %cst_34 : f32 to vector<1x32xf32>
      %c0_35 = arith.constant 0 : index
      %c0_36 = arith.constant 0 : index
      %51 = vector.load %arg6[%c0_35, %c0_36] : memref<1x32xf32, #tpu.memory_space<vmem>>, vector<1x32xf32>
      tpu.vector_store %arg6[%c0_35, %c0_36], %50 {strides = array<i32>} : memref<1x32xf32, #tpu.memory_space<vmem>>, vector<1x32xf32>,
    } else {
    }
    %c0_21 = arith.constant 0 : index
    %c0_22 = arith.constant 0 : index
    %37 = vector.load %arg5[%c0_21, %c0_22] : memref<1x32xf32, #tpu.memory_space<vmem>>, vector<1x32xf32>
    %cst_23 = arith.constant dense<0.000000e+00> : vector<32xf32>
    %38 = vector.multi_reduction <add>, %32, %cst_23 [0] : vector<64x32xf32> to vector<32xf32>
    %39 = vector.shape_cast %38 : vector<32xf32> to vector<1x32xf32>
    %40 = arith.addf %37, %39 : vector<1x32xf32>
    %c0_24 = arith.constant 0 : index
    %c0_25 = arith.constant 0 : index
    %41 = vector.load %arg5[%c0_24, %c0_25] : memref<1x32xf32, #tpu.memory_space<vmem>>, vector<1x32xf32>
    tpu.vector_store %arg5[%c0_24, %c0_25], %40 {strides = array<i32>} : memref<1x32xf32, #tpu.memory_space<vmem>>, vector<1x32xf32>,
    %c0_26 = arith.constant 0 : index
    %c0_27 = arith.constant 0 : index
    %42 = vector.load %arg6[%c0_26, %c0_27] : memref<1x32xf32, #tpu.memory_space<vmem>>, vector<1x32xf32>
    %43 = arith.mulf %32, %32 : vector<64x32xf32>
    %cst_28 = arith.constant dense<0.000000e+00> : vector<32xf32>
    %44 = vector.multi_reduction <add>, %43, %cst_28 [0] : vector<64x32xf32> to vector<32xf32>
    %45 = vector.shape_cast %44 : vector<32xf32> to vector<1x32xf32>
    %46 = arith.addf %42, %45 : vector<1x32xf32>
    %c0_29 = arith.constant 0 : index
    %c0_30 = arith.constant 0 : index
    %47 = vector.load %arg6[%c0_29, %c0_30] : memref<1x32xf32, #tpu.memory_space<vmem>>, vector<1x32xf32>
    tpu.vector_store %arg6[%c0_29, %c0_30], %46 {strides = array<i32>} : memref<1x32xf32, #tpu.memory_space<vmem>>, vector<1x32xf32>,
    return
  }
  func.func @transform_0(%arg0: i32) -> (i32, i32, i32, i32) {
    %c0_i32 = arith.constant 0 : i32
    %c0_i32_0 = arith.constant 0 : i32
    %c0_i32_1 = arith.constant 0 : i32
    %c0_i32_2 = arith.constant 0 : i32
    return %arg0, %c0_i32, %c0_i32_0, %c0_i32_1 : i32, i32, i32, i32
  }
  func.func @transform_1(%arg0: i32) -> (i32, i32, i32) {
    %c0_i32 = arith.constant 0 : i32
    %c0_i32_0 = arith.constant 0 : i32
    %c0_i32_1 = arith.constant 0 : i32
    %c0_i32_2 = arith.constant 0 : i32
    return %c0_i32, %c0_i32_0, %c0_i32_1 : i32, i32, i32
  }
  func.func @transform_2(%arg0: i32) -> (i32, i32) {
    %c0_i32 = arith.constant 0 : i32
    %c0_i32_0 = arith.constant 0 : i32
    %c0_i32_1 = arith.constant 0 : i32
    return %c0_i32, %c0_i32_0 : i32, i32
  }
  func.func @transform_3(%arg0: i32) -> (i32, i32) {
    %c0_i32 = arith.constant 0 : i32
    %c0_i32_0 = arith.constant 0 : i32
    return %arg0, %c0_i32 : i32, i32
  }
  func.func @transform_4(%arg0: i32) -> (i32, i32) {
    %c0_i32 = arith.constant 0 : i32
    %c0_i32_0 = arith.constant 0 : i32
    %c0_i32_1 = arith.constant 0 : i32
    return %c0_i32, %c0_i32_0 : i32, i32
  }
  func.func @transform_5(%arg0: i32) -> (i32, i32) {
    %c0_i32 = arith.constant 0 : i32
    %c0_i32_0 = arith.constant 0 : i32
    %c0_i32_1 = arith.constant 0 : i32
    return %c0_i32, %c0_i32_0 : i32, i32
  }
}

module attributes {stable_mosaic.version = 11 : i64} {
  func.func @_conv_stats_kernel(%arg0: i32, %arg1: memref<1x5x5x128xbf16, #tpu.memory_space<vmem>>, %arg2: memref<4x128x64xbf16, #tpu.memory_space<vmem>>, %arg3: memref<1x64xf32, #tpu.memory_space<vmem>>, %arg4: memref<16x64xf32, #tpu.memory_space<vmem>>, %arg5: memref<1x64xf32, #tpu.memory_space<vmem>>, %arg6: memref<1x64xf32, #tpu.memory_space<vmem>>) attributes {dimension_semantics = [#tpu.dimension_semantics<arbitrary>], iteration_bounds = array<i64: 2>, scalar_prefetch = 0 : i64, scratch_operands = 0 : i64, tpu.core_type = #tpu.core_type<tc>, window_params = [{transform_indices = @transform_0, window_bounds = array<i64: 1, 5, 5, 128>}, {pipeline_mode = #tpu.pipeline_mode<synchronous>, transform_indices = @transform_1, window_bounds = array<i64: 4, 128, 64>}, {pipeline_mode = #tpu.pipeline_mode<synchronous>, transform_indices = @transform_2, window_bounds = array<i64: 1, 64>}, {transform_indices = @transform_3, window_bounds = array<i64: 16, 64>}, {pipeline_mode = #tpu.pipeline_mode<synchronous>, transform_indices = @transform_4, window_bounds = array<i64: 1, 64>}, {pipeline_mode = #tpu.pipeline_mode<synchronous>, transform_indices = @transform_5, window_bounds = array<i64: 1, 64>}]} {
    %c0 = arith.constant 0 : index
    %c0_0 = arith.constant 0 : index
    %c0_1 = arith.constant 0 : index
    %c0_2 = arith.constant 0 : index
    %0 = vector.load %arg1[%c0, %c0_0, %c0_1, %c0_2] : memref<1x5x5x128xbf16, #tpu.memory_space<vmem>>, vector<1x5x5x128xbf16>
    %cst = arith.constant 0.000000e+00 : f32
    %1 = vector.broadcast %cst : f32 to vector<16x64xf32>
    %2 = vector.extract_strided_slice %0 {offsets = [0, 0, 0, 0], sizes = [1, 4, 4, 128], strides = [1, 1, 1, 1]} : vector<1x5x5x128xbf16> to vector<1x4x4x128xbf16>
    %3 = vector.shape_cast %2 : vector<1x4x4x128xbf16> to vector<4x4x128xbf16>
    %4 = vector.shape_cast %3 : vector<4x4x128xbf16> to vector<16x128xbf16>
    %c0_3 = arith.constant 0 : index
    %c0_4 = arith.constant 0 : index
    %c0_5 = arith.constant 0 : index
    %5 = vector.load %arg2[%c0_3, %c0_4, %c0_5] : memref<4x128x64xbf16, #tpu.memory_space<vmem>>, vector<1x128x64xbf16>
    %6 = vector.shape_cast %5 : vector<1x128x64xbf16> to vector<128x64xbf16>
    %cst_6 = arith.constant dense<0.000000e+00> : vector<16x64xf32>
    %7 = tpu.matmul %4, %6, %cst_6 {dimension_numbers = #tpu.dot_dimension_numbers<[1], [0], [0], [1], [0, 0, 1, 1], [], []>} : vector<16x128xbf16>, vector<128x64xbf16>, vector<16x64xf32> -> vector<16x64xf32>
    %8 = arith.addf %1, %7 : vector<16x64xf32>
    %9 = vector.extract_strided_slice %0 {offsets = [0, 0, 1, 0], sizes = [1, 4, 4, 128], strides = [1, 1, 1, 1]} : vector<1x5x5x128xbf16> to vector<1x4x4x128xbf16>
    %10 = vector.shape_cast %9 : vector<1x4x4x128xbf16> to vector<4x4x128xbf16>
    %11 = vector.shape_cast %10 : vector<4x4x128xbf16> to vector<16x128xbf16>
    %c1 = arith.constant 1 : index
    %c0_7 = arith.constant 0 : index
    %c0_8 = arith.constant 0 : index
    %12 = vector.load %arg2[%c1, %c0_7, %c0_8] : memref<4x128x64xbf16, #tpu.memory_space<vmem>>, vector<1x128x64xbf16>
    %13 = vector.shape_cast %12 : vector<1x128x64xbf16> to vector<128x64xbf16>
    %cst_9 = arith.constant dense<0.000000e+00> : vector<16x64xf32>
    %14 = tpu.matmul %11, %13, %cst_9 {dimension_numbers = #tpu.dot_dimension_numbers<[1], [0], [0], [1], [0, 0, 1, 1], [], []>} : vector<16x128xbf16>, vector<128x64xbf16>, vector<16x64xf32> -> vector<16x64xf32>
    %15 = arith.addf %8, %14 : vector<16x64xf32>
    %16 = vector.extract_strided_slice %0 {offsets = [0, 1, 0, 0], sizes = [1, 4, 4, 128], strides = [1, 1, 1, 1]} : vector<1x5x5x128xbf16> to vector<1x4x4x128xbf16>
    %17 = vector.shape_cast %16 : vector<1x4x4x128xbf16> to vector<4x4x128xbf16>
    %18 = vector.shape_cast %17 : vector<4x4x128xbf16> to vector<16x128xbf16>
    %c2 = arith.constant 2 : index
    %c0_10 = arith.constant 0 : index
    %c0_11 = arith.constant 0 : index
    %19 = vector.load %arg2[%c2, %c0_10, %c0_11] : memref<4x128x64xbf16, #tpu.memory_space<vmem>>, vector<1x128x64xbf16>
    %20 = vector.shape_cast %19 : vector<1x128x64xbf16> to vector<128x64xbf16>
    %cst_12 = arith.constant dense<0.000000e+00> : vector<16x64xf32>
    %21 = tpu.matmul %18, %20, %cst_12 {dimension_numbers = #tpu.dot_dimension_numbers<[1], [0], [0], [1], [0, 0, 1, 1], [], []>} : vector<16x128xbf16>, vector<128x64xbf16>, vector<16x64xf32> -> vector<16x64xf32>
    %22 = arith.addf %15, %21 : vector<16x64xf32>
    %23 = vector.extract_strided_slice %0 {offsets = [0, 1, 1, 0], sizes = [1, 4, 4, 128], strides = [1, 1, 1, 1]} : vector<1x5x5x128xbf16> to vector<1x4x4x128xbf16>
    %24 = vector.shape_cast %23 : vector<1x4x4x128xbf16> to vector<4x4x128xbf16>
    %25 = vector.shape_cast %24 : vector<4x4x128xbf16> to vector<16x128xbf16>
    %c3 = arith.constant 3 : index
    %c0_13 = arith.constant 0 : index
    %c0_14 = arith.constant 0 : index
    %26 = vector.load %arg2[%c3, %c0_13, %c0_14] : memref<4x128x64xbf16, #tpu.memory_space<vmem>>, vector<1x128x64xbf16>
    %27 = vector.shape_cast %26 : vector<1x128x64xbf16> to vector<128x64xbf16>
    %cst_15 = arith.constant dense<0.000000e+00> : vector<16x64xf32>
    %28 = tpu.matmul %25, %27, %cst_15 {dimension_numbers = #tpu.dot_dimension_numbers<[1], [0], [0], [1], [0, 0, 1, 1], [], []>} : vector<16x128xbf16>, vector<128x64xbf16>, vector<16x64xf32> -> vector<16x64xf32>
    %29 = arith.addf %22, %28 : vector<16x64xf32>
    %c0_16 = arith.constant 0 : index
    %c0_17 = arith.constant 0 : index
    %30 = vector.load %arg3[%c0_16, %c0_17] : memref<1x64xf32, #tpu.memory_space<vmem>>, vector<1x64xf32>
    %31 = vector.broadcast %30 : vector<1x64xf32> to vector<16x64xf32>
    %32 = arith.addf %29, %31 : vector<16x64xf32>
    %c0_18 = arith.constant 0 : index
    %c0_19 = arith.constant 0 : index
    %33 = vector.load %arg4[%c0_18, %c0_19] : memref<16x64xf32, #tpu.memory_space<vmem>>, vector<16x64xf32>
    tpu.vector_store %arg4[%c0_18, %c0_19], %32 {strides = array<i32>} : memref<16x64xf32, #tpu.memory_space<vmem>>, vector<16x64xf32>,
    %c0_i32 = arith.constant 0 : i32
    %34 = arith.cmpi eq, %arg0, %c0_i32 : i32
    %35 = arith.extui %34 : i1 to i32
    %c0_i32_20 = arith.constant 0 : i32
    %36 = arith.cmpi ne, %35, %c0_i32_20 : i32
    scf.if %36 {
      %cst_31 = arith.constant 0.000000e+00 : f32
      %48 = vector.broadcast %cst_31 : f32 to vector<1x64xf32>
      %c0_32 = arith.constant 0 : index
      %c0_33 = arith.constant 0 : index
      %49 = vector.load %arg5[%c0_32, %c0_33] : memref<1x64xf32, #tpu.memory_space<vmem>>, vector<1x64xf32>
      tpu.vector_store %arg5[%c0_32, %c0_33], %48 {strides = array<i32>} : memref<1x64xf32, #tpu.memory_space<vmem>>, vector<1x64xf32>,
      %cst_34 = arith.constant 0.000000e+00 : f32
      %50 = vector.broadcast %cst_34 : f32 to vector<1x64xf32>
      %c0_35 = arith.constant 0 : index
      %c0_36 = arith.constant 0 : index
      %51 = vector.load %arg6[%c0_35, %c0_36] : memref<1x64xf32, #tpu.memory_space<vmem>>, vector<1x64xf32>
      tpu.vector_store %arg6[%c0_35, %c0_36], %50 {strides = array<i32>} : memref<1x64xf32, #tpu.memory_space<vmem>>, vector<1x64xf32>,
    } else {
    }
    %c0_21 = arith.constant 0 : index
    %c0_22 = arith.constant 0 : index
    %37 = vector.load %arg5[%c0_21, %c0_22] : memref<1x64xf32, #tpu.memory_space<vmem>>, vector<1x64xf32>
    %cst_23 = arith.constant dense<0.000000e+00> : vector<64xf32>
    %38 = vector.multi_reduction <add>, %32, %cst_23 [0] : vector<16x64xf32> to vector<64xf32>
    %39 = vector.shape_cast %38 : vector<64xf32> to vector<1x64xf32>
    %40 = arith.addf %37, %39 : vector<1x64xf32>
    %c0_24 = arith.constant 0 : index
    %c0_25 = arith.constant 0 : index
    %41 = vector.load %arg5[%c0_24, %c0_25] : memref<1x64xf32, #tpu.memory_space<vmem>>, vector<1x64xf32>
    tpu.vector_store %arg5[%c0_24, %c0_25], %40 {strides = array<i32>} : memref<1x64xf32, #tpu.memory_space<vmem>>, vector<1x64xf32>,
    %c0_26 = arith.constant 0 : index
    %c0_27 = arith.constant 0 : index
    %42 = vector.load %arg6[%c0_26, %c0_27] : memref<1x64xf32, #tpu.memory_space<vmem>>, vector<1x64xf32>
    %43 = arith.mulf %32, %32 : vector<16x64xf32>
    %cst_28 = arith.constant dense<0.000000e+00> : vector<64xf32>
    %44 = vector.multi_reduction <add>, %43, %cst_28 [0] : vector<16x64xf32> to vector<64xf32>
    %45 = vector.shape_cast %44 : vector<64xf32> to vector<1x64xf32>
    %46 = arith.addf %42, %45 : vector<1x64xf32>
    %c0_29 = arith.constant 0 : index
    %c0_30 = arith.constant 0 : index
    %47 = vector.load %arg6[%c0_29, %c0_30] : memref<1x64xf32, #tpu.memory_space<vmem>>, vector<1x64xf32>
    tpu.vector_store %arg6[%c0_29, %c0_30], %46 {strides = array<i32>} : memref<1x64xf32, #tpu.memory_space<vmem>>, vector<1x64xf32>,
    return
  }
  func.func @transform_0(%arg0: i32) -> (i32, i32, i32, i32) {
    %c0_i32 = arith.constant 0 : i32
    %c0_i32_0 = arith.constant 0 : i32
    %c0_i32_1 = arith.constant 0 : i32
    %c0_i32_2 = arith.constant 0 : i32
    return %arg0, %c0_i32, %c0_i32_0, %c0_i32_1 : i32, i32, i32, i32
  }
  func.func @transform_1(%arg0: i32) -> (i32, i32, i32) {
    %c0_i32 = arith.constant 0 : i32
    %c0_i32_0 = arith.constant 0 : i32
    %c0_i32_1 = arith.constant 0 : i32
    %c0_i32_2 = arith.constant 0 : i32
    return %c0_i32, %c0_i32_0, %c0_i32_1 : i32, i32, i32
  }
  func.func @transform_2(%arg0: i32) -> (i32, i32) {
    %c0_i32 = arith.constant 0 : i32
    %c0_i32_0 = arith.constant 0 : i32
    %c0_i32_1 = arith.constant 0 : i32
    return %c0_i32, %c0_i32_0 : i32, i32
  }
  func.func @transform_3(%arg0: i32) -> (i32, i32) {
    %c0_i32 = arith.constant 0 : i32
    %c0_i32_0 = arith.constant 0 : i32
    return %arg0, %c0_i32 : i32, i32
  }
  func.func @transform_4(%arg0: i32) -> (i32, i32) {
    %c0_i32 = arith.constant 0 : i32
    %c0_i32_0 = arith.constant 0 : i32
    %c0_i32_1 = arith.constant 0 : i32
    return %c0_i32, %c0_i32_0 : i32, i32
  }
  func.func @transform_5(%arg0: i32) -> (i32, i32) {
    %c0_i32 = arith.constant 0 : i32
    %c0_i32_0 = arith.constant 0 : i32
    %c0_i32_1 = arith.constant 0 : i32
    return %c0_i32, %c0_i32_0 : i32, i32
  }
}

module attributes {stable_mosaic.version = 11 : i64} {
  func.func @_bn_leaky_conv4_lsm_kernel(%arg0: i32, %arg1: memref<16x64xf32, #tpu.memory_space<vmem>>, %arg2: memref<1x64xf32, #tpu.memory_space<vmem>>, %arg3: memref<1x64xf32, #tpu.memory_space<vmem>>, %arg4: memref<1x64xf32, #tpu.memory_space<vmem>>, %arg5: memref<1x64xf32, #tpu.memory_space<vmem>>, %arg6: memref<16x64x6xbf16, #tpu.memory_space<vmem>>, %arg7: memref<1x6xf32, #tpu.memory_space<vmem>>, %arg8: memref<1x1x6xf32, #tpu.memory_space<vmem>>) attributes {dimension_semantics = [#tpu.dimension_semantics<parallel>], iteration_bounds = array<i64: 2>, scalar_prefetch = 0 : i64, scratch_operands = 0 : i64, tpu.core_type = #tpu.core_type<tc>, window_params = [{transform_indices = @transform_0, window_bounds = array<i64: 16, 64>}, {pipeline_mode = #tpu.pipeline_mode<synchronous>, transform_indices = @transform_1, window_bounds = array<i64: 1, 64>}, {pipeline_mode = #tpu.pipeline_mode<synchronous>, transform_indices = @transform_2, window_bounds = array<i64: 1, 64>}, {pipeline_mode = #tpu.pipeline_mode<synchronous>, transform_indices = @transform_3, window_bounds = array<i64: 1, 64>}, {pipeline_mode = #tpu.pipeline_mode<synchronous>, transform_indices = @transform_4, window_bounds = array<i64: 1, 64>}, {pipeline_mode = #tpu.pipeline_mode<synchronous>, transform_indices = @transform_5, window_bounds = array<i64: 16, 64, 6>}, {pipeline_mode = #tpu.pipeline_mode<synchronous>, transform_indices = @transform_6, window_bounds = array<i64: 1, 6>}, {transform_indices = @transform_7, window_bounds = array<i64: 1, 1, 6>}]} {
    %c0 = arith.constant 0 : index
    %c0_0 = arith.constant 0 : index
    %0 = vector.load %arg1[%c0, %c0_0] : memref<16x64xf32, #tpu.memory_space<vmem>>, vector<16x64xf32>
    %c0_1 = arith.constant 0 : index
    %c0_2 = arith.constant 0 : index
    %1 = vector.load %arg2[%c0_1, %c0_2] : memref<1x64xf32, #tpu.memory_space<vmem>>, vector<1x64xf32>
    %c0_3 = arith.constant 0 : index
    %c0_4 = arith.constant 0 : index
    %2 = vector.load %arg3[%c0_3, %c0_4] : memref<1x64xf32, #tpu.memory_space<vmem>>, vector<1x64xf32>
    %c0_5 = arith.constant 0 : index
    %c0_6 = arith.constant 0 : index
    %3 = vector.load %arg4[%c0_5, %c0_6] : memref<1x64xf32, #tpu.memory_space<vmem>>, vector<1x64xf32>
    %c0_7 = arith.constant 0 : index
    %c0_8 = arith.constant 0 : index
    %4 = vector.load %arg5[%c0_7, %c0_8] : memref<1x64xf32, #tpu.memory_space<vmem>>, vector<1x64xf32>
    %cst = arith.constant 3.125000e-02 : f32
    %5 = vector.broadcast %cst : f32 to vector<1x64xf32>
    %6 = arith.mulf %1, %5 : vector<1x64xf32>
    %cst_9 = arith.constant 3.125000e-02 : f32
    %7 = vector.broadcast %cst_9 : f32 to vector<1x64xf32>
    %8 = arith.mulf %2, %7 : vector<1x64xf32>
    %9 = arith.mulf %6, %6 : vector<1x64xf32>
    %10 = arith.subf %8, %9 : vector<1x64xf32>
    %cst_10 = arith.constant 0.000000e+00 : f32
    %11 = vector.broadcast %cst_10 : f32 to vector<1x64xf32>
    %12 = arith.maximumf %10, %11 : vector<1x64xf32>
    %13 = vector.broadcast %6 : vector<1x64xf32> to vector<16x64xf32>
    %14 = arith.subf %0, %13 : vector<16x64xf32>
    %cst_11 = arith.constant 9.99999974E-6 : f32
    %15 = vector.broadcast %cst_11 : f32 to vector<1x64xf32>
    %16 = arith.addf %12, %15 : vector<1x64xf32>
    %17 = math.rsqrt %16 : vector<1x64xf32>
    %18 = arith.mulf %17, %3 : vector<1x64xf32>
    %19 = vector.broadcast %18 : vector<1x64xf32> to vector<16x64xf32>
    %20 = arith.mulf %14, %19 : vector<16x64xf32>
    %21 = vector.broadcast %4 : vector<1x64xf32> to vector<16x64xf32>
    %22 = arith.addf %20, %21 : vector<16x64xf32>
    %cst_12 = arith.constant 2.000000e-01 : f32
    %23 = vector.broadcast %cst_12 : f32 to vector<16x64xf32>
    %24 = arith.mulf %23, %22 : vector<16x64xf32>
    %25 = arith.maximumf %22, %24 : vector<16x64xf32>
    %26 = arith.truncf %25 : vector<16x64xf32> to vector<16x64xbf16>
    %cst_13 = arith.constant 0.000000e+00 : f32
    %27 = vector.broadcast %cst_13 : f32 to vector<1x6xf32>
    %28 = vector.extract_strided_slice %26 {offsets = [0, 0], sizes = [1, 64], strides = [1, 1]} : vector<16x64xbf16> to vector<1x64xbf16>
    %c0_14 = arith.constant 0 : index
    %c0_15 = arith.constant 0 : index
    %c0_16 = arith.constant 0 : index
    %29 = vector.load %arg6[%c0_14, %c0_15, %c0_16] : memref<16x64x6xbf16, #tpu.memory_space<vmem>>, vector<1x64x6xbf16>
    %30 = vector.shape_cast %29 : vector<1x64x6xbf16> to vector<64x6xbf16>
    %cst_17 = arith.constant dense<0.000000e+00> : vector<1x6xf32>
    %31 = tpu.matmul %28, %30, %cst_17 {dimension_numbers = #tpu.dot_dimension_numbers<[1], [0], [0], [1], [0, 0, 1, 1], [], []>} : vector<1x64xbf16>, vector<64x6xbf16>, vector<1x6xf32> -> vector<1x6xf32>
    %32 = arith.addf %27, %31 : vector<1x6xf32>
    %33 = vector.extract_strided_slice %26 {offsets = [1, 0], sizes = [1, 64], strides = [1, 1]} : vector<16x64xbf16> to vector<1x64xbf16>
    %c1 = arith.constant 1 : index
    %c0_18 = arith.constant 0 : index
    %c0_19 = arith.constant 0 : index
    %34 = vector.load %arg6[%c1, %c0_18, %c0_19] : memref<16x64x6xbf16, #tpu.memory_space<vmem>>, vector<1x64x6xbf16>
    %35 = vector.shape_cast %34 : vector<1x64x6xbf16> to vector<64x6xbf16>
    %cst_20 = arith.constant dense<0.000000e+00> : vector<1x6xf32>
    %36 = tpu.matmul %33, %35, %cst_20 {dimension_numbers = #tpu.dot_dimension_numbers<[1], [0], [0], [1], [0, 0, 1, 1], [], []>} : vector<1x64xbf16>, vector<64x6xbf16>, vector<1x6xf32> -> vector<1x6xf32>
    %37 = arith.addf %32, %36 : vector<1x6xf32>
    %38 = vector.extract_strided_slice %26 {offsets = [2, 0], sizes = [1, 64], strides = [1, 1]} : vector<16x64xbf16> to vector<1x64xbf16>
    %c2 = arith.constant 2 : index
    %c0_21 = arith.constant 0 : index
    %c0_22 = arith.constant 0 : index
    %39 = vector.load %arg6[%c2, %c0_21, %c0_22] : memref<16x64x6xbf16, #tpu.memory_space<vmem>>, vector<1x64x6xbf16>
    %40 = vector.shape_cast %39 : vector<1x64x6xbf16> to vector<64x6xbf16>
    %cst_23 = arith.constant dense<0.000000e+00> : vector<1x6xf32>
    %41 = tpu.matmul %38, %40, %cst_23 {dimension_numbers = #tpu.dot_dimension_numbers<[1], [0], [0], [1], [0, 0, 1, 1], [], []>} : vector<1x64xbf16>, vector<64x6xbf16>, vector<1x6xf32> -> vector<1x6xf32>
    %42 = arith.addf %37, %41 : vector<1x6xf32>
    %43 = vector.extract_strided_slice %26 {offsets = [3, 0], sizes = [1, 64], strides = [1, 1]} : vector<16x64xbf16> to vector<1x64xbf16>
    %c3 = arith.constant 3 : index
    %c0_24 = arith.constant 0 : index
    %c0_25 = arith.constant 0 : index
    %44 = vector.load %arg6[%c3, %c0_24, %c0_25] : memref<16x64x6xbf16, #tpu.memory_space<vmem>>, vector<1x64x6xbf16>
    %45 = vector.shape_cast %44 : vector<1x64x6xbf16> to vector<64x6xbf16>
    %cst_26 = arith.constant dense<0.000000e+00> : vector<1x6xf32>
    %46 = tpu.matmul %43, %45, %cst_26 {dimension_numbers = #tpu.dot_dimension_numbers<[1], [0], [0], [1], [0, 0, 1, 1], [], []>} : vector<1x64xbf16>, vector<64x6xbf16>, vector<1x6xf32> -> vector<1x6xf32>
    %47 = arith.addf %42, %46 : vector<1x6xf32>
    %48 = vector.extract_strided_slice %26 {offsets = [4, 0], sizes = [1, 64], strides = [1, 1]} : vector<16x64xbf16> to vector<1x64xbf16>
    %c4 = arith.constant 4 : index
    %c0_27 = arith.constant 0 : index
    %c0_28 = arith.constant 0 : index
    %49 = vector.load %arg6[%c4, %c0_27, %c0_28] : memref<16x64x6xbf16, #tpu.memory_space<vmem>>, vector<1x64x6xbf16>
    %50 = vector.shape_cast %49 : vector<1x64x6xbf16> to vector<64x6xbf16>
    %cst_29 = arith.constant dense<0.000000e+00> : vector<1x6xf32>
    %51 = tpu.matmul %48, %50, %cst_29 {dimension_numbers = #tpu.dot_dimension_numbers<[1], [0], [0], [1], [0, 0, 1, 1], [], []>} : vector<1x64xbf16>, vector<64x6xbf16>, vector<1x6xf32> -> vector<1x6xf32>
    %52 = arith.addf %47, %51 : vector<1x6xf32>
    %53 = vector.extract_strided_slice %26 {offsets = [5, 0], sizes = [1, 64], strides = [1, 1]} : vector<16x64xbf16> to vector<1x64xbf16>
    %c5 = arith.constant 5 : index
    %c0_30 = arith.constant 0 : index
    %c0_31 = arith.constant 0 : index
    %54 = vector.load %arg6[%c5, %c0_30, %c0_31] : memref<16x64x6xbf16, #tpu.memory_space<vmem>>, vector<1x64x6xbf16>
    %55 = vector.shape_cast %54 : vector<1x64x6xbf16> to vector<64x6xbf16>
    %cst_32 = arith.constant dense<0.000000e+00> : vector<1x6xf32>
    %56 = tpu.matmul %53, %55, %cst_32 {dimension_numbers = #tpu.dot_dimension_numbers<[1], [0], [0], [1], [0, 0, 1, 1], [], []>} : vector<1x64xbf16>, vector<64x6xbf16>, vector<1x6xf32> -> vector<1x6xf32>
    %57 = arith.addf %52, %56 : vector<1x6xf32>
    %58 = vector.extract_strided_slice %26 {offsets = [6, 0], sizes = [1, 64], strides = [1, 1]} : vector<16x64xbf16> to vector<1x64xbf16>
    %c6 = arith.constant 6 : index
    %c0_33 = arith.constant 0 : index
    %c0_34 = arith.constant 0 : index
    %59 = vector.load %arg6[%c6, %c0_33, %c0_34] : memref<16x64x6xbf16, #tpu.memory_space<vmem>>, vector<1x64x6xbf16>
    %60 = vector.shape_cast %59 : vector<1x64x6xbf16> to vector<64x6xbf16>
    %cst_35 = arith.constant dense<0.000000e+00> : vector<1x6xf32>
    %61 = tpu.matmul %58, %60, %cst_35 {dimension_numbers = #tpu.dot_dimension_numbers<[1], [0], [0], [1], [0, 0, 1, 1], [], []>} : vector<1x64xbf16>, vector<64x6xbf16>, vector<1x6xf32> -> vector<1x6xf32>
    %62 = arith.addf %57, %61 : vector<1x6xf32>
    %63 = vector.extract_strided_slice %26 {offsets = [7, 0], sizes = [1, 64], strides = [1, 1]} : vector<16x64xbf16> to vector<1x64xbf16>
    %c7 = arith.constant 7 : index
    %c0_36 = arith.constant 0 : index
    %c0_37 = arith.constant 0 : index
    %64 = vector.load %arg6[%c7, %c0_36, %c0_37] : memref<16x64x6xbf16, #tpu.memory_space<vmem>>, vector<1x64x6xbf16>
    %65 = vector.shape_cast %64 : vector<1x64x6xbf16> to vector<64x6xbf16>
    %cst_38 = arith.constant dense<0.000000e+00> : vector<1x6xf32>
    %66 = tpu.matmul %63, %65, %cst_38 {dimension_numbers = #tpu.dot_dimension_numbers<[1], [0], [0], [1], [0, 0, 1, 1], [], []>} : vector<1x64xbf16>, vector<64x6xbf16>, vector<1x6xf32> -> vector<1x6xf32>
    %67 = arith.addf %62, %66 : vector<1x6xf32>
    %68 = vector.extract_strided_slice %26 {offsets = [8, 0], sizes = [1, 64], strides = [1, 1]} : vector<16x64xbf16> to vector<1x64xbf16>
    %c8 = arith.constant 8 : index
    %c0_39 = arith.constant 0 : index
    %c0_40 = arith.constant 0 : index
    %69 = vector.load %arg6[%c8, %c0_39, %c0_40] : memref<16x64x6xbf16, #tpu.memory_space<vmem>>, vector<1x64x6xbf16>
    %70 = vector.shape_cast %69 : vector<1x64x6xbf16> to vector<64x6xbf16>
    %cst_41 = arith.constant dense<0.000000e+00> : vector<1x6xf32>
    %71 = tpu.matmul %68, %70, %cst_41 {dimension_numbers = #tpu.dot_dimension_numbers<[1], [0], [0], [1], [0, 0, 1, 1], [], []>} : vector<1x64xbf16>, vector<64x6xbf16>, vector<1x6xf32> -> vector<1x6xf32>
    %72 = arith.addf %67, %71 : vector<1x6xf32>
    %73 = vector.extract_strided_slice %26 {offsets = [9, 0], sizes = [1, 64], strides = [1, 1]} : vector<16x64xbf16> to vector<1x64xbf16>
    %c9 = arith.constant 9 : index
    %c0_42 = arith.constant 0 : index
    %c0_43 = arith.constant 0 : index
    %74 = vector.load %arg6[%c9, %c0_42, %c0_43] : memref<16x64x6xbf16, #tpu.memory_space<vmem>>, vector<1x64x6xbf16>
    %75 = vector.shape_cast %74 : vector<1x64x6xbf16> to vector<64x6xbf16>
    %cst_44 = arith.constant dense<0.000000e+00> : vector<1x6xf32>
    %76 = tpu.matmul %73, %75, %cst_44 {dimension_numbers = #tpu.dot_dimension_numbers<[1], [0], [0], [1], [0, 0, 1, 1], [], []>} : vector<1x64xbf16>, vector<64x6xbf16>, vector<1x6xf32> -> vector<1x6xf32>
    %77 = arith.addf %72, %76 : vector<1x6xf32>
    %78 = vector.extract_strided_slice %26 {offsets = [10, 0], sizes = [1, 64], strides = [1, 1]} : vector<16x64xbf16> to vector<1x64xbf16>
    %c10 = arith.constant 10 : index
    %c0_45 = arith.constant 0 : index
    %c0_46 = arith.constant 0 : index
    %79 = vector.load %arg6[%c10, %c0_45, %c0_46] : memref<16x64x6xbf16, #tpu.memory_space<vmem>>, vector<1x64x6xbf16>
    %80 = vector.shape_cast %79 : vector<1x64x6xbf16> to vector<64x6xbf16>
    %cst_47 = arith.constant dense<0.000000e+00> : vector<1x6xf32>
    %81 = tpu.matmul %78, %80, %cst_47 {dimension_numbers = #tpu.dot_dimension_numbers<[1], [0], [0], [1], [0, 0, 1, 1], [], []>} : vector<1x64xbf16>, vector<64x6xbf16>, vector<1x6xf32> -> vector<1x6xf32>
    %82 = arith.addf %77, %81 : vector<1x6xf32>
    %83 = vector.extract_strided_slice %26 {offsets = [11, 0], sizes = [1, 64], strides = [1, 1]} : vector<16x64xbf16> to vector<1x64xbf16>
    %c11 = arith.constant 11 : index
    %c0_48 = arith.constant 0 : index
    %c0_49 = arith.constant 0 : index
    %84 = vector.load %arg6[%c11, %c0_48, %c0_49] : memref<16x64x6xbf16, #tpu.memory_space<vmem>>, vector<1x64x6xbf16>
    %85 = vector.shape_cast %84 : vector<1x64x6xbf16> to vector<64x6xbf16>
    %cst_50 = arith.constant dense<0.000000e+00> : vector<1x6xf32>
    %86 = tpu.matmul %83, %85, %cst_50 {dimension_numbers = #tpu.dot_dimension_numbers<[1], [0], [0], [1], [0, 0, 1, 1], [], []>} : vector<1x64xbf16>, vector<64x6xbf16>, vector<1x6xf32> -> vector<1x6xf32>
    %87 = arith.addf %82, %86 : vector<1x6xf32>
    %88 = vector.extract_strided_slice %26 {offsets = [12, 0], sizes = [1, 64], strides = [1, 1]} : vector<16x64xbf16> to vector<1x64xbf16>
    %c12 = arith.constant 12 : index
    %c0_51 = arith.constant 0 : index
    %c0_52 = arith.constant 0 : index
    %89 = vector.load %arg6[%c12, %c0_51, %c0_52] : memref<16x64x6xbf16, #tpu.memory_space<vmem>>, vector<1x64x6xbf16>
    %90 = vector.shape_cast %89 : vector<1x64x6xbf16> to vector<64x6xbf16>
    %cst_53 = arith.constant dense<0.000000e+00> : vector<1x6xf32>
    %91 = tpu.matmul %88, %90, %cst_53 {dimension_numbers = #tpu.dot_dimension_numbers<[1], [0], [0], [1], [0, 0, 1, 1], [], []>} : vector<1x64xbf16>, vector<64x6xbf16>, vector<1x6xf32> -> vector<1x6xf32>
    %92 = arith.addf %87, %91 : vector<1x6xf32>
    %93 = vector.extract_strided_slice %26 {offsets = [13, 0], sizes = [1, 64], strides = [1, 1]} : vector<16x64xbf16> to vector<1x64xbf16>
    %c13 = arith.constant 13 : index
    %c0_54 = arith.constant 0 : index
    %c0_55 = arith.constant 0 : index
    %94 = vector.load %arg6[%c13, %c0_54, %c0_55] : memref<16x64x6xbf16, #tpu.memory_space<vmem>>, vector<1x64x6xbf16>
    %95 = vector.shape_cast %94 : vector<1x64x6xbf16> to vector<64x6xbf16>
    %cst_56 = arith.constant dense<0.000000e+00> : vector<1x6xf32>
    %96 = tpu.matmul %93, %95, %cst_56 {dimension_numbers = #tpu.dot_dimension_numbers<[1], [0], [0], [1], [0, 0, 1, 1], [], []>} : vector<1x64xbf16>, vector<64x6xbf16>, vector<1x6xf32> -> vector<1x6xf32>
    %97 = arith.addf %92, %96 : vector<1x6xf32>
    %98 = vector.extract_strided_slice %26 {offsets = [14, 0], sizes = [1, 64], strides = [1, 1]} : vector<16x64xbf16> to vector<1x64xbf16>
    %c14 = arith.constant 14 : index
    %c0_57 = arith.constant 0 : index
    %c0_58 = arith.constant 0 : index
    %99 = vector.load %arg6[%c14, %c0_57, %c0_58] : memref<16x64x6xbf16, #tpu.memory_space<vmem>>, vector<1x64x6xbf16>
    %100 = vector.shape_cast %99 : vector<1x64x6xbf16> to vector<64x6xbf16>
    %cst_59 = arith.constant dense<0.000000e+00> : vector<1x6xf32>
    %101 = tpu.matmul %98, %100, %cst_59 {dimension_numbers = #tpu.dot_dimension_numbers<[1], [0], [0], [1], [0, 0, 1, 1], [], []>} : vector<1x64xbf16>, vector<64x6xbf16>, vector<1x6xf32> -> vector<1x6xf32>
    %102 = arith.addf %97, %101 : vector<1x6xf32>
    %103 = vector.extract_strided_slice %26 {offsets = [15, 0], sizes = [1, 64], strides = [1, 1]} : vector<16x64xbf16> to vector<1x64xbf16>
    %c15 = arith.constant 15 : index
    %c0_60 = arith.constant 0 : index
    %c0_61 = arith.constant 0 : index
    %104 = vector.load %arg6[%c15, %c0_60, %c0_61] : memref<16x64x6xbf16, #tpu.memory_space<vmem>>, vector<1x64x6xbf16>
    %105 = vector.shape_cast %104 : vector<1x64x6xbf16> to vector<64x6xbf16>
    %cst_62 = arith.constant dense<0.000000e+00> : vector<1x6xf32>
    %106 = tpu.matmul %103, %105, %cst_62 {dimension_numbers = #tpu.dot_dimension_numbers<[1], [0], [0], [1], [0, 0, 1, 1], [], []>} : vector<1x64xbf16>, vector<64x6xbf16>, vector<1x6xf32> -> vector<1x6xf32>
    %107 = arith.addf %102, %106 : vector<1x6xf32>
    %c0_63 = arith.constant 0 : index
    %c0_64 = arith.constant 0 : index
    %108 = vector.load %arg7[%c0_63, %c0_64] : memref<1x6xf32, #tpu.memory_space<vmem>>, vector<1x6xf32>
    %109 = arith.addf %107, %108 : vector<1x6xf32>
    %cst_65 = arith.constant dense<0xFF800000> : vector<1xf32>
    %110 = vector.multi_reduction <maximumf>, %109, %cst_65 [1] : vector<1x6xf32> to vector<1xf32>
    %111 = vector.shape_cast %110 : vector<1xf32> to vector<1x1xf32>
    %112 = vector.broadcast %111 : vector<1x1xf32> to vector<1x6xf32>
    %113 = arith.subf %109, %112 : vector<1x6xf32>
    %114 = math.exp %113 : vector<1x6xf32>
    %cst_66 = arith.constant dense<0.000000e+00> : vector<1xf32>
    %115 = vector.multi_reduction <add>, %114, %cst_66 [1] : vector<1x6xf32> to vector<1xf32>
    %116 = vector.shape_cast %115 : vector<1xf32> to vector<1x1xf32>
    %117 = math.log %116 : vector<1x1xf32>
    %118 = arith.addf %117, %111 : vector<1x1xf32>
    %119 = vector.broadcast %118 : vector<1x1xf32> to vector<1x6xf32>
    %120 = arith.subf %109, %119 : vector<1x6xf32>
    %121 = vector.shape_cast %120 : vector<1x6xf32> to vector<1x1x6xf32>
    %c0_67 = arith.constant 0 : index
    %c0_68 = arith.constant 0 : index
    %c0_69 = arith.constant 0 : index
    %122 = vector.load %arg8[%c0_67, %c0_68, %c0_69] : memref<1x1x6xf32, #tpu.memory_space<vmem>>, vector<1x1x6xf32>
    tpu.vector_store %arg8[%c0_67, %c0_68, %c0_69], %121 {strides = array<i32>} : memref<1x1x6xf32, #tpu.memory_space<vmem>>, vector<1x1x6xf32>,
    return
  }
  func.func @transform_0(%arg0: i32) -> (i32, i32) {
    %c0_i32 = arith.constant 0 : i32
    %c0_i32_0 = arith.constant 0 : i32
    return %arg0, %c0_i32 : i32, i32
  }
  func.func @transform_1(%arg0: i32) -> (i32, i32) {
    %c0_i32 = arith.constant 0 : i32
    %c0_i32_0 = arith.constant 0 : i32
    %c0_i32_1 = arith.constant 0 : i32
    return %c0_i32, %c0_i32_0 : i32, i32
  }
  func.func @transform_2(%arg0: i32) -> (i32, i32) {
    %c0_i32 = arith.constant 0 : i32
    %c0_i32_0 = arith.constant 0 : i32
    %c0_i32_1 = arith.constant 0 : i32
    return %c0_i32, %c0_i32_0 : i32, i32
  }
  func.func @transform_3(%arg0: i32) -> (i32, i32) {
    %c0_i32 = arith.constant 0 : i32
    %c0_i32_0 = arith.constant 0 : i32
    %c0_i32_1 = arith.constant 0 : i32
    return %c0_i32, %c0_i32_0 : i32, i32
  }
  func.func @transform_4(%arg0: i32) -> (i32, i32) {
    %c0_i32 = arith.constant 0 : i32
    %c0_i32_0 = arith.constant 0 : i32
    %c0_i32_1 = arith.constant 0 : i32
    return %c0_i32, %c0_i32_0 : i32, i32
  }
  func.func @transform_5(%arg0: i32) -> (i32, i32, i32) {
    %c0_i32 = arith.constant 0 : i32
    %c0_i32_0 = arith.constant 0 : i32
    %c0_i32_1 = arith.constant 0 : i32
    %c0_i32_2 = arith.constant 0 : i32
    return %c0_i32, %c0_i32_0, %c0_i32_1 : i32, i32, i32
  }
  func.func @transform_6(%arg0: i32) -> (i32, i32) {
    %c0_i32 = arith.constant 0 : i32
    %c0_i32_0 = arith.constant 0 : i32
    %c0_i32_1 = arith.constant 0 : i32
    return %c0_i32, %c0_i32_0 : i32, i32
  }
  func.func @transform_7(%arg0: i32) -> (i32, i32, i32) {
    %c0_i32 = arith.constant 0 : i32
    %c0_i32_0 = arith.constant 0 : i32
    %c0_i32_1 = arith.constant 0 : i32
    return %arg0, %c0_i32, %c0_i32_0 : i32, i32, i32
  }
}

</mosaic_0001>

<bundles_post_ra>
// kernel: _lambda_.5
= control target key start
LH: loop header
LB: loop body
LE: loop exit
PB: predicated region body
PF: predicated region fallthrough
CT: control target
= control target key end

     0   :  { %s2360_s12 = smov 0   ;;  %s2999_s0 = inlined_call_operand.vmem [shape: bf16[2,17,17,4], index: 0, kind: input, shape index: {}]   ;;  %s3000_s1 = inlined_call_operand.vmem [shape: bf16[4,4,8], index: 1, kind: input, shape index: {}]   ;;  %s3001_s2 = inlined_call_operand.vmem [shape: f32[1,8], index: 2, kind: input, shape index: {}]   ;;  %s3002_s3 = inlined_call_operand.vmem [shape: bf16[512,8], index: 3, kind: output, shape index: {}]  }
   0x1 LB: > { %s2366_s13 = sadd.s32 4294967295, %s2338_s12   ;;  %p1926_p0 = scmp.ge.s32.totalorder %s2338_s12, 1  ;;  %s2338_s12 = sphi %s2360_s12, %s13_s12  }
   0x2   : > { %p137_p1 = scmp.lt.s32.totalorder %s2338_s12, 3 }
   0x4   : > { %p138_p2 = pnand %p1926_p0, %p137_p1 }
   0x6   : > { %141 = sbr.rel (%p138_p2) target bundleno = 371 (0x173), region = 32 }
   0xb   : > { %v224_v0 = vld [vmem:[%s3000_s1] sm:$0x3]  ;;  %vm711_vm0 = vcmask 1041408   ;;  %v1930_v1 = vld [vmem:[%s3000_s1 + $0x2] sm:$0x3]  ;;  %p161_p3 = scmp.lt.s32.totalorder %s2366_s13, 1 }
   0xc   : > { %2303 = vmatprep.subr.msk.bf16.mxu1 %vm711_vm0, %v224_v0  ;;  %v1005_v2 = vsel %vm711_vm0, %v224_v0, 0  ;;  %2302 = vmatprep.subr.msk.bf16.mxu0 %vm711_vm0, %v1930_v1  ;;  %v713_v3 = vsel %vm711_vm0, %v1930_v1, 0  ;;  %v1995_v4 = vld [vmem:[%s3000_s1 + $0x4] sm:$0x3]  ;;  %v2013_v5 = vld [vmem:[%s3000_s1 + $0x6] sm:$0x3] }
   0xd   : > { %2201 = vmatpush3.bf16.msra.mxu1 %v1005_v2  ;;  %s162_s18 = scalar_select %p161_p3, %s2366_s13, 1  ;;  %2167 = vmatpush3.bf16.msra.mxu0 %v713_v3  ;;  %vm662_vm1 = vcmask 31744   ;;  %vm225_vm2 = vsmask.f32 3328  ;;  %vm226_vm3 = vsmask.f32 7440 }
   0xe   : > { %2304 = vmatprep.subr.msk.bf16.mxu0 %vm711_vm0, %v1995_v4  ;;  %2305 = vmatprep.subr.msk.bf16.mxu1 %vm711_vm0, %v2013_v5  ;;  %v2396_v6 = vsel %vm711_vm0, %v1995_v4, 0  ;;  %v1407_v7 = vsel %vm711_vm0, %v2013_v5, 0  ;;  %vm2411_vm4 = vmor %vm225_vm2, %vm226_vm3  ;;  %s1928_s27 = sshll.u32 %s2366_s13, 5  ;;  %vm1833_vm5 = vcmask 60416  }
   0xf   : > { %s2306_s23 = smul.u32 204, %s162_s18  ;;  %p167_p4 = scmp.lt.s32.totalorder %s1928_s27, 63 }
  0x11   : > { %s2393_s26 = scalar_lea.vmem %s2999_s0, %s2306_s23  ;;  %s3046_s27 = smov (!%p167_p4, %s1928_s27), 63 }
  0x12   : > { %v173_v8 = vld [vmem:[%s2393_s26] sm:$0xf]  ;;  %v174_v9 = vld [vmem:[%s2393_s26 + $0x4] sm:$0xf]  ;;  %v176_v10 = vld [vmem:[%s2393_s26 + $0xc] sm:$0xf] }
  0x13   : > { %v229_v11 = vshrl.u32 %v173_v8, 16  ;;  %v232_v12 = vshll.u32 %v173_v8, 16  ;;  %v238_v13 = vshll.u32 %v174_v9, 16  ;;  %v242_v14 = vshrl.u32 %v174_v9, 16  ;;  %v177_v15 = vld [vmem:[%s2393_s26 + $0x10] sm:$0xf] }
  0x14   : > { %v1963_v16 = vcombine.low %v173_v8, %v174_v9  ;;  %v253_v17 = vshrl.u32 %v176_v10, 16  ;;  %v256_v18 = vshll.u32 %v176_v10, 16  ;;  %v262_v19 = vshll.u32 %v177_v15, 16  ;;  %v175_v20 = vld [vmem:[%s2393_s26 + $0x8] sm:$0x1]  ;;  %s1929_s30 = sshll.u32 %s3046_s27, 2 }
  0x15   : > { %v231_v21 = vrot.slane %v229_v11, 4  ;;  %v234_v22 = vrot.slane %v232_v12, 5  ;;  %v240_v23 = vrot.slane %v238_v13, 5  ;;  %v244_v24 = vrot.slane %v242_v14, 4  ;;  %v178_v25 = vld [vmem:[%s2393_s26 + $0x14] sm:$0x1]  ;;  %s2851_s6 = scalar_lea.vmem %s3002_s3, %s1929_s30 }
  0x16   : > { %2202 = vmatprep.mubr.msk.bf16.mxu1 %vm662_vm1, %v1963_v16  ;;  %v255_v26 = vrot.slane %v253_v17, 4  ;;  %v258_v27 = vrot.slane %v256_v18, 5  ;;  %v264_v28 = vrot.slane %v262_v19, 5  ;;  %v266_v29 = vshrl.u32 %v177_v15, 16  ;;  %v179_v30 = vld [vmem:[%s2393_s26 + $0x18] sm:$0xf] }
  0x17   : > { %v2407_v31 = vcombine.low %v176_v10, %v177_v15  ;;  %v235_v32 = vor.u32 %v234_v22, %v231_v21  ;;  %v245_v33 = vor.u32 %v244_v24, %v240_v23  ;;  %v248_v34 = vshll.u32 %v175_v20, 16  ;;  %v180_v39 = vld [vmem:[%s2393_s26 + $0x1c] sm:$0xf]  ;;  %v182_v49 = vld [vmem:[%s2393_s26 + $0x24] sm:$0xf] }
  0x18   : > { %v268_v35 = vrot.slane %v266_v29, 4  ;;  %v259_v37 = vor.u32 %v258_v27, %v255_v26  ;;  %v272_v38 = vshll.u32 %v178_v25, 16  ;;  %v277_v40 = vshrl.u32 %v179_v30, 16  ;;  %v183_v54 = vld [vmem:[%s2393_s26 + $0x28] sm:$0xf] }
  0x19   : > { %2203 = vmatmul.mubr.msk.bf16.vlgmr.msra.gmra.mxu1 %vm662_vm1, %v2407_v31  ;;  %v236_v41 = vrot.slane %v235_v32, 4  ;;  %v246_v42 = vrot.slane %v245_v33, 4  ;;  %v250_v43 = vrot.slane %v248_v34, 5  ;;  %v280_v44 = vshll.u32 %v179_v30, 16  ;;  %v181_v59 = vld [vmem:[%s2393_s26 + $0x20] sm:$0x1] }
  0x1a   : > { %v260_v45 = vrot.slane %v259_v37, 4  ;;  %v269_v46 = vor.u32 %v268_v35, %v264_v28  ;;  %v274_v47 = vrot.slane %v272_v38, 5  ;;  %2269 = vmatpush3.bf16.msra.mxu1 %v1407_v7  ;;  %v279_v48 = vrot.slane %v277_v40, 4  ;;  %v184_v0 = vld [vmem:[%s2393_s26 + $0x2c] sm:$0x1] }
  0x1b   : > { %v241_v50 = vsel %vm2411_vm4, %v236_v41, %v240_v23  ;;  %v251_v51 = vsel %vm2411_vm4, %v246_v42, %v250_v43  ;;  %v282_v52 = vrot.slane %v280_v44, 5  ;;  %v286_v53 = vshll.u32 %v180_v39, 16  ;;  %v185_v5 = vld [vmem:[%s2393_s26 + $0x30] sm:$0xf]  ;;  %v186_v18 = vld [vmem:[%s2393_s26 + $0x34] sm:$0xf] }
  0x1c   : > { %v1931_v55 = vcombine.low %v241_v50, %v251_v51  ;;  %v265_v56 = vsel %vm2411_vm4, %v260_v45, %v264_v28  ;;  %v270_v57 = vrot.slane %v269_v46, 4  ;;  %v290_v58 = vshrl.u32 %v180_v39, 16  ;;  %v188_v28 = vld [vmem:[%s2393_s26 + $0x3c] sm:$0xf]  ;;  %v189_v34 = vld [vmem:[%s2393_s26 + $0x40] sm:$0xf] }
  0x1d   : > { %v288_v60 = vrot.slane %v286_v53, 5  ;;  %v2427_v61 = vcombine.low %v179_v30, %v180_v39  ;;  %v301_v62 = vshrl.u32 %v182_v49, 16  ;;  %v304_v63 = vshll.u32 %v182_v49, 16  ;;  %v187_v43 = vld [vmem:[%s2393_s26 + $0x38] sm:$0x1] }
  0x1e   : > { %2168 = vmatprep.mubr.msk.bf16.mxu0 %vm662_vm1, %v1931_v55  ;;  %v275_v1 = vsel %vm2411_vm4, %v270_v57, %v274_v47  ;;  %v292_v2 = vrot.slane %v290_v58, 4  ;;  %v310_v3 = vshll.u32 %v183_v54, 16  ;;  %v314_v4 = vshrl.u32 %v183_v54, 16  ;;  %v190_v44 = vld [vmem:[%s2393_s26 + $0x44] sm:$0x1] }
  0x1f   : > { %v2434_v7 = vcombine.low %v265_v56, %v275_v1  ;;  %2206 = vmatprep.mubr.msk.bf16.mxu1 %vm662_vm1, %v2427_v61  ;;  %v303_v8 = vrot.slane %v301_v62, 4  ;;  %v306_v9 = vrot.slane %v304_v63, 5  ;;  %v2438_v10 = vcombine.low %v182_v49, %v183_v54  ;;  %v191_v49 = vld [vmem:[%s2393_s26 + $0x48] sm:$0xf]  ;;  %v192_v62 = vld [vmem:[%s2393_s26 + $0x4c] sm:$0xf] }
  0x20   : > { %v312_v11 = vrot.slane %v310_v3, 5  ;;  %v316_v12 = vrot.slane %v314_v4, 4  ;;  %v283_v13 = vor.u32 %v282_v52, %v279_v48  ;;  %v293_v14 = vor.u32 %v292_v2, %v288_v60 }
  0x21   : > { %2169 = vmatmul.mubr.msk.bf16.vlgmr.msra.gmra.mxu0 %vm662_vm1, %v2434_v7  ;;  %2207 = vmatmul.mubr.msk.bf16.gmra.mxu1 %vm662_vm1, %v2438_v10  ;;  %v296_v15 = vshll.u32 %v181_v59, 16  ;;  %v307_v16 = vor.u32 %v306_v9, %v303_v8  ;;  %v320_v17 = vshll.u32 %v184_v0, 16  ;;  %v325_v19 = vshrl.u32 %v185_v5, 16 }
  0x22   : > { %2235 = vmatpush3.bf16.msra.mxu0 %v2396_v6  ;;  %v284_v20 = vrot.slane %v283_v13, 4  ;;  %v294_v21 = vrot.slane %v293_v14, 4  ;;  %v317_v22 = vor.u32 %v316_v12, %v312_v11  ;;  %v328_v23 = vshll.u32 %v185_v5, 16 }
  0x23   : > { %v298_v24 = vrot.slane %v296_v15, 5  ;;  %v308_v25 = vrot.slane %v307_v16, 4  ;;  %v322_v26 = vrot.slane %v320_v17, 5  ;;  %v327_v27 = vrot.slane %v325_v19, 4  ;;  %v195_v16 = vld [vmem:[%s2393_s26 + $0x58] sm:$0xf] }
  0x24   : > { %v289_v29 = vsel %vm2411_vm4, %v284_v20, %v288_v60  ;;  %v318_v30 = vrot.slane %v317_v22, 4  ;;  %v330_v32 = vrot.slane %v328_v23, 5  ;;  %v334_v33 = vshll.u32 %v186_v18, 16 }
  0x25   : > { %v299_v6 = vsel %vm2411_vm4, %v294_v21, %v298_v24  ;;  %v313_v35 = vsel %vm2411_vm4, %v308_v25, %v312_v11  ;;  %v338_v37 = vshrl.u32 %v186_v18, 16  ;;  %v2454_v38 = vcombine.low %v185_v5, %v186_v18  ;;  %v194_v11 = vld [vmem:[%s2393_s26 + $0x54] sm:$0xf]  ;;  %v193_v21 = vld [vmem:[%s2393_s26 + $0x50] sm:$0x1] }
  0x26   : > { %v2456_v39 = vcombine.low %v289_v29, %v299_v6  ;;  %v323_v40 = vsel %vm2411_vm4, %v318_v30, %v322_v26  ;;  %v336_v41 = vrot.slane %v334_v33, 5  ;;  %v349_v42 = vshrl.u32 %v188_v28, 16  ;;  %v196_v26 = vld [vmem:[%s2393_s26 + $0x5c] sm:$0x1] }
  0x27   : > { %v2462_v45 = vcombine.low %v313_v35, %v323_v40  ;;  %v340_v46 = vrot.slane %v338_v37, 4  ;;  %2210 = vmatprep.mubr.msk.bf16.mxu1 %vm662_vm1, %v2454_v38  ;;  %v352_v47 = vshll.u32 %v188_v28, 16  ;;  %v358_v48 = vshll.u32 %v189_v34, 16 }
  0x28   : > { %2172 = vmatprep.mubr.msk.bf16.mxu0 %vm662_vm1, %v2456_v39  ;;  %v351_v50 = vrot.slane %v349_v42, 4  ;;  %v362_v51 = vshrl.u32 %v189_v34, 16  ;;  %v2469_v52 = vcombine.low %v188_v28, %v189_v34  ;;  %v331_v53 = vor.u32 %v330_v32, %v327_v27  ;;  %v197_v32 = vld [vmem:[%s2393_s26 + $0x60] sm:$0xf] }
  0x29   : > { %2173 = vmatmul.mubr.msk.bf16.gmra.mxu0 %vm662_vm1, %v2462_v45  ;;  %v354_v54 = vrot.slane %v352_v47, 5  ;;  %v360_v55 = vrot.slane %v358_v48, 5  ;;  %v341_v56 = vor.u32 %v340_v46, %v336_v41  ;;  %v344_v57 = vshll.u32 %v187_v43, 16  ;;  %v198_v47 = vld [vmem:[%s2393_s26 + $0x64] sm:$0xf] }
  0x2a   : > { %v364_v58 = vrot.slane %v362_v51, 4  ;;  %2211 = vmatmul.mubr.msk.bf16.gmra.mxu1 %vm662_vm1, %v2469_v52  ;;  %v332_v59 = vrot.slane %v331_v53, 4  ;;  %v368_v60 = vshll.u32 %v190_v44, 16  ;;  %v373_v63 = vshrl.u32 %v191_v49, 16 }
  0x2b   : > { %v342_v0 = vrot.slane %v341_v56, 4  ;;  %v346_v1 = vrot.slane %v344_v57, 5  ;;  %v355_v2 = vor.u32 %v354_v54, %v351_v50  ;;  %v376_v3 = vshll.u32 %v191_v49, 16 }
  0x2c   : > { %v337_v4 = vsel %vm2411_vm4, %v332_v59, %v336_v41  ;;  %v365_v5 = vor.u32 %v364_v58, %v360_v55  ;;  %v370_v8 = vrot.slane %v368_v60, 5  ;;  %v375_v9 = vrot.slane %v373_v63, 4  ;;  %v200_v58 = vld [vmem:[%s2393_s26 + $0x6c] sm:$0xf] }
  0x2d   : > { %v347_v12 = vsel %vm2411_vm4, %v342_v0, %v346_v1  ;;  %v356_v13 = vrot.slane %v355_v2, 4  ;;  %v378_v14 = vrot.slane %v376_v3, 5  ;;  %v382_v15 = vshll.u32 %v192_v62, 16  ;;  %v201_v0 = vld [vmem:[%s2393_s26 + $0x70] sm:$0xf] }
  0x2e   : > { %v2482_v17 = vcombine.low %v337_v4, %v347_v12  ;;  %v366_v18 = vrot.slane %v365_v5, 4  ;;  %v386_v19 = vshrl.u32 %v192_v62, 16  ;;  %v2484_v20 = vcombine.low %v191_v49, %v192_v62  ;;  %v199_v12 = vld [vmem:[%s2393_s26 + $0x68] sm:$0x1] }
  0x2f   : > { %v361_v22 = vsel %vm2411_vm4, %v356_v13, %v360_v55  ;;  %v384_v23 = vrot.slane %v382_v15, 5  ;;  %v397_v24 = vshrl.u32 %v194_v11, 16  ;;  %v400_v25 = vshll.u32 %v194_v11, 16  ;;  %v202_v13 = vld [vmem:[%s2393_s26 + $0x74] sm:$0x1] }
  0x30   : > { %2176 = vmatprep.mubr.msk.bf16.mxu0 %vm662_vm1, %v2482_v17  ;;  %v371_v27 = vsel %vm2411_vm4, %v366_v18, %v370_v8  ;;  %v388_v28 = vrot.slane %v386_v19, 4  ;;  %2214 = vmatprep.mubr.msk.bf16.mxu1 %vm662_vm1, %v2484_v20  ;;  %v406_v29 = vshll.u32 %v195_v16, 16  ;;  %v410_v30 = vshrl.u32 %v195_v16, 16  ;;  %v203_v19 = vld [vmem:[%s2393_s26 + $0x78] sm:$0xf] }
  0x31   : > { %v2497_v33 = vcombine.low %v361_v22, %v371_v27  ;;  %v399_v34 = vrot.slane %v397_v24, 4  ;;  %v402_v6 = vrot.slane %v400_v25, 5  ;;  %v2499_v35 = vcombine.low %v194_v11, %v195_v16 }
  0x32   : > { %v408_v37 = vrot.slane %v406_v29, 5  ;;  %v412_v40 = vrot.slane %v410_v30, 4  ;;  %v379_v41 = vor.u32 %v378_v14, %v375_v9  ;;  %v389_v42 = vor.u32 %v388_v28, %v384_v23 }
  0x33   : > { %2177 = vmatmul.mubr.msk.bf16.gmra.mxu0 %vm662_vm1, %v2497_v33  ;;  %2215 = vmatmul.mubr.msk.bf16.gmra.mxu1 %vm662_vm1, %v2499_v35  ;;  %v392_v43 = vshll.u32 %v193_v21, 16  ;;  %v403_v44 = vor.u32 %v402_v6, %v399_v34  ;;  %v416_v46 = vshll.u32 %v196_v26, 16  ;;  %v421_v48 = vshrl.u32 %v197_v32, 16  ;;  %v204_v34 = vld [vmem:[%s2393_s26 + $0x7c] sm:$0xf] }
  0x34   : > { %v380_v49 = vrot.slane %v379_v41, 4  ;;  %v390_v50 = vrot.slane %v389_v42, 4  ;;  %v413_v51 = vor.u32 %v412_v40, %v408_v37  ;;  %v424_v53 = vshll.u32 %v197_v32, 16 }
  0x35   : > { %v394_v54 = vrot.slane %v392_v43, 5  ;;  %v404_v55 = vrot.slane %v403_v44, 4  ;;  %v418_v56 = vrot.slane %v416_v46, 5  ;;  %v423_v57 = vrot.slane %v421_v48, 4  ;;  %v206_v48 = vld [vmem:[%s2393_s26 + $0x84] sm:$0xf] }
  0x36   : > { %v385_v59 = vsel %vm2411_vm4, %v380_v49, %v384_v23  ;;  %v414_v60 = vrot.slane %v413_v51, 4  ;;  %v426_v62 = vrot.slane %v424_v53, 5  ;;  %v430_v63 = vshll.u32 %v198_v47, 16 }
  0x37   : > { %v395_v1 = vsel %vm2411_vm4, %v390_v50, %v394_v54  ;;  %v409_v2 = vsel %vm2411_vm4, %v404_v55, %v408_v37  ;;  %v434_v3 = vshrl.u32 %v198_v47, 16  ;;  %v2514_v4 = vcombine.low %v197_v32, %v198_v47  ;;  %v207_v54 = vld [vmem:[%s2393_s26 + $0x88] sm:$0xf] }
  0x38   : > { %v2516_v5 = vcombine.low %v385_v59, %v395_v1  ;;  %v419_v8 = vsel %vm2411_vm4, %v414_v60, %v418_v56  ;;  %v432_v9 = vrot.slane %v430_v63, 5  ;;  %v445_v11 = vshrl.u32 %v200_v58, 16  ;;  %v205_v59 = vld [vmem:[%s2393_s26 + $0x80] sm:$0x1]  ;;  %v208_v1 = vld [vmem:[%s2393_s26 + $0x8c] sm:$0x1] }
  0x39   : > { %v2522_v14 = vcombine.low %v409_v2, %v419_v8  ;;  %v436_v15 = vrot.slane %v434_v3, 4  ;;  %2218 = vmatprep.mubr.msk.bf16.mxu1 %vm662_vm1, %v2514_v4  ;;  %v448_v16 = vshll.u32 %v200_v58, 16  ;;  %v454_v18 = vshll.u32 %v201_v0, 16 }
  0x3a   : > { %2180 = vmatprep.mubr.msk.bf16.mxu0 %vm662_vm1, %v2516_v5  ;;  %v447_v21 = vrot.slane %v445_v11, 4  ;;  %v458_v22 = vshrl.u32 %v201_v0, 16  ;;  %v2529_v23 = vcombine.low %v200_v58, %v201_v0  ;;  %v427_v24 = vor.u32 %v426_v62, %v423_v57  ;;  %v209_v11 = vld [vmem:[%s2393_s26 + $0x90] sm:$0xf] }
  0x3b   : > { %2181 = vmatmul.mubr.msk.bf16.gmra.mxu0 %vm662_vm1, %v2522_v14  ;;  %v450_v25 = vrot.slane %v448_v16, 5  ;;  %v456_v26 = vrot.slane %v454_v18, 5  ;;  %v437_v27 = vor.u32 %v436_v15, %v432_v9  ;;  %v440_v28 = vshll.u32 %v199_v12, 16 }
  0x3c   : > { %v460_v29 = vrot.slane %v458_v22, 4  ;;  %2219 = vmatmul.mubr.msk.bf16.gmra.mxu1 %vm662_vm1, %v2529_v23  ;;  %v428_v30 = vrot.slane %v427_v24, 4  ;;  %v464_v32 = vshll.u32 %v202_v13, 16  ;;  %v469_v6 = vshrl.u32 %v203_v19, 16 }
  0x3d   : > { %v438_v37 = vrot.slane %v437_v27, 4  ;;  %v442_v40 = vrot.slane %v440_v28, 5  ;;  %v451_v41 = vor.u32 %v450_v25, %v447_v21  ;;  %v472_v42 = vshll.u32 %v203_v19, 16  ;;  %v210_v27 = vld [vmem:[%s2393_s26 + $0x94] sm:$0xf] }
  0x3e   : > { %v433_v43 = vsel %vm2411_vm4, %v428_v30, %v432_v9  ;;  %v461_v44 = vor.u32 %v460_v29, %v456_v26  ;;  %v466_v46 = vrot.slane %v464_v32, 5  ;;  %v471_v47 = vrot.slane %v469_v6, 4 }
  0x3f   : > { %v443_v49 = vsel %vm2411_vm4, %v438_v37, %v442_v40  ;;  %v452_v50 = vrot.slane %v451_v41, 4  ;;  %v474_v51 = vrot.slane %v472_v42, 5  ;;  %v478_v53 = vshll.u32 %v204_v34, 16  ;;  %v212_v42 = vld [vmem:[%s2393_s26 + $0x9c] sm:$0xf] }
  0x40   : > { %v2542_v55 = vcombine.low %v433_v43, %v443_v49  ;;  %v462_v56 = vrot.slane %v461_v44, 4  ;;  %v482_v57 = vshrl.u32 %v204_v34, 16  ;;  %v2544_v58 = vcombine.low %v203_v19, %v204_v34 }
  0x41   : > { %v457_v60 = vsel %vm2411_vm4, %v452_v50, %v456_v26  ;;  %v480_v62 = vrot.slane %v478_v53, 5  ;;  %v493_v63 = vshrl.u32 %v206_v48, 16  ;;  %v496_v0 = vshll.u32 %v206_v48, 16 }
  0x42   : > { %2184 = vmatprep.mubr.msk.bf16.mxu0 %vm662_vm1, %v2542_v55  ;;  %v467_v2 = vsel %vm2411_vm4, %v462_v56, %v466_v46  ;;  %v484_v3 = vrot.slane %v482_v57, 4  ;;  %2222 = vmatprep.mubr.msk.bf16.mxu1 %vm662_vm1, %v2544_v58  ;;  %v502_v8 = vshll.u32 %v207_v54, 16  ;;  %v506_v9 = vshrl.u32 %v207_v54, 16 }
  0x43   : > { %v2557_v12 = vcombine.low %v457_v60, %v467_v2  ;;  %v495_v13 = vrot.slane %v493_v63, 4  ;;  %v498_v15 = vrot.slane %v496_v0, 5  ;;  %v2559_v16 = vcombine.low %v206_v48, %v207_v54  ;;  %v213_v48 = vld [vmem:[%s2393_s26 + $0xa0] sm:$0xf]  ;;  %v211_v60 = vld [vmem:[%s2393_s26 + $0x98] sm:$0x1] }
  0x44   : > { %v504_v18 = vrot.slane %v502_v8, 5  ;;  %v508_v19 = vrot.slane %v506_v9, 4  ;;  %v475_v21 = vor.u32 %v474_v51, %v471_v47  ;;  %v485_v22 = vor.u32 %v484_v3, %v480_v62  ;;  %v215_v3 = vld [vmem:[%s2393_s26 + $0xa8] sm:$0xf] }
  0x45   : > { %2185 = vmatmul.mubr.msk.bf16.gmra.mxu0 %vm662_vm1, %v2557_v12  ;;  %2223 = vmatmul.mubr.msk.bf16.gmra.mxu1 %vm662_vm1, %v2559_v16  ;;  %v488_v24 = vshll.u32 %v205_v59, 16  ;;  %v499_v25 = vor.u32 %v498_v15, %v495_v13  ;;  %v512_v26 = vshll.u32 %v208_v1, 16  ;;  %v517_v28 = vshrl.u32 %v209_v11, 16 }
  0x46   : > { %v476_v29 = vrot.slane %v475_v21, 4  ;;  %v486_v30 = vrot.slane %v485_v22, 4  ;;  %v509_v32 = vor.u32 %v508_v19, %v504_v18  ;;  %v520_v34 = vshll.u32 %v209_v11, 16 }
  0x47   : > { %v490_v6 = vrot.slane %v488_v24, 5  ;;  %v500_v37 = vrot.slane %v499_v25, 4  ;;  %v514_v40 = vrot.slane %v512_v26, 5  ;;  %v519_v41 = vrot.slane %v517_v28, 4  ;;  %v216_v26 = vld [vmem:[%s2393_s26 + $0xac] sm:$0xf] }
  0x48   : > { %v481_v43 = vsel %vm2411_vm4, %v476_v29, %v480_v62  ;;  %v510_v44 = vrot.slane %v509_v32, 4  ;;  %v522_v46 = vrot.slane %v520_v34, 5  ;;  %v526_v47 = vshll.u32 %v210_v27, 16  ;;  %v214_v62 = vld [vmem:[%s2393_s26 + $0xa4] sm:$0x1] }
  0x49   : > { %v491_v49 = vsel %vm2411_vm4, %v486_v30, %v490_v6  ;;  %v505_v50 = vsel %vm2411_vm4, %v500_v37, %v504_v18  ;;  %v530_v51 = vshrl.u32 %v210_v27, 16  ;;  %v2574_v53 = vcombine.low %v209_v11, %v210_v27 }
  0x4a   : > { %v2576_v54 = vcombine.low %v481_v43, %v491_v49  ;;  %v515_v56 = vsel %vm2411_vm4, %v510_v44, %v514_v40  ;;  %v528_v57 = vrot.slane %v526_v47, 5  ;;  %v541_v59 = vshrl.u32 %v212_v42, 16  ;;  %v219_v47 = vld [vmem:[%s2393_s26 + $0xb8] sm:$0xf] }
  0x4b   : > { %v2582_v63 = vcombine.low %v505_v50, %v515_v56  ;;  %v532_v0 = vrot.slane %v530_v51, 4  ;;  %2226 = vmatprep.mubr.msk.bf16.mxu1 %vm662_vm1, %v2574_v53  ;;  %v544_v1 = vshll.u32 %v212_v42, 16  ;;  %v550_v2 = vshll.u32 %v213_v48, 16 }
  0x4c   : > { %2188 = vmatprep.mubr.msk.bf16.mxu0 %vm662_vm1, %v2576_v54  ;;  %v543_v8 = vrot.slane %v541_v59, 4  ;;  %v554_v9 = vshrl.u32 %v213_v48, 16  ;;  %v2589_v11 = vcombine.low %v212_v42, %v213_v48  ;;  %v523_v13 = vor.u32 %v522_v46, %v519_v41  ;;  %v218_v41 = vld [vmem:[%s2393_s26 + $0xb4] sm:$0xf] }
  0x4d   : > { %2189 = vmatmul.mubr.msk.bf16.gmra.mxu0 %vm662_vm1, %v2582_v63  ;;  %v546_v15 = vrot.slane %v544_v1, 5  ;;  %v552_v18 = vrot.slane %v550_v2, 5  ;;  %v533_v19 = vor.u32 %v532_v0, %v528_v57  ;;  %v536_v21 = vshll.u32 %v211_v60, 16 }
  0x4e   : > { %v556_v22 = vrot.slane %v554_v9, 4  ;;  %2227 = vmatmul.mubr.msk.bf16.gmra.mxu1 %vm662_vm1, %v2589_v11  ;;  %v524_v24 = vrot.slane %v523_v13, 4  ;;  %v560_v25 = vshll.u32 %v214_v62, 16  ;;  %v565_v27 = vshrl.u32 %v215_v3, 16  ;;  %v217_v62 = vld [vmem:[%s2393_s26 + $0xb0] sm:$0x1] }
  0x4f   : > { %v534_v28 = vrot.slane %v533_v19, 4  ;;  %v538_v29 = vrot.slane %v536_v21, 5  ;;  %v547_v30 = vor.u32 %v546_v15, %v543_v8  ;;  %v568_v32 = vshll.u32 %v215_v3, 16  ;;  %v220_v8 = vld [vmem:[%s2393_s26 + $0xbc] sm:$0x1] }
  0x50   : > { %v529_v34 = vsel %vm2411_vm4, %v524_v24, %v528_v57  ;;  %v557_v6 = vor.u32 %v556_v22, %v552_v18  ;;  %v562_v37 = vrot.slane %v560_v25, 5  ;;  %v567_v40 = vrot.slane %v565_v27, 4 }
  0x51   : > { %v539_v42 = vsel %vm2411_vm4, %v534_v28, %v538_v29  ;;  %v548_v43 = vrot.slane %v547_v30, 4  ;;  %v570_v44 = vrot.slane %v568_v32, 5  ;;  %v574_v46 = vshll.u32 %v216_v26, 16 }
  0x52   : > { %v2602_v48 = vcombine.low %v529_v34, %v539_v42  ;;  %v558_v49 = vrot.slane %v557_v6, 4  ;;  %v578_v50 = vshrl.u32 %v216_v26, 16  ;;  %v2604_v51 = vcombine.low %v215_v3, %v216_v26 }
  0x53   : > { %v553_v56 = vsel %vm2411_vm4, %v548_v43, %v552_v18  ;;  %v576_v57 = vrot.slane %v574_v46, 5  ;;  %v589_v59 = vshrl.u32 %v218_v41, 16  ;;  %v592_v60 = vshll.u32 %v218_v41, 16 }
  0x54   : > { %2192 = vmatprep.mubr.msk.bf16.mxu0 %vm662_vm1, %v2602_v48  ;;  %v563_v0 = vsel %vm2411_vm4, %v558_v49, %v562_v37  ;;  %v580_v1 = vrot.slane %v578_v50, 4  ;;  %2230 = vmatprep.mubr.msk.bf16.mxu1 %vm662_vm1, %v2604_v51  ;;  %v598_v2 = vshll.u32 %v219_v47, 16  ;;  %v602_v3 = vshrl.u32 %v219_v47, 16 }
  0x55   : > { %v1944_v9 = vcombine.low %v553_v56, %v563_v0  ;;  %v591_v13 = vrot.slane %v589_v59, 4  ;;  %v594_v15 = vrot.slane %v592_v60, 5  ;;  %v2616_v18 = vcombine.low %v218_v41, %v219_v47 }
  0x56   : > { %v600_v19 = vrot.slane %v598_v2, 5  ;;  %v604_v21 = vrot.slane %v602_v3, 4  ;;  %v571_v22 = vor.u32 %v570_v44, %v567_v40  ;;  %v581_v24 = vor.u32 %v580_v1, %v576_v57 }
  0x57   : > { %2193 = vmatmul.mubr.msk.bf16.gmra.mxu0 %vm662_vm1, %v1944_v9  ;;  %2231 = vmatmul.mubr.msk.bf16.gmra.mxu1 %vm662_vm1, %v2616_v18  ;;  %v584_v25 = vshll.u32 %v217_v62, 16  ;;  %v595_v26 = vor.u32 %v594_v15, %v591_v13  ;;  %v608_v27 = vshll.u32 %v220_v8, 16 }
  0x58   : > { %v572_v28 = vrot.slane %v571_v22, 4  ;;  %v582_v29 = vrot.slane %v581_v24, 4  ;;  %v605_v30 = vor.u32 %v604_v21, %v600_v19  ;;  %2270 = vmatprep.mubr.msk.bf16.mxu1 %vm662_vm1, %v2434_v7 }
  0x59   : > { %v586_v32 = vrot.slane %v584_v25, 5  ;;  %v596_v34 = vrot.slane %v595_v26, 4  ;;  %v610_v6 = vrot.slane %v608_v27, 5 }
  0x5a   : > { %v577_v37 = vsel %vm2411_vm4, %v572_v28, %v576_v57  ;;  %v606_v40 = vrot.slane %v605_v30, 4 }
  0x5b   : > { %v587_v41 = vsel %vm2411_vm4, %v582_v29, %v586_v32  ;;  %v601_v42 = vsel %vm2411_vm4, %v596_v34, %v600_v19 }
  0x5c   : > { %v1945_v43 = vcombine.low %v577_v37, %v587_v41  ;;  %v611_v44 = vsel %vm2411_vm4, %v606_v40, %v610_v6 }
  0x5d   : > { %v1946_v46 = vcombine.low %v601_v42, %v611_v44 }
  0x5e   : > { %2196 = vmatprep.mubr.msk.bf16.mxu0 %vm662_vm1, %v1945_v43 }
  0x5f   : > { %2197 = vmatmul.mubr.msk.bf16.gmra.mxu0 %vm662_vm1, %v1946_v46  ;;  %2271 = vmatmul.mubr.msk.bf16.vlgmr.msra.gmra.mxu1 %vm662_vm1, %v2456_v39 }
  0x60   : > { %2236 = vmatprep.mubr.msk.bf16.mxu0 %vm662_vm1, %v2407_v31  ;;  %2274 = vmatprep.mubr.msk.bf16.mxu1 %vm662_vm1, %v2462_v45  ;;  %v221_v31 = vld [vmem:[%s2393_s26 + $0xc0] sm:$0xf] }
  0x61   : > { %v1375_v7 = vshrl.u32 %v221_v31, 16 }
  0x63   : > { %v1377_v45 = vrot.slane %v1375_v7, 4 }
  0x67   : > { %2237 = vmatmul.mubr.msk.bf16.vlgmr.msra.gmra.mxu0 %vm662_vm1, %v2427_v61  ;;  %2275 = vmatmul.mubr.msk.bf16.gmra.mxu1 %vm662_vm1, %v2482_v17  ;;  %v222_v61 = vld [vmem:[%s2393_s26 + $0xc4] sm:$0xf] }
  0x68   : > { %2240 = vmatprep.mubr.msk.bf16.mxu0 %vm662_vm1, %v2438_v10  ;;  %2278 = vmatprep.mubr.msk.bf16.mxu1 %vm662_vm1, %v2497_v33  ;;  %v1378_v10 = vshll.u32 %v221_v31, 16  ;;  %v1388_v39 = vshrl.u32 %v222_v61, 16  ;;  %v223_v33 = vld [vmem:[%s2393_s26 + $0xc8] sm:$0x1] }
  0x6f   : > { %2241 = vmatmul.mubr.msk.bf16.gmra.mxu0 %vm662_vm1, %v2454_v38  ;;  %2279 = vmatmul.mubr.msk.bf16.gmra.mxu1 %vm662_vm1, %v2516_v5  ;;  %v1384_v38 = vshll.u32 %v222_v61, 16  ;;  %v1394_v5 = vshll.u32 %v223_v33, 16 }
  0x70   : > { %2244 = vmatprep.mubr.msk.bf16.mxu0 %vm662_vm1, %v2469_v52  ;;  %2282 = vmatprep.mubr.msk.bf16.mxu1 %vm662_vm1, %v2522_v14  ;;  %v1380_v52 = vrot.slane %v1378_v10, 5 }
  0x71   : > { %v1386_v17 = vrot.slane %v1384_v38, 5 }
  0x77   : > { %2245 = vmatmul.mubr.msk.bf16.gmra.mxu0 %vm662_vm1, %v2484_v20  ;;  %2283 = vmatmul.mubr.msk.bf16.gmra.mxu1 %vm662_vm1, %v2542_v55  ;;  %v1390_v20 = vrot.slane %v1388_v39, 4  ;;  %v1396_v55 = vrot.slane %v1394_v5, 5 }
  0x78   : > { %2248 = vmatprep.mubr.msk.bf16.mxu0 %vm662_vm1, %v2499_v35  ;;  %2286 = vmatprep.mubr.msk.bf16.mxu1 %vm662_vm1, %v2557_v12  ;;  %v1381_v35 = vor.u32 %v1380_v52, %v1377_v45 }
  0x7a   : > { %v1382_v14 = vrot.slane %v1381_v35, 4 }
  0x7f   : > { %2249 = vmatmul.mubr.msk.bf16.gmra.mxu0 %vm662_vm1, %v2514_v4  ;;  %2287 = vmatmul.mubr.msk.bf16.gmra.mxu1 %vm662_vm1, %v2576_v54  ;;  %v1391_v4 = vor.u32 %v1390_v20, %v1386_v17 }
  0x80   : > { %2252 = vmatprep.mubr.msk.bf16.mxu0 %vm662_vm1, %v2529_v23  ;;  %2290 = vmatprep.mubr.msk.bf16.mxu1 %vm662_vm1, %v2582_v63 }
  0x81   : > { %v1392_v23 = vrot.slane %v1391_v4, 4 }
  0x83   : > { %v1397_v12 = vsel %vm2411_vm4, %v1392_v23, %v1396_v55 }
  0x87   : > { %2253 = vmatmul.mubr.msk.bf16.gmra.mxu0 %vm662_vm1, %v2544_v58  ;;  %2291 = vmatmul.mubr.msk.bf16.gmra.mxu1 %vm662_vm1, %v2602_v48  ;;  %v1387_v58 = vsel %vm2411_vm4, %v1382_v14, %v1386_v17 }
  0x88   : > { %2256 = vmatprep.mubr.msk.bf16.mxu0 %vm662_vm1, %v2559_v16  ;;  %2294 = vmatprep.mubr.msk.bf16.mxu1 %vm662_vm1, %v1944_v9  ;;  %v2014_v16 = vcombine.low %v1387_v58, %v1397_v12 }
  0x8f   : > { %2257 = vmatmul.mubr.msk.bf16.gmra.mxu0 %vm662_vm1, %v2574_v53  ;;  %2295 = vmatmul.mubr.msk.bf16.gmra.mxu1 %vm662_vm1, %v1945_v43  ;;  %v1996_v53 = vcombine.low %v221_v31, %v222_v61 }
  0x90   : > { %2260 = vmatprep.mubr.msk.bf16.mxu0 %vm662_vm1, %v2589_v11  ;;  %2298 = vmatprep.mubr.msk.bf16.mxu1 %vm662_vm1, %v1946_v46 }
  0x97   : > { %2261 = vmatmul.mubr.msk.bf16.gmra.mxu0 %vm662_vm1, %v2604_v51  ;;  %2299 = vmatmul.mubr.msk.bf16.gmra.mxu1 %vm662_vm1, %v2014_v16 }
  0x98   : > { %2264 = vmatprep.mubr.msk.bf16.mxu0 %vm662_vm1, %v2616_v18 }
  0x9f   : > { %2265 = vmatmul.mubr.msk.bf16.gmra.mxu0 %vm662_vm1, %v1996_v53 }
  0xd9   : > { %v2697_v54 = vpop.f32.mrf.mxu1 }
  0xdb   : > { %v2699_v63 = vpop.f32.mrf.mxu1 }
  0xdd   : > { %v2701_v11 = vpop.f32.mrf.mxu1 }
  0xdf   : > { %v2703_v36 = vpop.f32.mrf.mxu1 }
  0xe1   : > { %v2705_v47 = vpop.f32.mrf.mxu0  ;;  %v2707_v48 = vpop.f32.mrf.mxu1 }
  0xe3   : > { %v2709_v49 = vpop.f32.mrf.mxu0  ;;  %v2711_v50 = vpop.f32.mrf.mxu1 }
  0xe5   : > { %v2713_v51 = vpop.f32.mrf.mxu0  ;;  %v2715_v56 = vpop.f32.mrf.mxu1 }
  0xe7   : > { %v2717_v57 = vpop.f32.mrf.mxu0  ;;  %v2719_v59 = vpop.f32.mrf.mxu1 }
  0xe9   : > { %v2721_v60 = vpop.f32.mrf.mxu0 }
  0xea   : > { %v2723_v62 = vpop.f32.mrf.mxu1 }
  0xeb   : > { %v2725_v0 = vpop.f32.mrf.mxu0 }
  0xec   : > { %v2727_v1 = vpop.f32.mrf.mxu1 }
  0xed   : > { %v2729_v2 = vpop.f32.mrf.mxu0 }
  0xee   : > { %v2731_v3 = vpop.f32.mrf.mxu1 }
  0xef   : > { %v2733_v8 = vpop.f32.mrf.mxu0 }
  0xf0   : > { %v2735_v9 = vpop.f32.mrf.mxu1 }
  0xf3   : > { %v2737_v13 = vpop.f32.mrf.mxu0  ;;  %v2739_v15 = vpop.f32.mrf.mxu1 }
  0xf5   : > { %v2741_v18 = vpop.f32.mrf.mxu0  ;;  %v2743_v19 = vpop.f32.mrf.mxu1 }
  0xf7   : > { %v2745_v21 = vpop.f32.mrf.mxu0  ;;  %v2747_v22 = vpop.f32.mrf.mxu1 }
  0xf9   : > { %v2749_v24 = vpop.f32.mrf.mxu0  ;;  %v2751_v25 = vpop.f32.mrf.mxu1 }
  0xfb   : > { %v2753_v26 = vpop.f32.mrf.mxu0 }
  0xfc   : > { %v2755_v27 = vpop.f32.mrf.mxu1 }
  0xfd   : > { %v2757_v28 = vpop.f32.mrf.mxu0 }
  0xfe   : > { %v2759_v29 = vpop.f32.mrf.mxu1 }
  0xff   : > { %v2761_v30 = vpop.f32.mrf.mxu0 }
 0x100   : > { %v2763_v32 = vpop.f32.mrf.mxu1 }
 0x101   : > { %v2765_v34 = vpop.f32.mrf.mxu0 }
 0x102   : > { %v2767_v6 = vpop.f32.mrf.mxu1 }
 0x105   : > { %v2769_v37 = vpop.f32.mrf.mxu0  ;;  %v2771_v40 = vpop.f32.mrf.mxu1 }
 0x107   : > { %v2773_v41 = vpop.f32.mrf.mxu0  ;;  %v2775_v42 = vpop.f32.mrf.mxu1 }
 0x109   : > { %v2777_v43 = vpop.f32.mrf.mxu0  ;;  %v2779_v44 = vpop.f32.mrf.mxu1 }
 0x10a   : > { %3005 = vst [vmem:[#allocation2_spill] sm:$0xff] %v2779_v44 }
 0x10b   : > { %v2781_v46 = vpop.f32.mrf.mxu0  ;;  %v2783_v31 = vpop.f32.mrf.mxu1 }
 0x10c   : > { %3006 = vst [vmem:[#allocation3_spill] sm:$0xff] %v2783_v31 }
 0x10d   : > { %v2785_v61 = vpop.f32.mrf.mxu0 }
 0x10e   : > { %v2787_v7 = vpop.f32.mrf.mxu1 }
 0x10f   : > { %3007 = vst [vmem:[#allocation4_spill] sm:$0xff] %v2787_v7  ;;  %v2789_v10 = vpop.f32.mrf.mxu0 }
 0x110   : > { %v2791_v38 = vpop.f32.mrf.mxu1 }
 0x111   : > { %3008 = vst [vmem:[#allocation5_spill] sm:$0xff] %v2791_v38  ;;  %v2793_v39 = vpop.f32.mrf.mxu0 }
 0x112   : > { %3009 = vst [vmem:[#allocation6_spill] sm:$0xff] %v2793_v39  ;;  %v2795_v45 = vpop.f32.mrf.mxu1 }
 0x113   : > { %3010 = vst [vmem:[#allocation7_spill] sm:$0xff] %v2795_v45  ;;  %v2797_v52 = vpop.f32.mrf.mxu0 }
 0x114   : > { %3011 = vst [vmem:[#allocation8_spill] sm:$0xff] %v2797_v52  ;;  %v2799_v17 = vpop.f32.mrf.mxu1 }
 0x115   : > { %3012 = vst [vmem:[#allocation9_spill] sm:$0xff] %v2799_v17 }
 0x117   : > { %v2801_v20 = vpop.f32.mrf.mxu0  ;;  %v2803_v33 = vpop.f32.mrf.mxu1 }
 0x118   : > { %3013 = vst [vmem:[#allocation10_spill] sm:$0xff] %v2801_v20  ;;  %3014 = vst [vmem:[#allocation11_spill] sm:$0xff] %v2803_v33  ;;  %v1045_v20 = vadd.f32 %v2703_v36, %v2717_v57 }
 0x119   : > { %v2805_v35 = vpop.f32.mrf.mxu0  ;;  %v2807_v4 = vpop.f32.mrf.mxu1 }
 0x11a   : > { %3015 = vst [vmem:[#allocation12_spill] sm:$0xff] %v2805_v35  ;;  %3016 = vst [vmem:[#allocation13_spill] sm:$0xff] %v2807_v4 }
 0x11b   : > { %v2809_v5 = vpop.f32.mrf.mxu0  ;;  %v2811_v14 = vpop.f32.mrf.mxu1 }
 0x11c   : > { %3017 = vst [vmem:[#allocation14_spill] sm:$0xff] %v2809_v5  ;;  %3018 = vst [vmem:[#allocation15_spill] sm:$0xff] %v2811_v14  ;;  %v1050_v14 = vadd.f32 %v2697_v54, %v2705_v47 }
 0x11d   : > { %v2813_v23 = vpop.f32.mrf.mxu0  ;;  %v2815_v55 = vpop.f32.mrf.mxu1 }
 0x11e   : > { %3019 = vst [vmem:[#allocation16_spill] sm:$0xff] %v2813_v23  ;;  %3020 = vst [vmem:[#allocation17_spill] sm:$0xff] %v2815_v55  ;;  %v1042_v55 = vadd.f32 %v2699_v63, %v2709_v49 }
 0x11f   : > { %v2817_v58 = vpop.f32.mrf.mxu0  ;;  %v2272_v12 = vpop.f32.mrf.mxu1 }
 0x120   : > { %3021 = vst [vmem:[#allocation18_spill] sm:$0xff] %v2817_v58 }
 0x121   : > { %v2819_v16 = vpop.f32.mrf.mxu0  ;;  %v1443_v53 = vpop.f32.mrf.mxu1 }
 0x122   : > { %3022 = vst [vmem:[#allocation19_spill] sm:$0xff] %v2819_v16  ;;  %v2833_v16 = vld [vmem:[%s3001_s2] ss:$0 sm:$0xff] }
 0x123   : > { %v2821_v17 = vpop.f32.mrf.mxu0  ;;  %v2273_v33 = vpop.f32.mrf.mxu1 }
 0x124   : > { %3023 = vst [vmem:[#allocation20_spill] sm:$0xff] %v2821_v17 }
 0x125   : > { %v2824_v45 = vpop.f32.mrf.mxu0  ;;  %v1446_v4 = vpop.f32.mrf.mxu1 }
 0x126   : > { %3024 = vst [vmem:[#allocation21_spill] sm:$0xff] %v2824_v45  ;;  %v1053_v45 = vadd.f32 %v2701_v11, %v2713_v51  ;;  %v1066_v51 = vadd.f32 %v2707_v48, %v2721_v60 }
 0x127   : > { %v2238_v23 = vpop.f32.mrf.mxu0  ;;  %v2276_v5 = vpop.f32.mrf.mxu1 }
 0x128   : > { %v1344_v58 = vadd.f32 %v2238_v23, %v1050_v14 }
 0x129   : > { %v1215_v17 = vpop.f32.mrf.mxu0  ;;  %v1459_v38 = vpop.f32.mrf.mxu1 }
 0x12a   : > { %v1572_v35 = vadd.f32 %v2272_v12, %v1344_v58  ;;  %v1342_v54 = vadd.f32 %v1215_v17, %v1042_v55 }
 0x12b   : > { %v2239_v47 = vpop.f32.mrf.mxu0  ;;  %v2277_v7 = vpop.f32.mrf.mxu1 }
 0x12c   : > { %v1611_v63 = vadd.f32 %v2833_v16, %v1572_v35  ;;  %v1570_v49 = vadd.f32 %v1443_v53, %v1342_v54  ;;  %v1345_v14 = vadd.f32 %v2239_v47, %v1053_v45  ;;  %v1058_v45 = vadd.f32 %v2711_v50, %v2725_v0 }
 0x12d   : > { %v1218_v23 = vpop.f32.mrf.mxu0  ;;  %v1462_v31 = vpop.f32.mrf.mxu1  ;;  %v1069_v35 = vadd.f32 %v2715_v56, %v2729_v2  ;;  %v1061_v50 = vadd.f32 %v2719_v59, %v2733_v8 }
 0x12e   : > { %v1643_v52 = vmul.f32 0.2, %v1611_v63  ;;  %v1609_v44 = vadd.f32 %v2833_v16, %v1570_v49  ;;  %v1573_v39 = vadd.f32 %v2273_v33, %v1345_v14  ;;  %v1343_v11 = vadd.f32 %v1218_v23, %v1045_v20 }
 0x12f   : > { %v2242_v17 = vpop.f32.mrf.mxu0  ;;  %v2280_v55 = vpop.f32.mrf.mxu1 }
 0x130   : > { %v1675_v58 = vmax.f32 %v1611_v63, %v1643_v52  ;;  %v1641_v12 = vmul.f32 0.2, %v1609_v44  ;;  %v1612_v36 = vadd.f32 %v2833_v16, %v1573_v39  ;;  %v1571_v57 = vadd.f32 %v1446_v4, %v1343_v11 }
 0x131   : > { %v1348_v48 = vadd.f32 %v2242_v17, %v1066_v51  ;;  %v1231_v60 = vpop.f32.mrf.mxu0  ;;  %v1475_v52 = vpop.f32.mrf.mxu1 }
 0x132   : > { %v2068_v20 = vpack.c.bf16 %v1675_v58, %v1675_v58  ;;  %v1673_v33 = vmax.f32 %v1609_v44, %v1641_v12  ;;  %v1644_v39 = vmul.f32 0.2, %v1612_v36  ;;  %v1610_v4 = vadd.f32 %v2833_v16, %v1571_v57 }
 0x133   : > { %v1576_v56 = vadd.f32 %v2276_v5, %v1348_v48  ;;  %v1346_v0 = vadd.f32 %v1231_v60, %v1058_v45  ;;  %v2243_v2 = vpop.f32.mrf.mxu0  ;;  %v2281_v53 = vpop.f32.mrf.mxu1  ;;  %v1082_v44 = vadd.f32 %v2723_v62, %v2737_v13  ;;  %v1074_v58 = vadd.f32 %v2727_v1, %v2741_v18 }
 0x134   : > { %1836 = vst.msk [vmem:[%s2851_s6 + $0x8] sm:$0xf] %vm1833_vm5, %v2068_v20  ;;  %v2066_v54 = vpack.c.bf16 %v1673_v33, %v1673_v33  ;;  %v1676_v47 = vmax.f32 %v1612_v36, %v1644_v39  ;;  %v1642_v63 = vmul.f32 0.2, %v1610_v4  ;;  %v1349_v49 = vadd.f32 %v2243_v2, %v1069_v35 }
 0x135   : > { %v1615_v14 = vadd.f32 %v2833_v16, %v1576_v56  ;;  %v1574_v23 = vadd.f32 %v1459_v38, %v1346_v0  ;;  %v1234_v11 = vpop.f32.mrf.mxu0  ;;  %v1478_v51 = vpop.f32.mrf.mxu1 }
 0x136   : > { %1834 = vst.msk [vmem:[%s2851_s6] sm:$0xf] %vm1833_vm5, %v2066_v54  ;;  %v2069_v59 = vpack.c.bf16 %v1676_v47, %v1676_v47  ;;  %v1674_v8 = vmax.f32 %v1610_v4, %v1642_v63  ;;  %v1577_v5 = vadd.f32 %v2277_v7, %v1349_v49  ;;  %v1347_v17 = vadd.f32 %v1234_v11, %v1061_v50 }
 0x137   : > { %v1647_v12 = vmul.f32 0.2, %v1615_v14  ;;  %v1613_v36 = vadd.f32 %v2833_v16, %v1574_v23  ;;  %v2246_v57 = vpop.f32.mrf.mxu0  ;;  %v2284_v62 = vpop.f32.mrf.mxu1  ;;  %v1085_v4 = vadd.f32 %v2731_v3, %v2745_v21  ;;  %v1077_v49 = vadd.f32 %v2735_v9, %v2749_v24 }
 0x138   : > { %1837 = vst.msk [vmem:[%s2851_s6 + $0xc] sm:$0xf] %vm1833_vm5, %v2069_v59  ;;  %v2067_v13 = vpack.c.bf16 %v1674_v8, %v1674_v8  ;;  %v1616_v38 = vadd.f32 %v2833_v16, %v1577_v5  ;;  %v1575_v45 = vadd.f32 %v1462_v31, %v1347_v17  ;;  %v1352_v35 = vadd.f32 %v2246_v57, %v1082_v44 }
 0x139   : > { %v1679_v48 = vmax.f32 %v1615_v14, %v1647_v12  ;;  %v1645_v60 = vmul.f32 0.2, %v1613_v36  ;;  %v1247_v7 = vpop.f32.mrf.mxu0  ;;  %v1491_v20 = vpop.f32.mrf.mxu1 }
 0x13a   : > { %1835 = vst.msk [vmem:[%s2851_s6 + $0x4] sm:$0xf] %vm1833_vm5, %v2067_v13  ;;  %v1648_v1 = vmul.f32 0.2, %v1616_v38  ;;  %v1614_v18 = vadd.f32 %v2833_v16, %v1575_v45  ;;  %v1580_v33 = vadd.f32 %v2280_v55, %v1352_v35  ;;  %v1350_v39 = vadd.f32 %v1247_v7, %v1074_v58 }
 0x13b   : > { %v2072_v50 = vpack.c.bf16 %v1679_v48, %v1679_v48  ;;  %v1677_v56 = vmax.f32 %v1613_v36, %v1645_v60  ;;  %v2247_v0 = vpop.f32.mrf.mxu0  ;;  %v2285_v31 = vpop.f32.mrf.mxu1  ;;  %v1098_v55 = vadd.f32 %v2739_v15, %v2753_v26  ;;  %v1101_v36 = vadd.f32 %v2747_v22, %v2761_v30 }
 0x13c   : > { %v1680_v2 = vmax.f32 %v1616_v38, %v1648_v1  ;;  %v1646_v54 = vmul.f32 0.2, %v1614_v18  ;;  %v1619_v47 = vadd.f32 %v2833_v16, %v1580_v33  ;;  %v1578_v63 = vadd.f32 %v1475_v52, %v1350_v39 }
 0x13d   : > { %1840 = vst.msk [vmem:[%s2851_s6 + $0x18] sm:$0xf] %vm1833_vm5, %v2072_v50  ;;  %v2070_v3 = vpack.c.bf16 %v1677_v56, %v1677_v56  ;;  %v1353_v21 = vadd.f32 %v2247_v0, %v1085_v4  ;;  %v1250_v44 = vpop.f32.mrf.mxu0  ;;  %v1494_v14 = vpop.f32.mrf.mxu1  ;;  %v1090_v52 = vadd.f32 %v2743_v19, %v2757_v28  ;;  %v1093_v48 = vadd.f32 %v2751_v25, %v2765_v34 }
 0x13e   : > { %v2073_v23 = vpack.c.bf16 %v1680_v2, %v1680_v2  ;;  %v1678_v11 = vmax.f32 %v1614_v18, %v1646_v54  ;;  %v1651_v59 = vmul.f32 0.2, %v1619_v47  ;;  %v1617_v8 = vadd.f32 %v2833_v16, %v1578_v63 }
 0x13f   : > { %1838 = vst.msk [vmem:[%s2851_s6 + $0x10] sm:$0xf] %vm1833_vm5, %v2070_v3  ;;  %v1581_v9 = vadd.f32 %v2281_v53, %v1353_v21  ;;  %v1351_v15 = vadd.f32 %v1250_v44, %v1077_v49  ;;  %v2250_v24 = vpop.f32.mrf.mxu0  ;;  %v2288_v26 = vpop.f32.mrf.mxu1  ;;  %v1114_v2 = vadd.f32 %v2755_v27, %v2769_v37  ;;  %v1106_v44 = vadd.f32 %v2759_v29, %v2773_v41 }
 0x140   : > { %1841 = vst.msk [vmem:[%s2851_s6 + $0x1c] sm:$0xf] %vm1833_vm5, %v2073_v23  ;;  %v2071_v5 = vpack.c.bf16 %v1678_v11, %v1678_v11  ;;  %v1683_v17 = vmax.f32 %v1619_v47, %v1651_v59  ;;  %v1649_v58 = vmul.f32 0.2, %v1617_v8  ;;  %v1356_v12 = vadd.f32 %v2250_v24, %v1098_v55 }
 0x141   : > { %v1620_v57 = vadd.f32 %v2833_v16, %v1581_v9  ;;  %v1579_v19 = vadd.f32 %v1478_v51, %v1351_v15  ;;  %v1263_v28 = vpop.f32.mrf.mxu0  ;;  %v1507_v13 = vpop.f32.mrf.mxu1 }
 0x142   : > { %1839 = vst.msk [vmem:[%s2851_s6 + $0x14] sm:$0xf] %vm1833_vm5, %v2071_v5  ;;  %v2076_v53 = vpack.c.bf16 %v1683_v17, %v1683_v17  ;;  %v1681_v38 = vmax.f32 %v1617_v8, %v1649_v58  ;;  %v1584_v45 = vadd.f32 %v2284_v62, %v1356_v12  ;;  %v1354_v35 = vadd.f32 %v1263_v28, %v1090_v52 }
 0x143   : > { %v1652_v60 = vmul.f32 0.2, %v1620_v57  ;;  %v1618_v7 = vadd.f32 %v2833_v16, %v1579_v19  ;;  %v2251_v1 = vpop.f32.mrf.mxu0  ;;  %v2289_v22 = vpop.f32.mrf.mxu1  ;;  %v1130_v58 = vadd.f32 %v2771_v40, %v2785_v61 }
 0x144   : > { %1844 = vst.msk [vmem:[%s2851_s6 + $0x28] sm:$0xf] %vm1833_vm5, %v2076_v53  ;;  %v2074_v30 = vpack.c.bf16 %v1681_v38, %v1681_v38  ;;  %v1623_v51 = vadd.f32 %v2833_v16, %v1584_v45  ;;  %v1582_v18 = vadd.f32 %v1491_v20, %v1354_v35  ;;  %v1357_v33 = vadd.f32 %v2251_v1, %v1101_v36 }
 0x145   : > { %v1684_v39 = vmax.f32 %v1620_v57, %v1652_v60  ;;  %v1650_v4 = vmul.f32 0.2, %v1618_v7  ;;  %v1266_v62 = vpop.f32.mrf.mxu0  ;;  %v1510_v50 = vpop.f32.mrf.mxu1  ;;  %v1122_v53 = vadd.f32 %v2775_v42, %v2789_v10 }
 0x146   : > { %1842 = vst.msk [vmem:[%s2851_s6 + $0x20] sm:$0xf] %vm1833_vm5, %v2074_v30  ;;  %v1655_v25 = vmul.f32 0.2, %v1623_v51  ;;  %v1621_v34 = vadd.f32 %v2833_v16, %v1582_v18  ;;  %v1585_v56 = vadd.f32 %v2285_v31, %v1357_v33  ;;  %v1355_v0 = vadd.f32 %v1266_v62, %v1093_v48  ;;  %v3025_v33 = vld [vmem:[#allocation6_spill] sm:$0xff] }
 0x147   : > { %v2077_v54 = vpack.c.bf16 %v1684_v39, %v1684_v39  ;;  %v1682_v47 = vmax.f32 %v1618_v7, %v1650_v4  ;;  %v2254_v63 = vpop.f32.mrf.mxu0  ;;  %v2292_v20 = vpop.f32.mrf.mxu1  ;;  %v1117_v31 = vadd.f32 %v2763_v32, %v2777_v43  ;;  %v3026_v39 = vld [vmem:[#allocation2_spill] sm:$0xff] }
 0x148   : > { %v1687_v49 = vmax.f32 %v1623_v51, %v1655_v25  ;;  %v1653_v55 = vmul.f32 0.2, %v1621_v34  ;;  %v1624_v3 = vadd.f32 %v2833_v16, %v1585_v56  ;;  %v1583_v21 = vadd.f32 %v1494_v14, %v1355_v0 }
 0x149   : > { %1845 = vst.msk [vmem:[%s2851_s6 + $0x2c] sm:$0xf] %vm1833_vm5, %v2077_v54  ;;  %v2075_v27 = vpack.c.bf16 %v1682_v47, %v1682_v47  ;;  %v1360_v37 = vadd.f32 %v2254_v63, %v1114_v2  ;;  %v1279_v23 = vpop.f32.mrf.mxu0  ;;  %v1523_v11 = vpop.f32.mrf.mxu1  ;;  %v1109_v14 = vadd.f32 %v2767_v6, %v2781_v46  ;;  %v1133_v4 = vadd.f32 %v3026_v39, %v3025_v33  ;;  %v3027_v47 = vld [vmem:[#allocation8_spill] sm:$0xff]  ;;  %v3028_v63 = vld [vmem:[#allocation3_spill] sm:$0xff]  ;;  %v3037_v39 = vld [vmem:[#allocation18_spill] sm:$0xff] }
 0x14a   : > { %v2080_v59 = vpack.c.bf16 %v1687_v49, %v1687_v49  ;;  %v1685_v8 = vmax.f32 %v1621_v34, %v1653_v55  ;;  %v1656_v52 = vmul.f32 0.2, %v1624_v3  ;;  %v1622_v9 = vadd.f32 %v2833_v16, %v1583_v21  ;;  %v3029_v55 = vld [vmem:[#allocation10_spill] sm:$0xff] }
 0x14b   : > { %1843 = vst.msk [vmem:[%s2851_s6 + $0x24] sm:$0xf] %vm1833_vm5, %v2075_v27  ;;  %v1588_v29 = vadd.f32 %v2288_v26, %v1360_v37  ;;  %v1358_v32 = vadd.f32 %v1279_v23, %v1106_v44  ;;  %v2255_v41 = vpop.f32.mrf.mxu0  ;;  %v2293_v43 = vpop.f32.mrf.mxu1  ;;  %v1125_v49 = vadd.f32 %v3028_v63, %v3027_v47  ;;  %v3039_v63 = vld [vmem:[#allocation19_spill] sm:$0xff] }
 0x14c   : > { %1848 = vst.msk [vmem:[%s2851_s6 + $0x38] sm:$0xf] %vm1833_vm5, %v2080_v59  ;;  %v2078_v15 = vpack.c.bf16 %v1685_v8, %v1685_v8  ;;  %v1688_v24 = vmax.f32 %v1624_v3, %v1656_v52  ;;  %v1654_v5 = vmul.f32 0.2, %v1622_v9  ;;  %v1361_v17 = vadd.f32 %v2255_v41, %v1117_v31  ;;  %v3030_v3 = vld [vmem:[#allocation4_spill] sm:$0xff]  ;;  %v3032_v52 = vld [vmem:[#allocation5_spill] sm:$0xff] }
 0x14d   : > { %v1627_v12 = vadd.f32 %v2833_v16, %v1588_v29  ;;  %v1586_v6 = vadd.f32 %v1507_v13, %v1358_v32  ;;  %v1282_v46 = vpop.f32.mrf.mxu0  ;;  %v1526_v36 = vpop.f32.mrf.mxu1  ;;  %v3031_v8 = vld [vmem:[#allocation12_spill] sm:$0xff] }
 0x14e   : > { %1846 = vst.msk [vmem:[%s2851_s6 + $0x30] sm:$0xf] %vm1833_vm5, %v2078_v15  ;;  %v2081_v26 = vpack.c.bf16 %v1688_v24, %v1688_v24  ;;  %v1686_v57 = vmax.f32 %v1622_v9, %v1654_v5  ;;  %v1589_v19 = vadd.f32 %v2289_v22, %v1361_v17  ;;  %v1359_v28 = vadd.f32 %v1282_v46, %v1109_v14  ;;  %v3033_v17 = vld [vmem:[#allocation14_spill] sm:$0xff] }
 0x14f   : > { %v1659_v38 = vmul.f32 0.2, %v1627_v12  ;;  %v1625_v45 = vadd.f32 %v2833_v16, %v1586_v6  ;;  %v2258_v35 = vpop.f32.mrf.mxu0  ;;  %v2296_v40 = vpop.f32.mrf.mxu1 }
 0x150   : > { %1849 = vst.msk [vmem:[%s2851_s6 + $0x3c] sm:$0xf] %vm1833_vm5, %v2081_v26  ;;  %v2079_v61 = vpack.c.bf16 %v1686_v57, %v1686_v57  ;;  %v1628_v13 = vadd.f32 %v2833_v16, %v1589_v19  ;;  %v1587_v48 = vadd.f32 %v1510_v50, %v1359_v28  ;;  %v1364_v60 = vadd.f32 %v2258_v35, %v1130_v58  ;;  %v3034_v58 = vld [vmem:[#allocation7_spill] sm:$0xff] }
 0x151   : > { %v1691_v7 = vmax.f32 %v1627_v12, %v1659_v38  ;;  %v1657_v1 = vmul.f32 0.2, %v1625_v45  ;;  %v1295_v22 = vpop.f32.mrf.mxu0  ;;  %v1539_v30 = vpop.f32.mrf.mxu1  ;;  %v1149_v12 = vadd.f32 %v3034_v58, %v3033_v17  ;;  %v3036_v38 = vld [vmem:[#allocation9_spill] sm:$0xff] }
 0x152   : > { %1847 = vst.msk [vmem:[%s2851_s6 + $0x34] sm:$0xf] %vm1833_vm5, %v2079_v61  ;;  %v1660_v42 = vmul.f32 0.2, %v1628_v13  ;;  %v1626_v10 = vadd.f32 %v2833_v16, %v1587_v48  ;;  %v1592_v51 = vadd.f32 %v2292_v20, %v1364_v60  ;;  %v1362_v18 = vadd.f32 %v1295_v22, %v1122_v53  ;;  %v3035_v53 = vld [vmem:[#allocation16_spill] sm:$0xff] }
 0x153   : > { %v2084_v62 = vpack.c.bf16 %v1691_v7, %v1691_v7  ;;  %v1689_v25 = vmax.f32 %v1625_v45, %v1657_v1  ;;  %v2259_v34 = vpop.f32.mrf.mxu0  ;;  %v2297_v50 = vpop.f32.mrf.mxu1  ;;  %v1146_v20 = vadd.f32 %v3030_v3, %v3029_v55  ;;  %v1141_v45 = vadd.f32 %v3036_v38, %v3035_v53  ;;  %v3041_v3 = vld [vmem:[#allocation20_spill] sm:$0xff] }
 0x154   : > { %v1692_v56 = vmax.f32 %v1628_v13, %v1660_v42  ;;  %v1658_v0 = vmul.f32 0.2, %v1626_v10  ;;  %v1631_v2 = vadd.f32 %v2833_v16, %v1592_v51  ;;  %v1590_v54 = vadd.f32 %v1523_v11, %v1362_v18 }
 0x155   : > { %1852 = vst.msk [vmem:[%s2851_s6 + $0x48] sm:$0xf] %vm1833_vm5, %v2084_v62  ;;  %v2082_v21 = vpack.c.bf16 %v1689_v25, %v1689_v25  ;;  %v1365_v44 = vadd.f32 %v2259_v34, %v1133_v4  ;;  %v1298_v31 = vpop.f32.mrf.mxu0  ;;  %v1138_v11 = vadd.f32 %v3032_v52, %v3031_v8  ;;  %v1542_v32 = vpop.f32.mrf.mxu1  ;;  %v3038_v4 = vld [vmem:[#allocation11_spill] sm:$0xff]  ;;  %v3043_v8 = vld [vmem:[#allocation21_spill] sm:$0xff] }
 0x156   : > { %v2085_v27 = vpack.c.bf16 %v1692_v56, %v1692_v56  ;;  %v1690_v37 = vmax.f32 %v1626_v10, %v1658_v0  ;;  %v1663_v23 = vmul.f32 0.2, %v1631_v2  ;;  %v1629_v59 = vadd.f32 %v2833_v16, %v1590_v54  ;;  %v3044_v52 = vld [vmem:[#allocation17_spill] sm:$0xff] }
 0x157   : > { %1850 = vst.msk [vmem:[%s2851_s6 + $0x40] sm:$0xf] %vm1833_vm5, %v2082_v21  ;;  %v1593_v9 = vadd.f32 %v2293_v43, %v1365_v44  ;;  %v1363_v14 = vadd.f32 %v1298_v31, %v1125_v49  ;;  %v2262_v29 = vpop.f32.mrf.mxu0  ;;  %v2300_v48 = vpop.f32.mrf.mxu1  ;;  %v1162_v62 = vadd.f32 %v3038_v4, %v3037_v39  ;;  %v3040_v49 = vld [vmem:[#allocation13_spill] sm:$0xff] }
 0x158   : > { %1853 = vst.msk [vmem:[%s2851_s6 + $0x4c] sm:$0xf] %vm1833_vm5, %v2085_v27  ;;  %v2083_v41 = vpack.c.bf16 %v1690_v37, %v1690_v37  ;;  %v1695_v15 = vmax.f32 %v1631_v2, %v1663_v23  ;;  %v1661_v24 = vmul.f32 0.2, %v1629_v59  ;;  %v1368_v5 = vadd.f32 %v2262_v29, %v1146_v20  ;;  %v3042_v20 = vld [vmem:[#allocation15_spill] sm:$0xff] }
 0x159   : > { %v1632_v6 = vadd.f32 %v2833_v16, %v1593_v9  ;;  %v1591_v46 = vadd.f32 %v1526_v36, %v1363_v14  ;;  %v1311_v26 = vpop.f32.mrf.mxu0  ;;  %v1555_v56 = vpop.f32.mrf.mxu1  ;;  %v1154_v55 = vadd.f32 %v3040_v49, %v3039_v63 }
 0x15a   : > { %1851 = vst.msk [vmem:[%s2851_s6 + $0x44] sm:$0xf] %vm1833_vm5, %v2083_v41  ;;  %v2088_v43 = vpack.c.bf16 %v1695_v15, %v1695_v15  ;;  %v1693_v57 = vmax.f32 %v1629_v59, %v1661_v24  ;;  %v1596_v19 = vadd.f32 %v2296_v40, %v1368_v5  ;;  %v1366_v28 = vadd.f32 %v1311_v26, %v1138_v11 }
 0x15b   : > { %v1664_v35 = vmul.f32 0.2, %v1632_v6  ;;  %v1630_v61 = vadd.f32 %v2833_v16, %v1591_v46  ;;  %v2263_v13 = vpop.f32.mrf.mxu0  ;;  %v1157_v11 = vadd.f32 %v3044_v52, %v3043_v8  ;;  %v2301_v14 = vpop.f32.mrf.mxu1 }
 0x15c   : > { %1856 = vst.msk [vmem:[%s2851_s6 + $0x58] sm:$0xf] %vm1833_vm5, %v2088_v43  ;;  %v2086_v60 = vpack.c.bf16 %v1693_v57, %v1693_v57  ;;  %v1635_v36 = vadd.f32 %v2833_v16, %v1596_v19  ;;  %v1594_v7 = vadd.f32 %v1539_v30, %v1366_v28  ;;  %v1369_v1 = vadd.f32 %v2263_v13, %v1149_v12 }
 0x15d   : > { %v1696_v22 = vmax.f32 %v1632_v6, %v1664_v35  ;;  %v1662_v42 = vmul.f32 0.2, %v1630_v61  ;;  %v1314_v10 = vpop.f32.mrf.mxu0  ;;  %v1558_v28 = vpop.f32.mrf.mxu1 }
 0x15e   : > { %1854 = vst.msk [vmem:[%s2851_s6 + $0x50] sm:$0xf] %vm1833_vm5, %v2086_v60  ;;  %v1667_v40 = vmul.f32 0.2, %v1635_v36  ;;  %v1633_v51 = vadd.f32 %v2833_v16, %v1594_v7  ;;  %v1597_v18 = vadd.f32 %v2297_v50, %v1369_v1  ;;  %v1367_v33 = vadd.f32 %v1314_v10, %v1141_v45 }
 0x15f   : > { %v2089_v25 = vpack.c.bf16 %v1696_v22, %v1696_v22  ;;  %v1694_v34 = vmax.f32 %v1630_v61, %v1662_v42  ;;  %v2266_v0 = vpop.f32.mrf.mxu0  ;;  %v1165_v50 = vadd.f32 %v3042_v20, %v3041_v3 }
 0x160   : > { %v1699_v30 = vmax.f32 %v1635_v36, %v1667_v40  ;;  %v1665_v2 = vmul.f32 0.2, %v1633_v51  ;;  %v1636_v54 = vadd.f32 %v2833_v16, %v1597_v18  ;;  %v1595_v47 = vadd.f32 %v1542_v32, %v1367_v33 }
 0x161   : > { %1857 = vst.msk [vmem:[%s2851_s6 + $0x5c] sm:$0xf] %vm1833_vm5, %v2089_v25  ;;  %v2087_v21 = vpack.c.bf16 %v1694_v34, %v1694_v34  ;;  %v1372_v44 = vadd.f32 %v2266_v0, %v1162_v62  ;;  %v1327_v31 = vpop.f32.mrf.mxu0 }
 0x162   : > { %v2092_v27 = vpack.c.bf16 %v1699_v30, %v1699_v30  ;;  %v1697_v37 = vmax.f32 %v1633_v51, %v1665_v2  ;;  %v1668_v23 = vmul.f32 0.2, %v1636_v54  ;;  %v1634_v59 = vadd.f32 %v2833_v16, %v1595_v47 }
 0x163   : > { %1855 = vst.msk [vmem:[%s2851_s6 + $0x54] sm:$0xf] %vm1833_vm5, %v2087_v21  ;;  %v1600_v9 = vadd.f32 %v2300_v48, %v1372_v44  ;;  %v1370_v29 = vadd.f32 %v1327_v31, %v1154_v55  ;;  %v2267_v32 = vpop.f32.mrf.mxu0 }
 0x164   : > { %1860 = vst.msk [vmem:[%s2851_s6 + $0x68] sm:$0xf] %vm1833_vm5, %v2092_v27  ;;  %v2090_v41 = vpack.c.bf16 %v1697_v37, %v1697_v37  ;;  %v1700_v15 = vmax.f32 %v1636_v54, %v1668_v23  ;;  %v1666_v24 = vmul.f32 0.2, %v1634_v59  ;;  %v1373_v5 = vadd.f32 %v2267_v32, %v1165_v50 }
 0x165   : > { %v1639_v17 = vadd.f32 %v2833_v16, %v1600_v9  ;;  %v1598_v58 = vadd.f32 %v1555_v56, %v1370_v29  ;;  %v1330_v12 = vpop.f32.mrf.mxu0 }
 0x166   : > { %1858 = vst.msk [vmem:[%s2851_s6 + $0x60] sm:$0xf] %vm1833_vm5, %v2090_v41  ;;  %v2093_v6 = vpack.c.bf16 %v1700_v15, %v1700_v15  ;;  %v1698_v46 = vmax.f32 %v1634_v59, %v1666_v24  ;;  %v1601_v26 = vadd.f32 %v2301_v14, %v1373_v5  ;;  %v1371_v43 = vadd.f32 %v1330_v12, %v1157_v11 }
 0x167   : > { %v1671_v57 = vmul.f32 0.2, %v1639_v17  ;;  %v1637_v19 = vadd.f32 %v2833_v16, %v1598_v58 }
 0x168   : > { %1861 = vst.msk [vmem:[%s2851_s6 + $0x6c] sm:$0xf] %vm1833_vm5, %v2093_v6  ;;  %v2091_v53 = vpack.c.bf16 %v1698_v46, %v1698_v46  ;;  %v1640_v38 = vadd.f32 %v2833_v16, %v1601_v26  ;;  %v1599_v45 = vadd.f32 %v1558_v28, %v1371_v43 }
 0x169   : > { %v1703_v35 = vmax.f32 %v1639_v17, %v1671_v57  ;;  %v1669_v61 = vmul.f32 0.2, %v1637_v19 }
 0x16a   : > { %1859 = vst.msk [vmem:[%s2851_s6 + $0x64] sm:$0xf] %vm1833_vm5, %v2091_v53  ;;  %v1672_v13 = vmul.f32 0.2, %v1640_v38  ;;  %v1638_v48 = vadd.f32 %v2833_v16, %v1599_v45 }
 0x16b   : > { %v2096_v60 = vpack.c.bf16 %v1703_v35, %v1703_v35  ;;  %v1701_v36 = vmax.f32 %v1637_v19, %v1669_v61 }
 0x16c   : > { %v1704_v7 = vmax.f32 %v1640_v38, %v1672_v13  ;;  %v1670_v1 = vmul.f32 0.2, %v1638_v48 }
 0x16d   : > { %1864 = vst.msk [vmem:[%s2851_s6 + $0x78] sm:$0xf] %vm1833_vm5, %v2096_v60  ;;  %v2094_v22 = vpack.c.bf16 %v1701_v36, %v1701_v36 }
 0x16e   : > { %v2097_v42 = vpack.c.bf16 %v1704_v7, %v1704_v7  ;;  %v1702_v10 = vmax.f32 %v1638_v48, %v1670_v1 }
 0x16f   : > { %1862 = vst.msk [vmem:[%s2851_s6 + $0x70] sm:$0xf] %vm1833_vm5, %v2094_v22 }
 0x170   : > { %1865 = vst.msk [vmem:[%s2851_s6 + $0x7c] sm:$0xf] %vm1833_vm5, %v2097_v42  ;;  %v2095_v40 = vpack.c.bf16 %v1702_v10, %v1702_v10 }
 0x172   : > { %1863 = vst.msk [vmem:[%s2851_s6 + $0x74] sm:$0xf] %vm1833_vm5, %v2095_v40 }
 0x173 PF: > { %s13_s12 = sadd.s32 1, %s2338_s12  }
 0x174   : > { %p10_p5 = scmp.ge.s32.totalorder %s13_s12, 4  }
 0x176   :  { %12 = sbr.rel (!%p10_p5) target bundleno = 1 (0x1), region = 65 }

// kernel: _lambda_.7
= control target key start
LH: loop header
LB: loop body
LE: loop exit
PB: predicated region body
PF: predicated region fallthrough
CT: control target
= control target key end

     0   :  { %s479_s18 = smov 0   ;;  %s520_s0 = inlined_call_operand.vmem [shape: f32[128,32], index: 0, kind: input, shape index: {}]   ;;  %s521_s1 = inlined_call_operand.vmem [shape: f32[1,32], index: 1, kind: input, shape index: {}]   ;;  %s522_s2 = inlined_call_operand.vmem [shape: f32[1,32], index: 2, kind: input, shape index: {}]   ;;  %s523_s3 = inlined_call_operand.vmem [shape: f32[1,32], index: 3, kind: input, shape index: {}]   ;;  %s524_s4 = inlined_call_operand.vmem [shape: f32[1,32], index: 4, kind: input, shape index: {}]   ;;  %s525_s5 = inlined_call_operand.vmem [shape: bf16[128,32], index: 5, kind: output, shape index: {}]  }
   0x1 LB: > { %s403_s19 = sadd.s32 4294967295, %s447_s18   ;;  %p407_p0 = scmp.ge.s32.totalorder %s447_s18, 1  ;;  %s447_s18 = sphi %s479_s18, %s15_s18  }
   0x2   : > { %p188_p1 = scmp.lt.s32.totalorder %s447_s18, 3 }
   0x4   : > { %p189_p2 = pnand %p407_p0, %p188_p1 }
   0x5   : > { %s408_s24 = sshll.u32 (!%p189_p2), %s403_s19, 3 }
   0x6   : > { %192 = sbr.rel (%p189_p2) target bundleno = 54 (0x36), region = 40  ;;  %p217_p3 = scmp.lt.s32.totalorder (!%p189_p2), %s408_s24, 15 }
   0xb   : > { %v236_v0 = vld [vmem:[%s521_s1] sm:$0x1]  ;;  %v246_v7 = vlaneseq  ;;  %s527_s24 = smov (!%p217_p3, %s408_s24), 15  ;;  %vm338_vm0 = vcmask 257024  }
   0xc   : > { %v237_v1 = vld [vmem:[%s522_s2] sm:$0x1]  ;;  %v240_v2 = vmul.f32 0.0078125, %v236_v0  ;;  %s409_s25 = sshll.u32 %s527_s24, 3  ;;  %s411_s8 = sshll.u32 %s527_s24, 2 }
   0xd   : > { %v241_v3 = vmul.f32 0.0078125, %v237_v1  ;;  %v247_v9 = vshrl.u32 %v246_v7, 7  ;;  %s220_s28 = scalar_lea.vmem %s520_s0, %s409_s25  ;;  %v238_v13 = vld [vmem:[%s523_s3] sm:$0x1]  ;;  %s226_s11 = scalar_lea.vmem %s525_s5, %s411_s8 }
   0xe   : > { %v242_v4 = vmul.f32 %v240_v2, %v240_v2  ;;  %v228_v12 = vld [vmem:[%s220_s28] sm:$0xff]  ;;  %v229_v14 = vld [vmem:[%s220_s28 + $0x8] sm:$0xff]  ;;  %v230_v15 = vld [vmem:[%s220_s28 + $0x10] sm:$0xff] }
   0xf   : > { %v248_v10 = vsub.s32 0, %v247_v9  ;;  %v231_v16 = vld [vmem:[%s220_s28 + $0x18] sm:$0xff]  ;;  %v232_v17 = vld [vmem:[%s220_s28 + $0x20] sm:$0xff]  ;;  %v233_v18 = vld [vmem:[%s220_s28 + $0x28] sm:$0xff] }
  0x10   : > { %v243_v5 = vsub.f32 %v241_v3, %v242_v4  ;;  %v234_v19 = vld [vmem:[%s220_s28 + $0x30] sm:$0xff]  ;;  %v235_v20 = vld [vmem:[%s220_s28 + $0x38] sm:$0xff]  ;;  %v412_v32 = vld [vmem:[%s524_s4] ss:$0 sm:$0xff] }
  0x11   : > { %v249_v11 = vrot.slane %v240_v2, %v248_v10 }
  0x12   : > { %v244_v6 = vmax.f32 %v243_v5, 0.0 }
  0x13   : > { %v251_v22 = vsub.f32 %v228_v12, %v249_v11  ;;  %v252_v24 = vsub.f32 %v229_v14, %v249_v11  ;;  %v253_v25 = vsub.f32 %v230_v15, %v249_v11  ;;  %v254_v26 = vsub.f32 %v231_v16, %v249_v11 }
  0x14   : > { %v259_v8 = vadd.f32 1e-05, %v244_v6  ;;  %v255_v27 = vsub.f32 %v232_v17, %v249_v11  ;;  %v256_v28 = vsub.f32 %v233_v18, %v249_v11  ;;  %v257_v29 = vsub.f32 %v234_v19, %v249_v11 }
  0x15   : > { %v258_v30 = vsub.f32 %v235_v20, %v249_v11 }
  0x16   : > { %439 = vrsqrt.f32 %v259_v8 }
  0x23   : > { %v440_v21 = vpop.eup %439 }
  0x24   : > { %v261_v23 = vmul.f32 %v440_v21, %v238_v13 }
  0x26   : > { %v266_v31 = vrot.slane %v261_v23, %v248_v10 }
  0x28   : > { %v268_v33 = vmul.f32 %v266_v31, %v251_v22  ;;  %v269_v34 = vmul.f32 %v266_v31, %v252_v24  ;;  %v270_v35 = vmul.f32 %v266_v31, %v253_v25  ;;  %v271_v36 = vmul.f32 %v266_v31, %v254_v26 }
  0x29   : > { %v272_v37 = vmul.f32 %v266_v31, %v255_v27  ;;  %v273_v38 = vmul.f32 %v266_v31, %v256_v28  ;;  %v274_v39 = vmul.f32 %v266_v31, %v257_v29  ;;  %v275_v40 = vmul.f32 %v266_v31, %v258_v30 }
  0x2a   : > { %v282_v41 = vadd.f32 %v412_v32, %v268_v33  ;;  %v283_v42 = vadd.f32 %v412_v32, %v269_v34  ;;  %v284_v43 = vadd.f32 %v412_v32, %v270_v35  ;;  %v285_v44 = vadd.f32 %v412_v32, %v271_v36 }
  0x2b   : > { %v286_v45 = vadd.f32 %v412_v32, %v272_v37  ;;  %v287_v46 = vadd.f32 %v412_v32, %v273_v38  ;;  %v288_v47 = vadd.f32 %v412_v32, %v274_v39  ;;  %v289_v48 = vadd.f32 %v412_v32, %v275_v40 }
  0x2c   : > { %v290_v49 = vmul.f32 0.2, %v282_v41  ;;  %v291_v50 = vmul.f32 0.2, %v283_v42  ;;  %v292_v51 = vmul.f32 0.2, %v284_v43 }
  0x2d   : > { %v293_v52 = vmul.f32 0.2, %v285_v44  ;;  %v294_v53 = vmul.f32 0.2, %v286_v45  ;;  %v295_v54 = vmul.f32 0.2, %v287_v46 }
  0x2e   : > { %v298_v55 = vmax.f32 %v282_v41, %v290_v49  ;;  %v299_v56 = vmax.f32 %v283_v42, %v291_v50  ;;  %v300_v57 = vmax.f32 %v284_v43, %v292_v51  ;;  %v296_v58 = vmul.f32 0.2, %v288_v47 }
  0x2f   : > { %v301_v59 = vmax.f32 %v285_v44, %v293_v52  ;;  %v302_v60 = vmax.f32 %v286_v45, %v294_v53  ;;  %v303_v61 = vmax.f32 %v287_v46, %v295_v54  ;;  %v297_v62 = vmul.f32 0.2, %v289_v48 }
  0x30   : > { %v423_v63 = vpack.c.bf16 %v298_v55, %v298_v55  ;;  %v424_v0 = vpack.c.bf16 %v299_v56, %v299_v56  ;;  %v425_v1 = vpack.c.bf16 %v300_v57, %v300_v57  ;;  %v304_v2 = vmax.f32 %v288_v47, %v296_v58 }
  0x31   : > { %v426_v3 = vpack.c.bf16 %v301_v59, %v301_v59  ;;  %v427_v4 = vpack.c.bf16 %v302_v60, %v302_v60  ;;  %v428_v5 = vpack.c.bf16 %v303_v61, %v303_v61  ;;  %v305_v6 = vmax.f32 %v289_v48, %v297_v62 }
  0x32   : > { %339 = vst.msk [vmem:[%s226_s11] sm:$0xf] %vm338_vm0, %v423_v63  ;;  %340 = vst.msk [vmem:[%s226_s11 + $0x4] sm:$0xf] %vm338_vm0, %v424_v0  ;;  %v429_v7 = vpack.c.bf16 %v304_v2, %v304_v2 }
  0x33   : > { %341 = vst.msk [vmem:[%s226_s11 + $0x8] sm:$0xf] %vm338_vm0, %v425_v1  ;;  %342 = vst.msk [vmem:[%s226_s11 + $0xc] sm:$0xf] %vm338_vm0, %v426_v3  ;;  %v430_v8 = vpack.c.bf16 %v305_v6, %v305_v6 }
  0x34   : > { %343 = vst.msk [vmem:[%s226_s11 + $0x10] sm:$0xf] %vm338_vm0, %v427_v4  ;;  %344 = vst.msk [vmem:[%s226_s11 + $0x14] sm:$0xf] %vm338_vm0, %v428_v5 }
  0x35   : > { %345 = vst.msk [vmem:[%s226_s11 + $0x18] sm:$0xf] %vm338_vm0, %v429_v7  ;;  %346 = vst.msk [vmem:[%s226_s11 + $0x1c] sm:$0xf] %vm338_vm0, %v430_v8 }
  0x36 PF: > { %s15_s18 = sadd.s32 1, %s447_s18  }
  0x37   : > { %p12_p4 = scmp.ge.s32.totalorder %s15_s18, 4  }
  0x39   :  { %14 = sbr.rel (!%p12_p4) target bundleno = 1 (0x1), region = 70 }

// kernel: _lambda_.6
= control target key start
LH: loop header
LB: loop body
LE: loop exit
PB: predicated region body
PF: predicated region fallthrough
CT: control target
= control target key end

     0   :  { %s1160_s18 = smov 0   ;;  %s1366_s0 = inlined_call_operand.vmem [shape: bf16[2,9,9,32], index: 0, kind: input, shape index: {}]   ;;  %s1367_s1 = inlined_call_operand.vmem [shape: bf16[4,32,32], index: 1, kind: input, shape index: {}]   ;;  %s1368_s2 = inlined_call_operand.vmem [shape: f32[1,32], index: 2, kind: input, shape index: {}]   ;;  %s1369_s3 = inlined_call_operand.vmem [shape: f32[128,32], index: 3, kind: output, shape index: {0}]   ;;  %s1370_s4 = inlined_call_operand.vmem [shape: f32[1,32], index: 4, kind: output, shape index: {1}]   ;;  %s1371_s5 = inlined_call_operand.vmem [shape: f32[1,32], index: 5, kind: output, shape index: {2}]  }
   0x1 LB: > { %s1166_s19 = sadd.s32 4294967295, %s1127_s18   ;;  %p963_p0 = scmp.ge.s32.totalorder %s1127_s18, 1  ;;  %s1127_s18 = sphi %s1160_s18, %s16_s18  }
   0x2   : > { %p182_p1 = scmp.lt.s32.totalorder %s1127_s18, 3 }
   0x4   : > { %p183_p2 = pnand %p963_p0, %p182_p1 }
   0x5   : > { %p210_p3 = scmp.lt.s32.totalorder (!%p183_p2), %s1166_s19, 1  ;;  %s965_s16 = sshll.u32 (!%p183_p2), %s1166_s19, 3 }
   0x6   : > { %186 = sbr.rel (%p183_p2) target bundleno = 300 (0x12c), region = 32  ;;  %p216_p4 = scmp.lt.s32.totalorder (!%p183_p2), %s965_s16, 15 }
   0x7   : > { %p1020_p5 = scmp.ne.s32.totalorder (!%p183_p2), %s1166_s19, 0 }
   0xb   : > { %v1105_v0 = vld [vmem:[%s1367_s1 + $0x8] sm:$0xff]   ;;  %v1106_v1 = vld [vmem:[%s1367_s1 + $0x18] sm:$0xff]   ;;  %v1107_v2 = vld [vmem:[%s1367_s1] sm:$0xff]   ;;  %s211_s26 = scalar_select %p210_p3, %s1166_s19, 1  ;;  %vm388_vm0 = vcmask 261120  }
   0xc   : > { %1059 = vmatprep.subr.bf16.mxu1 %v1105_v0  ;;  %1047 = vmatprep.subr.bf16.mxu0 %v1106_v1  ;;  %v1108_v3 = vld [vmem:[%s1367_s1 + $0x10] sm:$0xff]   ;;  %v1187_v4 = vld [vmem:[%s1367_s1 + $0x28] sm:$0xff]   ;;  %v1112_v5 = vld [vmem:[%s1367_s1 + $0x38] sm:$0xff]   ;;  %vm244_vm1 = vsmask.f32 3328  ;;  %s1375_s16 = smov (!%p216_p4, %s965_s16), 15 }
   0xd   : > { %1060 = vmatpush3.bf16.msra.mxu1 %v1105_v0  ;;  %1048 = vmatpush3.bf16.msra.mxu0 %v1106_v1  ;;  %s1095_s29 = smul.u32 72, %s211_s26  ;;  %vm245_vm2 = vsmask.f32 7440  ;;  %v1116_v36 = vld [vmem:[%s1367_s1 + $0x30] sm:$0xff]   ;;  %s966_s17 = sshll.u32 %s1375_s16, 3 }
   0xe   : > { %1061 = vmatprep.subr.bf16.mxu1 %v1107_v2  ;;  %1049 = vmatprep.subr.bf16.mxu0 %v1108_v3  ;;  %vm1224_vm3 = vmor %vm244_vm1, %vm245_vm2  ;;  %s1310_s24 = scalar_lea.vmem %s1369_s3, %s966_s17 }
   0xf   : > { %s1192_s9 = scalar_lea.vmem %s1366_s0, %s1095_s29 }
  0x10   : > { %v222_v6 = vld [vmem:[%s1192_s9] sm:$0xf]  ;;  %v1199_v7 = vld [vmem:[%s1192_s9 + $0x8] sm:$0xf]  ;;  %v1202_v8 = vld [vmem:[%s1192_s9 + $0x10] sm:$0xf] }
  0x11   : > { %1062 = vmatpush3.bf16.msra.mxu1 %v1107_v2  ;;  %v248_v9 = vshrl.u32 %v222_v6, 16  ;;  %v251_v10 = vshll.u32 %v222_v6, 16  ;;  %v262_v11 = vshrl.u32 %v1199_v7, 16  ;;  %v265_v12 = vshll.u32 %v1199_v7, 16  ;;  %1050 = vmatpush3.bf16.msra.mxu0 %v1108_v3  ;;  %v1207_v13 = vld [vmem:[%s1192_s9 + $0x18] sm:$0xf] }
  0x12   : > { %1083 = vmatprep.subr.bf16.mxu1 %v1112_v5  ;;  %v981_v14 = vcombine.low %v222_v6, %v1199_v7  ;;  %v982_v15 = vcombine.low %v1202_v8, %v1207_v13  ;;  %v223_v16 = vld [vmem:[%s1192_s9 + $0x4] sm:$0x1]  ;;  %v225_v17 = vld [vmem:[%s1192_s9 + $0xc] sm:$0x1]  ;;  %v227_v18 = vld [vmem:[%s1192_s9 + $0x14] sm:$0x1]  ;;  %1071 = vmatprep.subr.bf16.mxu0 %v1187_v4 }
  0x13   : > { %v250_v19 = vrot.slane %v248_v9, 4  ;;  %v253_v20 = vrot.slane %v251_v10, 5  ;;  %v257_v21 = vshll.u32 %v223_v16, 16  ;;  %v264_v22 = vrot.slane %v262_v11, 4  ;;  %v229_v25 = vld [vmem:[%s1192_s9 + $0x1c] sm:$0x1] }
  0x14   : > { %1063 = vmatprep.mubr.msk.bf16.mxu1 %vm388_vm0, %v981_v14  ;;  %v267_v23 = vrot.slane %v265_v12, 5  ;;  %v271_v24 = vshll.u32 %v225_v17, 16  ;;  %v276_v27 = vshrl.u32 %v1202_v8, 16  ;;  %v279_v28 = vshll.u32 %v1202_v8, 16  ;;  %v1222_v30 = vld [vmem:[%s1192_s9 + $0x20] sm:$0xf] }
  0x15   : > { %1064 = vmatmul.mubr.msk.bf16.vlgmr.msra.gmra.mxu1 %vm388_vm0, %v982_v15  ;;  %v254_v26 = vor.u32 %v253_v20, %v250_v19  ;;  %v285_v29 = vshll.u32 %v227_v18, 16  ;;  %v259_v32 = vrot.slane %v257_v21, 5  ;;  %v290_v35 = vshrl.u32 %v1207_v13, 16  ;;  %v231_v37 = vld [vmem:[%s1192_s9 + $0x24] sm:$0x1] }
  0x16   : > { %v268_v33 = vor.u32 %v267_v23, %v264_v22  ;;  %v273_v34 = vrot.slane %v271_v24, 5  ;;  %1084 = vmatpush3.bf16.msra.mxu1 %v1112_v5  ;;  %v278_v39 = vrot.slane %v276_v27, 4  ;;  %v281_v40 = vrot.slane %v279_v28, 5  ;;  %v1235_v46 = vld [vmem:[%s1192_s9 + $0x28] sm:$0xf] }
  0x17   : > { %v255_v38 = vrot.slane %v254_v26, 4  ;;  %v287_v41 = vrot.slane %v285_v29, 5  ;;  %v292_v43 = vrot.slane %v290_v35, 4  ;;  %v293_v44 = vshll.u32 %v1207_v13, 16  ;;  %1085 = vmatprep.subr.bf16.mxu1 %v1116_v36  ;;  %v1244_v55 = vld [vmem:[%s1192_s9 + $0x30] sm:$0xf] }
  0x18   : > { %v269_v42 = vrot.slane %v268_v33, 4  ;;  %v299_v45 = vshll.u32 %v229_v25, 16  ;;  %v282_v48 = vor.u32 %v281_v40, %v278_v39  ;;  %v304_v49 = vshrl.u32 %v1222_v30, 16  ;;  %v1247_v60 = vld [vmem:[%s1192_s9 + $0x38] sm:$0xf]  ;;  %v1115_v25 = vld [vmem:[%s1367_s1 + $0x20] sm:$0xff]  }
  0x19   : > { %v260_v47 = vsel %vm1224_vm3, %v255_v38, %v259_v32  ;;  %v307_v50 = vshll.u32 %v1222_v30, 16  ;;  %v295_v52 = vrot.slane %v293_v44, 5  ;;  %v313_v54 = vshll.u32 %v231_v37, 16  ;;  %v233_v6 = vld [vmem:[%s1192_s9 + $0x2c] sm:$0x1] }
  0x1a   : > { %v274_v51 = vsel %vm1224_vm3, %v269_v42, %v273_v34  ;;  %v301_v53 = vrot.slane %v299_v45, 5  ;;  %1086 = vmatpush3.bf16.msra.mxu1 %v1116_v36  ;;  %v283_v56 = vrot.slane %v282_v48, 4  ;;  %v306_v57 = vrot.slane %v304_v49, 4  ;;  %v235_v14 = vld [vmem:[%s1192_s9 + $0x34] sm:$0x1] }
  0x1b   : > { %v309_v58 = vrot.slane %v307_v50, 5  ;;  %v971_v59 = vcombine.low %v260_v47, %v274_v51  ;;  %v296_v61 = vor.u32 %v295_v52, %v292_v43  ;;  %v315_v62 = vrot.slane %v313_v54, 5  ;;  %v237_v22 = vld [vmem:[%s1192_s9 + $0x3c] sm:$0x1]  ;;  %v238_v28 = vld [vmem:[%s1192_s9 + $0x40] sm:$0xf] }
  0x1c   : > { %v318_v63 = vshrl.u32 %v1235_v46, 16  ;;  %v321_v0 = vshll.u32 %v1235_v46, 16  ;;  %v288_v1 = vsel %vm1224_vm3, %v283_v56, %v287_v41  ;;  %v983_v3 = vcombine.low %v1222_v30, %v1235_v46  ;;  %v239_v35 = vld [vmem:[%s1192_s9 + $0x44] sm:$0x1] }
  0x1d   : > { %v310_v2 = vor.u32 %v309_v58, %v306_v57  ;;  %1051 = vmatprep.mubr.msk.bf16.mxu0 %vm388_vm0, %v971_v59  ;;  %v332_v5 = vshrl.u32 %v1244_v55, 16  ;;  %v297_v9 = vrot.slane %v296_v61, 4  ;;  %v1009_v10 = vcombine.low %v274_v51, %v288_v1 }
  0x1e   : > { %v335_v11 = vshll.u32 %v1244_v55, 16  ;;  %v346_v12 = vshrl.u32 %v1247_v60, 16  ;;  %1067 = vmatprep.mubr.msk.bf16.mxu1 %vm388_vm0, %v983_v3  ;;  %v349_v16 = vshll.u32 %v1247_v60, 16  ;;  %v984_v17 = vcombine.low %v1244_v55, %v1247_v60 }
  0x1f   : > { %v311_v15 = vrot.slane %v310_v2, 4  ;;  %v320_v18 = vrot.slane %v318_v63, 4  ;;  %v302_v19 = vsel %vm1224_vm3, %v297_v9, %v301_v53  ;;  %v323_v20 = vrot.slane %v321_v0, 5 }
  0x20   : > { %v327_v21 = vshll.u32 %v233_v6, 16  ;;  %v334_v23 = vrot.slane %v332_v5, 4  ;;  %v972_v24 = vcombine.low %v288_v1, %v302_v19  ;;  %1068 = vmatmul.mubr.msk.bf16.gmra.mxu1 %vm388_vm0, %v984_v17  ;;  %v337_v26 = vrot.slane %v335_v11, 5 }
  0x21   : > { %v341_v27 = vshll.u32 %v235_v14, 16  ;;  %v316_v29 = vsel %vm1224_vm3, %v311_v15, %v315_v62  ;;  %v324_v32 = vor.u32 %v323_v20, %v320_v18  ;;  %v348_v34 = vrot.slane %v346_v12, 4  ;;  %1087 = vmatprep.mubr.msk.bf16.mxu1 %vm388_vm0, %v1009_v10 }
  0x22   : > { %v329_v33 = vrot.slane %v327_v21, 5  ;;  %1052 = vmatmul.mubr.msk.bf16.vlgmr.msra.gmra.mxu0 %vm388_vm0, %v972_v24  ;;  %v338_v36 = vor.u32 %v337_v26, %v334_v23  ;;  %v351_v38 = vrot.slane %v349_v16, 5  ;;  %v355_v39 = vshll.u32 %v237_v22, 16  ;;  %v1019_v24 = vld [vmem:[%s1368_s2] ss:$0 sm:$0xff] }
  0x23   : > { %v343_v37 = vrot.slane %v341_v27, 5  ;;  %v1010_v40 = vcombine.low %v302_v19, %v316_v29  ;;  %1072 = vmatpush3.bf16.msra.mxu0 %v1187_v4  ;;  %v325_v41 = vrot.slane %v324_v32, 4  ;;  %v684_v42 = vshrl.u32 %v238_v28, 16 }
  0x24   : > { %v687_v43 = vshll.u32 %v238_v28, 16  ;;  %1073 = vmatprep.subr.bf16.mxu0 %v1115_v25  ;;  %v339_v44 = vrot.slane %v338_v36, 4  ;;  %v352_v45 = vor.u32 %v351_v38, %v348_v34  ;;  %v357_v47 = vrot.slane %v355_v39, 5 }
  0x25   : > { %v693_v48 = vshll.u32 %v239_v35, 16  ;;  %v330_v49 = vsel %vm1224_vm3, %v325_v41, %v329_v33  ;;  %v686_v50 = vrot.slane %v684_v42, 4  ;;  %v995_v59 = vcombine.low %v1199_v7, %v1202_v8 }
  0x26   : > { %v689_v51 = vrot.slane %v687_v43, 5  ;;  %v973_v52 = vcombine.low %v316_v29, %v330_v49  ;;  %v344_v53 = vsel %vm1224_vm3, %v339_v44, %v343_v37  ;;  %v353_v54 = vrot.slane %v352_v45, 4 }
  0x27   : > { %1074 = vmatpush3.bf16.msra.mxu0 %v1115_v25  ;;  %v1011_v4 = vcombine.low %v330_v49, %v344_v53  ;;  %v695_v57 = vrot.slane %v693_v48, 5  ;;  %v996_v1 = vcombine.low %v1207_v13, %v1222_v30  ;;  %v997_v7 = vcombine.low %v1235_v46, %v1244_v55 }
  0x28   : > { %v690_v56 = vor.u32 %v689_v51, %v686_v50  ;;  %1055 = vmatprep.mubr.msk.bf16.mxu0 %vm388_vm0, %v973_v52  ;;  %v358_v58 = vsel %vm1224_vm3, %v353_v54, %v357_v47  ;;  %1088 = vmatmul.mubr.msk.bf16.vlgmr.msra.gmra.mxu1 %vm388_vm0, %v1010_v40  ;;  %v998_v8 = vcombine.low %v1247_v60, %v238_v28 }
  0x29   : > { %v974_v61 = vcombine.low %v344_v53, %v358_v58  ;;  %1091 = vmatprep.mubr.msk.bf16.mxu1 %vm388_vm0, %v1011_v4 }
  0x2a   : > { %v691_v62 = vrot.slane %v690_v56, 4 }
  0x2b   : > { %1056 = vmatmul.mubr.msk.bf16.gmra.mxu0 %vm388_vm0, %v974_v61 }
  0x2c   : > { %v696_v63 = vsel %vm1224_vm3, %v691_v62, %v695_v57  ;;  %1075 = vmatprep.mubr.msk.bf16.mxu0 %vm388_vm0, %v995_v59 }
  0x2d   : > { %v1012_v0 = vcombine.low %v358_v58, %v696_v63 }
  0x30   : > { %1092 = vmatmul.mubr.msk.bf16.gmra.mxu1 %vm388_vm0, %v1012_v0 }
  0x33   : > { %1076 = vmatmul.mubr.msk.bf16.vlgmr.msra.gmra.mxu0 %vm388_vm0, %v996_v1 }
  0x34   : > { %1079 = vmatprep.mubr.msk.bf16.mxu0 %vm388_vm0, %v997_v7 }
  0x3b   : > { %1080 = vmatmul.mubr.msk.bf16.gmra.mxu0 %vm388_vm0, %v998_v8 }
  0xd5   : > { %v1065_v31 = vpop.f32.mrf.mxu1 }
  0xd7   : > { %v544_v2 = vpop.f32.mrf.mxu1 }
  0xd9   : > { %v1066_v3 = vpop.f32.mrf.mxu1 }
  0xdb   : > { %v547_v5 = vpop.f32.mrf.mxu1 }
  0xe0   : > { %v1069_v6 = vpop.f32.mrf.mxu1 }
  0xe2   : > { %v1053_v13 = vpop.f32.mrf.mxu0  ;;  %v560_v30 = vpop.f32.mrf.mxu1 }
  0xe3   : > { %v553_v19 = vadd.f32 %v1065_v31, %v1053_v13 }
  0xe4   : > { %v435_v9 = vpop.f32.mrf.mxu0  ;;  %v1070_v10 = vpop.f32.mrf.mxu1 }
  0xe5   : > { %v545_v22 = vadd.f32 %v544_v2, %v435_v9 }
  0xe6   : > { %v1054_v11 = vpop.f32.mrf.mxu0  ;;  %v563_v46 = vpop.f32.mrf.mxu1 }
  0xe7   : > { %v556_v26 = vadd.f32 %v1066_v3, %v1054_v11 }
  0xe8   : > { %v438_v55 = vpop.f32.mrf.mxu0  ;;  %v1089_v12 = vpop.f32.mrf.mxu1 }
  0xe9   : > { %v548_v33 = vadd.f32 %v547_v5, %v438_v55 }
  0xea   : > { %v765_v15 = vpop.f32.mrf.mxu1 }
  0xeb   : > { %v1057_v14 = vpop.f32.mrf.mxu0 }
  0xec   : > { %v1090_v17 = vpop.f32.mrf.mxu1  ;;  %v569_v38 = vadd.f32 %v1069_v6, %v1057_v14 }
  0xed   : > { %v451_v60 = vpop.f32.mrf.mxu0 }
  0xee   : > { %v768_v21 = vpop.f32.mrf.mxu1  ;;  %v561_v44 = vadd.f32 %v560_v30, %v451_v60 }
  0xef   : > { %v1058_v16 = vpop.f32.mrf.mxu0 }
  0xf0   : > { %v1093_v32 = vpop.f32.mrf.mxu1  ;;  %v572_v50 = vadd.f32 %v1070_v10, %v1058_v16 }
  0xf1   : > { %v454_v18 = vpop.f32.mrf.mxu0 }
  0xf2   : > { %v781_v42 = vpop.f32.mrf.mxu1  ;;  %v564_v56 = vadd.f32 %v563_v46, %v454_v18 }
  0xf3   : > { %v1077_v20 = vpop.f32.mrf.mxu0 }
  0xf4   : > { %v677_v23 = vadd.f32 %v1077_v20, %v553_v19  ;;  %v1094_v54 = vpop.f32.mrf.mxu1 }
  0xf5   : > { %v644_v25 = vpop.f32.mrf.mxu0 }
  0xf6   : > { %v798_v27 = vadd.f32 %v1089_v12, %v677_v23  ;;  %v675_v28 = vadd.f32 %v644_v25, %v545_v22  ;;  %v784_v1 = vpop.f32.mrf.mxu1 }
  0xf7   : > { %v1078_v29 = vpop.f32.mrf.mxu0 }
  0xf8   : > { %v813_v34 = vadd.f32 %v1019_v24, %v798_v27  ;;  %v796_v35 = vadd.f32 %v765_v15, %v675_v28  ;;  %v678_v36 = vadd.f32 %v1078_v29, %v556_v26 }
  0xf9   : > { %v647_v37 = vpop.f32.mrf.mxu0 }
  0xfa   : > { %821 = vst.msk [vmem:[%s1310_s24 + $0x10] sm:$0xff] %vm388_vm0, %v813_v34  ;;  %v811_v39 = vadd.f32 %v1019_v24, %v796_v35  ;;  %v799_v40 = vadd.f32 %v1090_v17, %v678_v36  ;;  %v676_v41 = vadd.f32 %v647_v37, %v548_v33 }
  0xfb   : > { %v1081_v43 = vpop.f32.mrf.mxu0 }
  0xfc   : > { %819 = vst.msk [vmem:[%s1310_s24] sm:$0xff] %vm388_vm0, %v811_v39  ;;  %v814_v45 = vadd.f32 %v1019_v24, %v799_v40  ;;  %v797_v47 = vadd.f32 %v768_v21, %v676_v41  ;;  %v681_v48 = vadd.f32 %v1081_v43, %v569_v38 }
  0xfd   : > { %v660_v49 = vpop.f32.mrf.mxu0 }
  0xfe   : > { %822 = vst.msk [vmem:[%s1310_s24 + $0x18] sm:$0xff] %vm388_vm0, %v814_v45  ;;  %v812_v51 = vadd.f32 %v1019_v24, %v797_v47  ;;  %v802_v52 = vadd.f32 %v1093_v32, %v681_v48  ;;  %v679_v53 = vadd.f32 %v660_v49, %v561_v44 }
  0xff   : > { %v1082_v4 = vpop.f32.mrf.mxu0 }
 0x100   : > { %820 = vst.msk [vmem:[%s1310_s24 + $0x8] sm:$0xff] %vm388_vm0, %v812_v51  ;;  %v817_v57 = vadd.f32 %v1019_v24, %v802_v52  ;;  %v800_v58 = vadd.f32 %v781_v42, %v679_v53  ;;  %v682_v59 = vadd.f32 %v1082_v4, %v572_v50 }
 0x101   : > { %v663_v61 = vpop.f32.mrf.mxu0 }
 0x102   : > { %825 = vst.msk [vmem:[%s1310_s24 + $0x30] sm:$0xff] %vm388_vm0, %v817_v57  ;;  %v815_v62 = vadd.f32 %v1019_v24, %v800_v58  ;;  %v803_v63 = vadd.f32 %v1094_v54, %v682_v59  ;;  %v680_v0 = vadd.f32 %v663_v61, %v564_v56 }
 0x104   : > { %823 = vst.msk [vmem:[%s1310_s24 + $0x20] sm:$0xff] %vm388_vm0, %v815_v62  ;;  %v818_v7 = vadd.f32 %v1019_v24, %v803_v63  ;;  %v801_v8 = vadd.f32 %v784_v1, %v680_v0  ;;  %830 = sbr.rel (%p1020_p5) target bundleno = 267 (0x10b), region = 36 }
 0x106   : > { %826 = vst.msk [vmem:[%s1310_s24 + $0x38] sm:$0xff] %vm388_vm0, %v818_v7  ;;  %v816_v31 = vadd.f32 %v1019_v24, %v801_v8 }
 0x108   : > { %824 = vst.msk [vmem:[%s1310_s24 + $0x28] sm:$0xff] %vm388_vm0, %v816_v31 }
 0x109   : > { %vm831_vm4 = vcmask 253952   ;;  %v1129_v2 = vmov 0.0  }
 0x10a   : > { %832 = vst.msk [vmem:[%s1370_s4] sm:$0x1] %vm831_vm4, %v1129_v2  ;;  %833 = vst.msk [vmem:[%s1371_s5] sm:$0x1] %vm831_vm4, %v1129_v2 }
 0x10b PF: > { %v835_v3 = vsel %vm388_vm0, %v811_v39, 0.0  ;;  %v836_v5 = vsel %vm388_vm0, %v812_v51, 0.0  ;;  %v838_v6 = vsel %vm388_vm0, %v813_v34, 0.0  ;;  %v840_v30 = vsel %vm388_vm0, %v814_v45, 0.0 }
 0x10c   : > { %v837_v13 = vadd.f32 %v836_v5, %v835_v3  ;;  %v860_v9 = vmul.f32 %v811_v39, %v811_v39  ;;  %v861_v10 = vmul.f32 %v812_v51, %v812_v51  ;;  %v862_v46 = vmul.f32 %v813_v34, %v813_v34 }
 0x10d   : > { %v863_v55 = vmul.f32 %v814_v45, %v814_v45  ;;  %v842_v12 = vsel %vm388_vm0, %v815_v62, 0.0  ;;  %v864_v60 = vmul.f32 %v815_v62, %v815_v62  ;;  %v844_v18 = vsel %vm388_vm0, %v816_v31, 0.0 }
 0x10e   : > { %v839_v11 = vadd.f32 %v838_v6, %v837_v13  ;;  %v868_v14 = vsel %vm388_vm0, %v860_v9, 0.0  ;;  %v869_v16 = vsel %vm388_vm0, %v861_v10, 0.0  ;;  %v871_v17 = vsel %vm388_vm0, %v862_v46, 0.0 }
 0x10f   : > { %v870_v19 = vadd.f32 %v869_v16, %v868_v14  ;;  %v865_v21 = vmul.f32 %v816_v31, %v816_v31  ;;  %v873_v22 = vsel %vm388_vm0, %v863_v55, 0.0  ;;  %v846_v23 = vsel %vm388_vm0, %v817_v57, 0.0 }
 0x110   : > { %v841_v15 = vadd.f32 %v840_v30, %v839_v11  ;;  %v866_v26 = vmul.f32 %v817_v57, %v817_v57  ;;  %v875_v27 = vsel %vm388_vm0, %v864_v60, 0.0  ;;  %v848_v28 = vsel %vm388_vm0, %v818_v7, 0.0 }
 0x111   : > { %v872_v24 = vadd.f32 %v871_v17, %v870_v19  ;;  %v867_v33 = vmul.f32 %v818_v7, %v818_v7  ;;  %v877_v34 = vsel %vm388_vm0, %v865_v21, 0.0  ;;  %v834_v50 = vld [vmem:[%s1370_s4] sm:$0x1]  ;;  %vm857_vm5 = vcmask 253952  }
 0x112   : > { %v843_v20 = vadd.f32 %v842_v12, %v841_v15  ;;  %v879_v37 = vsel %vm388_vm0, %v866_v26, 0.0  ;;  %v859_v56 = vld [vmem:[%s1371_s5] sm:$0x1] }
 0x113   : > { %v874_v29 = vadd.f32 %v873_v22, %v872_v24  ;;  %v881_v40 = vsel %vm388_vm0, %v867_v33, 0.0 }
 0x114   : > { %v845_v25 = vadd.f32 %v844_v18, %v843_v20 }
 0x115   : > { %v876_v35 = vadd.f32 %v875_v27, %v874_v29 }
 0x116   : > { %v847_v32 = vadd.f32 %v846_v23, %v845_v25 }
 0x117   : > { %v878_v38 = vadd.f32 %v877_v34, %v876_v35 }
 0x118   : > { %v849_v36 = vadd.f32 %v848_v28, %v847_v32 }
 0x119   : > { %v880_v41 = vadd.f32 %v879_v37, %v878_v38 }
 0x11a   : > { %v850_v39 = vrot.slane %v849_v36, 4 }
 0x11b   : > { %v882_v43 = vadd.f32 %v881_v40, %v880_v41 }
 0x11c   : > { %v851_v42 = vadd.f32 %v850_v39, %v849_v36 }
 0x11d   : > { %v883_v45 = vrot.slane %v882_v43, 4 }
 0x11e   : > { %v852_v44 = vrot.slane %v851_v42, 2 }
 0x11f   : > { %v884_v48 = vadd.f32 %v883_v45, %v882_v43 }
 0x120   : > { %v853_v47 = vadd.f32 %v852_v44, %v851_v42 }
 0x121   : > { %v885_v51 = vrot.slane %v884_v48, 2 }
 0x122   : > { %v854_v49 = vrot.slane %v853_v47, 1 }
 0x123   : > { %v886_v53 = vadd.f32 %v885_v51, %v884_v48 }
 0x124   : > { %v855_v52 = vadd.f32 %v854_v49, %v853_v47 }
 0x125   : > { %v887_v4 = vrot.slane %v886_v53, 1 }
 0x126   : > { %v856_v54 = vadd.f32 %v855_v52, %v834_v50 }
 0x127   : > { %v888_v57 = vadd.f32 %v887_v4, %v886_v53 }
 0x128   : > { %858 = vst.msk [vmem:[%s1370_s4] sm:$0x1] %vm857_vm5, %v856_v54 }
 0x129   : > { %v889_v58 = vadd.f32 %v888_v57, %v859_v56 }
 0x12b   : > { %890 = vst.msk [vmem:[%s1371_s5] sm:$0x1] %vm857_vm5, %v889_v58 }
 0x12c PF: > { %s16_s18 = sadd.s32 1, %s1127_s18  }
 0x12d   : > { %p13_p6 = scmp.ge.s32.totalorder %s16_s18, 4  }
 0x12f   :  { %15 = sbr.rel (!%p13_p6) target bundleno = 1 (0x1), region = 85 }

// kernel: _lambda_.8
= control target key start
LH: loop header
LB: loop body
LE: loop exit
PB: predicated region body
PF: predicated region fallthrough
CT: control target
= control target key end

     0   :  { %s1261_s18 = smov 0   ;;  %s1516_s0 = inlined_call_operand.vmem [shape: bf16[2,5,5,128], index: 0, kind: input, shape index: {}]   ;;  %s1517_s1 = inlined_call_operand.vmem [shape: bf16[4,128,64], index: 1, kind: input, shape index: {}]   ;;  %s1518_s2 = inlined_call_operand.vmem [shape: f32[1,64], index: 2, kind: input, shape index: {}]   ;;  %s1519_s3 = inlined_call_operand.vmem [shape: f32[32,64], index: 3, kind: output, shape index: {0}]   ;;  %s1520_s4 = inlined_call_operand.vmem [shape: f32[1,64], index: 4, kind: output, shape index: {1}]   ;;  %s1521_s5 = inlined_call_operand.vmem [shape: f32[1,64], index: 5, kind: output, shape index: {2}]  }
   0x1 LB: > { %s1267_s19 = sadd.s32 4294967295, %s1225_s18   ;;  %p966_p0 = scmp.ge.s32.totalorder %s1225_s18, 1  ;;  %s1225_s18 = sphi %s1261_s18, %s16_s18  }
   0x2   : > { %p182_p1 = scmp.lt.s32.totalorder %s1225_s18, 3 }
   0x4   : > { %p183_p2 = pnand %p966_p0, %p182_p1 }
   0x5   : > { %p210_p3 = scmp.lt.s32.totalorder (!%p183_p2), %s1267_s19, 1  ;;  %s968_s20 = sshll.u32 (!%p183_p2), %s1267_s19, 1 }
   0x6   : > { %186 = sbr.rel (%p183_p2) target bundleno = 302 (0x12e), region = 32  ;;  %p216_p4 = scmp.lt.s32.totalorder (!%p183_p2), %s968_s20, 3 }
   0x7   : > { %p1051_p5 = scmp.ne.s32.totalorder (!%p183_p2), %s1267_s19, 0 }
   0xb   : > { %v1183_v0 = vld [vmem:[%s1517_s1 + $0x78] sm:$0xff]   ;;  %v1227_v1 = vmov 0.0   ;;  %v1185_v3 = vld [vmem:[%s1517_s1 + $0x70] sm:$0xff]   ;;  %vm1228_vm0 = vmmov 0   ;;  %v1187_v5 = vld [vmem:[%s1517_s1 + $0x68] sm:$0xff]   ;;  %s211_s7 = scalar_select %p210_p3, %s1267_s19, 1  ;;  %v250_v10 = vlaneseq }
   0xc   : > { %1090 = vmatprep.subr.bf16.mxu0 %v1227_v1  ;;  %1110 = vmatprep.subr.bf16.mxu1 %v1227_v1  ;;  %v1184_v2 = vld [vmem:[%s1517_s1 + $0x38] sm:$0xff]   ;;  %v1186_v4 = vld [vmem:[%s1517_s1 + $0x30] sm:$0xff]   ;;  %v1188_v6 = vld [vmem:[%s1517_s1 + $0x28] sm:$0xff]   ;;  %v1229_v14 = vmov 1983009808   ;;  %s1527_s20 = smov (!%p216_p4, %s968_s20), 3 }
   0xd   : > { %1091 = vmatpush3.bf16.msra.mxu0 %v1183_v0  ;;  %1106 = vmatprep.mubr.msk.bf16.mxu0 %vm1228_vm0, %v1227_v1  ;;  %v1189_v7 = vld [vmem:[%s1517_s1 + $0x60] sm:$0xff]   ;;  %s1170_s12 = smul.u32 20, %s211_s7  ;;  %v1191_v9 = vld [vmem:[%s1517_s1 + $0x58] sm:$0xff]   ;;  %v1193_v12 = vld [vmem:[%s1517_s1 + $0x50] sm:$0xff]   ;;  %v248_v15 = vunpack.c.l.s4 %v1229_v14  ;;  %v251_v16 = vshrl.u32 %v250_v10, 7  ;;  %vm857_vm8 = vcmask 523264  }
   0xe   : > { %1111 = vmatpush3.bf16.msra.mxu1 %v1184_v2  ;;  %1092 = vmatprep.subr.bf16.mxu0 %v1227_v1  ;;  %v1190_v8 = vld [vmem:[%s1517_s1 + $0x20] sm:$0xff]   ;;  %v1192_v11 = vld [vmem:[%s1517_s1 + $0x18] sm:$0xff]   ;;  %v1194_v13 = vld [vmem:[%s1517_s1 + $0x10] sm:$0xff]   ;;  %vm279_vm1 = vsmask.f32 1280 }
   0xf   : > { %1112 = vmatprep.subr.bf16.mxu1 %v1227_v1  ;;  %1126 = vmatprep.mubr.msk.bf16.mxu1 %vm1228_vm0, %v1227_v1  ;;  %s1320_s21 = scalar_lea.vmem %s1516_s0, %s1170_s12  ;;  %v1195_v18 = vld [vmem:[%s1517_s1 + $0x48] sm:$0xff]   ;;  %v249_v21 = vunpack.c.0.s8 %v248_v15  ;;  %vm280_vm2 = vsmask.f32 3336  ;;  %vm282_vm3 = vsmask.f32 5392  ;;  %v1197_v25 = vld [vmem:[%s1517_s1 + $0x40] sm:$0xff]  }
  0x10   : > { %v1330_v17 = vld [vmem:[%s1320_s21] sm:$0x7]  ;;  %v1337_v19 = vld [vmem:[%s1320_s21 + $0x4] sm:$0x7]  ;;  %v1340_v20 = vld [vmem:[%s1320_s21 + $0x8] sm:$0x7] }
  0x11   : > { %1093 = vmatpush3.bf16.msra.mxu0 %v1185_v3  ;;  %v1196_v22 = vld [vmem:[%s1517_s1 + $0x8] sm:$0xff]   ;;  %v1348_v24 = vsub.s32 %v249_v21, %v251_v16  ;;  %v1198_v30 = vld [vmem:[%s1517_s1] sm:$0xff]   ;;  %vm284_vm4 = vsmask.f32 7448  ;;  %v466_v31 = vcombine.low %v1330_v17, %v1337_v19  ;;  %vm281_vm5 = vmor %vm279_vm1, %vm280_vm2 }
  0x12   : > { %1113 = vmatpush3.bf16.msra.mxu1 %v1186_v4  ;;  %1094 = vmatprep.subr.bf16.mxu0 %v1227_v1  ;;  %v1346_v23 = vld [vmem:[%s1320_s21 + $0xc] sm:$0x7]  ;;  %vm1375_vm6 = vmor %vm281_vm5, %vm282_vm3  ;;  %v1381_v58 = vld [vmem:[%s1320_s21 + $0x10] sm:$0x7]  ;;  %s969_s21 = sshll.u32 %s1527_s20, 3 }
  0x13   : > { %1114 = vmatprep.subr.bf16.mxu1 %v1227_v1  ;;  %v253_v26 = vrot.slane %v1330_v17, %v1348_v24  ;;  %v261_v27 = vrot.slane %v1337_v19, %v1348_v24  ;;  %v269_v28 = vrot.slane %v1340_v20, %v1348_v24  ;;  %v277_v29 = vrot.slane %v1346_v23, %v1348_v24  ;;  %vm1386_vm7 = vmor %vm1375_vm6, %vm284_vm4  ;;  %v1212_v45 = vld [vmem:[%s1517_s1 + $0xd0] sm:$0xff]   ;;  %s219_s26 = scalar_lea.vmem %s1519_s3, %s969_s21 }
  0x14   : > { %v467_v32 = vcombine.low %v1340_v20, %v1346_v23  ;;  %v474_v63 = vrot.slane %v466_v31, %v1348_v24 }
  0x15   : > { %1095 = vmatpush3.bf16.msra.mxu0 %v1187_v5  ;;  %v254_v33 = vcombine.high %v253_v26, %v253_v26  ;;  %v262_v34 = vcombine.high %v261_v27, %v261_v27  ;;  %v270_v35 = vcombine.high %v269_v28, %v269_v28  ;;  %v278_v36 = vcombine.high %v277_v29, %v277_v29 }
  0x16   : > { %1115 = vmatpush3.bf16.msra.mxu1 %v1188_v6  ;;  %1096 = vmatprep.subr.bf16.mxu0 %v1227_v1  ;;  %v287_v37 = vshrl.u32 %v253_v26, 16  ;;  %v290_v38 = vshll.u32 %v253_v26, 16  ;;  %v301_v39 = vshrl.u32 %v261_v27, 16  ;;  %v304_v40 = vshll.u32 %v261_v27, 16 }
  0x17   : > { %1116 = vmatprep.subr.bf16.mxu1 %v1227_v1  ;;  %v296_v41 = vshll.u32 %v254_v33, 16  ;;  %v310_v42 = vshll.u32 %v262_v34, 16  ;;  %v315_v43 = vshrl.u32 %v269_v28, 16  ;;  %v318_v44 = vshll.u32 %v269_v28, 16  ;;  %v1206_v33 = vld [vmem:[%s1517_s1 + $0xe8] sm:$0xff]  }
  0x18   : > { %v289_v46 = vrot.slane %v287_v37, 6  ;;  %v292_v47 = vrot.slane %v290_v38, 7  ;;  %v303_v48 = vrot.slane %v301_v39, 6  ;;  %v306_v49 = vrot.slane %v304_v40, 7  ;;  %v1203_v37 = vld [vmem:[%s1517_s1 + $0xb0] sm:$0xff]   ;;  %v1208_v38 = vld [vmem:[%s1517_s1 + $0xe0] sm:$0xff]  }
  0x19   : > { %1097 = vmatpush3.bf16.msra.mxu0 %v1189_v7  ;;  %v298_v50 = vrot.slane %v296_v41, 7  ;;  %v312_v51 = vrot.slane %v310_v42, 7  ;;  %v317_v52 = vrot.slane %v315_v43, 6  ;;  %v320_v53 = vrot.slane %v318_v44, 7  ;;  %v1205_v41 = vld [vmem:[%s1517_s1 + $0xa8] sm:$0xff]   ;;  %v1210_v42 = vld [vmem:[%s1517_s1 + $0xd8] sm:$0xff]  }
  0x1a   : > { %1117 = vmatpush3.bf16.msra.mxu1 %v1190_v8  ;;  %1098 = vmatprep.subr.bf16.mxu0 %v1227_v1  ;;  %v293_v54 = vor.u32 %v292_v47, %v289_v46  ;;  %v307_v55 = vor.u32 %v306_v49, %v303_v48  ;;  %v324_v56 = vshll.u32 %v270_v35, 16  ;;  %v329_v57 = vshrl.u32 %v277_v29, 16  ;;  %v1207_v44 = vld [vmem:[%s1517_s1 + $0xa0] sm:$0xff]   ;;  %v1209_v48 = vld [vmem:[%s1517_s1 + $0x98] sm:$0xff]   ;;  %v1214_v49 = vld [vmem:[%s1517_s1 + $0xc8] sm:$0xff]  }
  0x1b   : > { %1118 = vmatprep.subr.bf16.mxu1 %v1227_v1  ;;  %v321_v60 = vor.u32 %v320_v53, %v317_v52  ;;  %v332_v61 = vshll.u32 %v277_v29, 16  ;;  %v338_v62 = vshll.u32 %v278_v36, 16  ;;  %v481_v4 = vrot.slane %v467_v32, %v1348_v24  ;;  %v1201_v32 = vld [vmem:[%s1517_s1 + $0xb8] sm:$0xff]   ;;  %v1211_v52 = vld [vmem:[%s1517_s1 + $0x90] sm:$0xff]   ;;  %v1216_v53 = vld [vmem:[%s1517_s1 + $0xc0] sm:$0xff]  }
  0x1c   : > { %v294_v0 = vrot.slane %v293_v54, 2  ;;  %v308_v2 = vrot.slane %v307_v55, 2  ;;  %v331_v3 = vrot.slane %v329_v57, 6  ;;  %v326_v6 = vrot.slane %v324_v56, 7  ;;  %v1213_v57 = vld [vmem:[%s1517_s1 + $0x88] sm:$0xff]  }
  0x1d   : > { %1099 = vmatpush3.bf16.msra.mxu0 %v1191_v9  ;;  %v322_v5 = vrot.slane %v321_v60, 2  ;;  %v334_v7 = vrot.slane %v332_v61, 7  ;;  %v482_v15 = vcombine.low %v474_v63, %v481_v4  ;;  %v591_v54 = vcombine.low %v1337_v19, %v1340_v20  ;;  %v1215_v19 = vld [vmem:[%s1517_s1 + $0x80] sm:$0xff]  }
  0x1e   : > { %1119 = vmatpush3.bf16.msra.mxu1 %v1192_v11  ;;  %1100 = vmatprep.subr.bf16.mxu0 %v1227_v1  ;;  %v299_v8 = vsel %vm1386_vm7, %v294_v0, %v298_v50  ;;  %v313_v9 = vsel %vm1386_vm7, %v308_v2, %v312_v51  ;;  %v340_v11 = vrot.slane %v338_v62, 7  ;;  %v592_v55 = vcombine.low %v1346_v23, %v1381_v58 }
  0x1f   : > { %1120 = vmatprep.subr.bf16.mxu1 %v1227_v1  ;;  %v335_v10 = vor.u32 %v334_v7, %v331_v3  ;;  %v359_v14 = vcombine.low %v299_v8, %v313_v9  ;;  %v327_v16 = vsel %vm1386_vm7, %v322_v5, %v326_v6  ;;  %v599_v59 = vrot.slane %v591_v54, %v1348_v24 }
  0x20   : > { %v739_v46 = vcombine.low %v313_v9, %v327_v16  ;;  %v606_v60 = vrot.slane %v592_v55, %v1348_v24  ;;  %v1050_v9 = vld [vmem:[%s1518_s2] ss:$0 sm:$0xff] }
  0x21   : > { %1101 = vmatpush3.bf16.msra.mxu0 %v1193_v12  ;;  %v706_v12 = vrot.slane %v1381_v58, %v1348_v24  ;;  %v336_v17 = vrot.slane %v335_v10, 2  ;;  %v367_v27 = vrot.slane %v359_v14, %v1348_v24 }
  0x22   : > { %1121 = vmatpush3.bf16.msra.mxu1 %v1194_v13  ;;  %1102 = vmatprep.subr.bf16.mxu0 %v1227_v1  ;;  %v1202_v13 = vld [vmem:[%s1517_s1 + $0xf8] sm:$0xff]   ;;  %v747_v50 = vrot.slane %v739_v46, %v1348_v24  ;;  %v607_v20 = vcombine.low %v599_v59, %v606_v60 }
  0x23   : > { %1122 = vmatprep.subr.bf16.mxu1 %v1227_v1  ;;  %v709_v21 = vshrl.u32 %v706_v12, 16  ;;  %v707_v29 = vcombine.high %v706_v12, %v706_v12 }
  0x25   : > { %1103 = vmatpush3.bf16.msra.mxu0 %v1195_v18  ;;  %v341_v18 = vsel %vm1386_vm7, %v336_v17, %v340_v11  ;;  %v718_v36 = vshll.u32 %v707_v29, 16 }
  0x26   : > { %1123 = vmatpush3.bf16.msra.mxu1 %v1196_v22  ;;  %1104 = vmatprep.subr.bf16.mxu0 %v1227_v1  ;;  %v712_v22 = vshll.u32 %v706_v12, 16  ;;  %v360_v26 = vcombine.low %v327_v16, %v341_v18 }
  0x27   : > { %1124 = vmatprep.subr.bf16.mxu1 %v1227_v1  ;;  %v720_v40 = vrot.slane %v718_v36, 7 }
  0x28   : > { %v374_v28 = vrot.slane %v360_v26, %v1348_v24  ;;  %v714_v31 = vrot.slane %v712_v22, 7 }
  0x29   : > { %1105 = vmatpush3.bf16.msra.mxu0 %v1197_v25  ;;  %v1204_v25 = vld [vmem:[%s1517_s1 + $0xf0] sm:$0xff]  }
  0x2a   : > { %1125 = vmatpush3.bf16.msra.mxu1 %v1198_v30  ;;  %1130 = vmatprep.subr.bf16.mxu0 %v1227_v1  ;;  %v711_v30 = vrot.slane %v709_v21, 6  ;;  %v375_v34 = vcombine.low %v367_v27, %v374_v28 }
  0x2b   : > { %1150 = vmatprep.subr.bf16.mxu1 %v1227_v1 }
  0x2c   : > { %1107 = vmatmul.mubr.bf16.vlgmr.msra.gmra.mxu0 %v375_v34  ;;  %v715_v35 = vor.u32 %v714_v31, %v711_v30 }
  0x2d   : > { %1127 = vmatmul.mubr.bf16.vlgmr.msra.gmra.mxu1 %v482_v15  ;;  %1131 = vmatpush3.bf16.msra.mxu0 %v1201_v32 }
  0x2e   : > { %1151 = vmatpush3.bf16.msra.mxu1 %v1202_v13  ;;  %1166 = vmatprep.mubr.msk.bf16.mxu1 %vm1228_vm0, %v1227_v1  ;;  %v716_v39 = vrot.slane %v715_v35, 2 }
  0x2f   : > { %1152 = vmatprep.subr.bf16.mxu1 %v1227_v1  ;;  %1132 = vmatprep.subr.bf16.mxu0 %v1227_v1 }
  0x30   : > { %1146 = vmatprep.mubr.msk.bf16.mxu0 %vm1228_vm0, %v1227_v1  ;;  %v721_v43 = vsel %vm1386_vm7, %v716_v39, %v720_v40 }
  0x31   : > { %1133 = vmatpush3.bf16.msra.mxu0 %v1203_v37  ;;  %v740_v47 = vcombine.low %v341_v18, %v721_v43 }
  0x32   : > { %1153 = vmatpush3.bf16.msra.mxu1 %v1204_v25  ;;  %1134 = vmatprep.subr.bf16.mxu0 %v1227_v1 }
  0x33   : > { %1154 = vmatprep.subr.bf16.mxu1 %v1227_v1  ;;  %v754_v51 = vrot.slane %v740_v47, %v1348_v24 }
  0x35   : > { %1135 = vmatpush3.bf16.msra.mxu0 %v1205_v41  ;;  %v755_v56 = vcombine.low %v747_v50, %v754_v51 }
  0x36   : > { %1155 = vmatpush3.bf16.msra.mxu1 %v1206_v33  ;;  %1136 = vmatprep.subr.bf16.mxu0 %v1227_v1 }
  0x37   : > { %1156 = vmatprep.subr.bf16.mxu1 %v1227_v1 }
  0x39   : > { %1137 = vmatpush3.bf16.msra.mxu0 %v1207_v44 }
  0x3a   : > { %1157 = vmatpush3.bf16.msra.mxu1 %v1208_v38  ;;  %1138 = vmatprep.subr.bf16.mxu0 %v1227_v1 }
  0x3b   : > { %1158 = vmatprep.subr.bf16.mxu1 %v1227_v1 }
  0x3d   : > { %1139 = vmatpush3.bf16.msra.mxu0 %v1209_v48 }
  0x3e   : > { %1159 = vmatpush3.bf16.msra.mxu1 %v1210_v42  ;;  %1140 = vmatprep.subr.bf16.mxu0 %v1227_v1 }
  0x3f   : > { %1160 = vmatprep.subr.bf16.mxu1 %v1227_v1 }
  0x41   : > { %1141 = vmatpush3.bf16.msra.mxu0 %v1211_v52 }
  0x42   : > { %1161 = vmatpush3.bf16.msra.mxu1 %v1212_v45  ;;  %1142 = vmatprep.subr.bf16.mxu0 %v1227_v1 }
  0x43   : > { %1162 = vmatprep.subr.bf16.mxu1 %v1227_v1 }
  0x45   : > { %1143 = vmatpush3.bf16.msra.mxu0 %v1213_v57 }
  0x46   : > { %1163 = vmatpush3.bf16.msra.mxu1 %v1214_v49  ;;  %1144 = vmatprep.subr.bf16.mxu0 %v1227_v1 }
  0x47   : > { %1164 = vmatprep.subr.bf16.mxu1 %v1227_v1 }
  0x49   : > { %1145 = vmatpush3.bf16.msra.mxu0 %v1215_v19 }
  0x4a   : > { %1165 = vmatpush3.bf16.msra.mxu1 %v1216_v53 }
  0x4c   : > { %1147 = vmatmul.mubr.bf16.vlgmr.msra.gmra.mxu0 %v607_v20 }
  0x4d   : > { %1167 = vmatmul.mubr.bf16.vlgmr.msra.gmra.mxu1 %v755_v56 }
  0xec   : > { %v459_v63 = vpop.f32.mrf.mxu0 }
  0xed   : > { %v566_v23 = vpop.f32.mrf.mxu1 }
  0xee   : > { %v1108_v0 = vpop.f32.mrf.mxu0  ;;  %v567_v7 = vadd.f32 %v566_v23, %v459_v63 }
  0xef   : > { %v1128_v58 = vpop.f32.mrf.mxu1 }
  0xf0   : > { %v462_v2 = vpop.f32.mrf.mxu0 }
  0xf1   : > { %v569_v61 = vpop.f32.mrf.mxu1 }
  0xf2   : > { %v1109_v24 = vpop.f32.mrf.mxu0  ;;  %v570_v11 = vadd.f32 %v569_v61, %v462_v2 }
  0xf3   : > { %v1129_v62 = vpop.f32.mrf.mxu1 }
 0x10c   : > { %v691_v1 = vpop.f32.mrf.mxu0 }
 0x10d   : > { %v839_v3 = vpop.f32.mrf.mxu1  ;;  %v698_v8 = vadd.f32 %v691_v1, %v567_v7 }
 0x10e   : > { %v1148_v10 = vpop.f32.mrf.mxu0 }
 0x10f   : > { %v1168_v4 = vpop.f32.mrf.mxu1  ;;  %v846_v12 = vadd.f32 %v839_v3, %v698_v8 }
 0x110   : > { %v694_v13 = vpop.f32.mrf.mxu0 }
 0x111   : > { %v842_v5 = vpop.f32.mrf.mxu1  ;;  %v855_v14 = vadd.f32 %v1050_v9, %v846_v12  ;;  %v699_v15 = vadd.f32 %v694_v13, %v570_v11 }
 0x112   : > { %v1149_v16 = vpop.f32.mrf.mxu0 }
 0x113   : > { %v1169_v6 = vpop.f32.mrf.mxu1  ;;  %858 = vst.msk [vmem:[%s219_s26] sm:$0xff] %vm857_vm8, %v855_v14  ;;  %v847_v17 = vadd.f32 %v842_v5, %v699_v15  ;;  %863 = sbr.rel (%p1051_p5) target bundleno = 282 (0x11a), region = 36 }
 0x115   : > { %v856_v18 = vadd.f32 %v1050_v9, %v847_v17 }
 0x117   : > { %859 = vst.msk [vmem:[%s219_s26 + $0x8] sm:$0xff] %vm857_vm8, %v856_v18 }
 0x118   : > { %vm864_vm9 = vcmask 516096   ;;  %v1230_v21 = vmov 0.0  }
 0x119   : > { %865 = vst.msk [vmem:[%s1520_s4] sm:$0x1] %vm864_vm9, %v1230_v21  ;;  %866 = vst.msk [vmem:[%s1521_s5] sm:$0x1] %vm864_vm9, %v1230_v21 }
 0x11a PF: > { %v868_v22 = vsel %vm857_vm8, %v855_v14, 0.0  ;;  %v869_v25 = vsel %vm857_vm8, %v856_v18, 0.0  ;;  %v881_v26 = vmul.f32 %v855_v14, %v855_v14  ;;  %v882_v28 = vmul.f32 %v856_v18, %v856_v18 }
 0x11b   : > { %v870_v27 = vadd.f32 %v869_v25, %v868_v22  ;;  %vm878_vm10 = vcmask 516096  }
 0x11c   : > { %v883_v29 = vsel %vm857_vm8, %v881_v26, 0.0  ;;  %v884_v31 = vsel %vm857_vm8, %v882_v28, 0.0 }
 0x11d   : > { %v871_v30 = vrot.slane %v870_v27, 4  ;;  %v885_v32 = vadd.f32 %v884_v31, %v883_v29 }
 0x11f   : > { %v872_v33 = vadd.f32 %v871_v30, %v870_v27  ;;  %v886_v34 = vrot.slane %v885_v32, 4 }
 0x120   : > { %v867_v40 = vld [vmem:[%s1520_s4] sm:$0x1] }
 0x121   : > { %v873_v35 = vrot.slane %v872_v33, 2  ;;  %v887_v36 = vadd.f32 %v886_v34, %v885_v32  ;;  %v880_v45 = vld [vmem:[%s1521_s5] sm:$0x1] }
 0x123   : > { %v874_v37 = vadd.f32 %v873_v35, %v872_v33  ;;  %v888_v38 = vrot.slane %v887_v36, 2 }
 0x125   : > { %v875_v39 = vrot.slane %v874_v37, 1  ;;  %v889_v41 = vadd.f32 %v888_v38, %v887_v36 }
 0x127   : > { %v876_v42 = vadd.f32 %v875_v39, %v874_v37  ;;  %v890_v43 = vrot.slane %v889_v41, 1 }
 0x129   : > { %v877_v44 = vadd.f32 %v876_v42, %v867_v40  ;;  %v891_v46 = vadd.f32 %v890_v43, %v889_v41 }
 0x12b   : > { %879 = vst.msk [vmem:[%s1520_s4] sm:$0x1] %vm878_vm10, %v877_v44  ;;  %v892_v47 = vadd.f32 %v891_v46, %v880_v45 }
 0x12d   : > { %893 = vst.msk [vmem:[%s1521_s5] sm:$0x1] %vm878_vm10, %v892_v47 }
 0x12e PF: > { %s16_s18 = sadd.s32 1, %s1225_s18  }
 0x12f   : > { %p13_p6 = scmp.ge.s32.totalorder %s16_s18, 4  }
 0x131   :  { %15 = sbr.rel (!%p13_p6) target bundleno = 1 (0x1), region = 85 }

// kernel: _lambda_.9
= control target key start
LH: loop header
LB: loop body
LE: loop exit
PB: predicated region body
PF: predicated region fallthrough
CT: control target
= control target key end

     0   :  { %12 = vsyncpa [#allocation3], 0  ;;  %s2781_s0 = inlined_call_operand.vmem [shape: f32[32,64], index: 0, kind: input, shape index: {}]   ;;  %s2782_s1 = inlined_call_operand.vmem [shape: f32[1,64], index: 1, kind: input, shape index: {}]   ;;  %s2783_s2 = inlined_call_operand.vmem [shape: f32[1,64], index: 2, kind: input, shape index: {}]   ;;  %s2784_s3 = inlined_call_operand.vmem [shape: f32[1,64], index: 3, kind: input, shape index: {}]   ;;  %s2785_s4 = inlined_call_operand.vmem [shape: f32[1,64], index: 4, kind: input, shape index: {}]   ;;  %s2786_s5 = inlined_call_operand.vmem [shape: bf16[16,64,6], index: 5, kind: input, shape index: {}]   ;;  %s2787_s6 = inlined_call_operand.vmem [shape: f32[1,6], index: 6, kind: input, shape index: {}]   ;;  %s2788_s7 = inlined_call_operand.hbm [shape: f32[2,1,6], index: 7, kind: output, shape index: {}]  }
   0x1   :  { %14 = vsyncpa [#allocation3 + $0x1], 0  ;;  %s2352_s24 = smov 0   ;;  %s2354_s25 = smov 0  }
   0x2   :  { %s2356_s26 = smov 0   ;;  %s2358_s27 = smov 0  }
   0x3 LB: > { %s2373_s28 = sadd.s32 4294967295, %s2307_s27   ;;  %s1654_s29 = sadd.s32 4294967294, %s2307_s27   ;;  %s2307_s27 = sphi %s2358_s27, %s2794_s27   ;;  %s2303_s26 = sphi %s2356_s26, %s2793_s26   ;;  %s2299_s25 = sphi %s2354_s25, %s2792_s25   ;;  %s2295_s24 = sphi %s2352_s24, %s2791_s24  }
   0x4   : > { %s2377_s30 = sadd.s32 1, %s2307_s27   ;;  %s179_s8 = sadd.s32 1, %s2303_s26 }
   0x5   : > { %s176_s9 = ssub.s32 %s2307_s27, %s2377_s30  ;;  %p189_p0 = scmp.ne.s32.totalorder %s2303_s26, %s2299_s25 }
   0x6   : > { %p177_p1 = scmp.eq.s32.totalorder %s176_s9, 0  ;;  %p190_p2 = scmp.eq.s32.totalorder %s2373_s28, 1 }
   0x7   : > { %p195_p3 = scmp.ne.s32.totalorder %s2299_s25, %s2295_s24  ;;  %p196_p4 = scmp.eq.s32.totalorder %s1654_s29, 1 }
   0x8   : > { %s2388_s10 = scalar_select %p177_p1, %s2303_s26, %s179_s8  }
   0x9   : > { %p2390_p5 = por %p190_p2, %p189_p0  ;;  %p2394_p6 = por %p196_p4, %p195_p3 }
   0xa   : > { %p1657_p7 = scmp.ge.s32.totalorder %s2307_s27, 1  ;;  %p241_p8 = scmp.lt.s32.totalorder %s2307_s27, 3 }
   0xc   : > { %p242_p9 = pnand %p1657_p7, %p241_p8 }
   0xd   : > { %s1658_s19 = sshll.u32 (!%p242_p9), %s2373_s28, 1  ;;  %s270_s16 = sand.u32 (!%p242_p9), 1, %s2299_s25  }
   0xe   : > { %245 = sbr.rel (%p242_p9) target bundleno = 702 (0x2be), region = 48  ;;  %p273_p10 = scmp.lt.s32.totalorder (!%p242_p9), %s1658_s19, 3 }
   0xf   : > { %s1861_s17 = sshll.u32 (!%p242_p9), %s2373_s28, 4  ;;  %s271_s18 = scalar_lea.vmem (!%p242_p9), [#allocation2], %s270_s16 }
  0x10   : > { %s1597_s22 = scalar_lea.hbm (!%p242_p9), %s2788_s7, %s1861_s17  ;;  %s2311_s8 = smov (!%p242_p9), [#allocation2]  }
  0x11   : > { %s2251_s9 = sshll.u32 (!%p242_p9), %s2311_s8, 4  ;;  %s2252_s9 = int_to_ptr.vmem [resolvable:$false] %s2251_s9 }
  0x12   : > { %s2253_s28 = scalar_lea.vmem (!%p242_p9), %s2252_s9, 32 }
  0x13   : > { %v2177_v0 = vld [vmem:[%s2786_s5 + $0x18] sm:$0xff]   ;;  %v2309_v1 = vmov 0.0   ;;  %v2179_v3 = vld [vmem:[%s2786_s5 + $0x10] sm:$0xff]   ;;  %vm2310_vm0 = vmmov 0   ;;  %v2181_v5 = vld [vmem:[%s2786_s5 + $0x8] sm:$0xff]   ;;  %v291_v16 = vlaneseq  ;;  %s2796_s19 = smov (!%p273_p10, %s1658_s19), 3 }
  0x14   : > { %1956 = vmatprep.subr.bf16.mxu1 %v2309_v1  ;;  %1944 = vmatprep.subr.bf16.mxu0 %v2309_v1  ;;  %v2178_v2 = vld [vmem:[%s2786_s5 + $0x38] sm:$0xff]   ;;  %v2180_v4 = vld [vmem:[%s2786_s5 + $0x30] sm:$0xff]   ;;  %v2182_v6 = vld [vmem:[%s2786_s5 + $0x28] sm:$0xff]   ;;  %s1659_s20 = sshll.u32 %s2796_s19, 3  ;;  %vm366_vm1 = vcmask 523264   ;;  %vm1571_vm2 = vcmask 40960  }
  0x15   : > { %1957 = vmatpush3.bf16.msra.mxu1 %v2177_v0  ;;  %1964 = vmatprep.mubr.msk.bf16.mxu1 %vm2310_vm0, %v2309_v1  ;;  %v281_v7 = vld [vmem:[%s2782_s1] sm:$0x1]  ;;  %v292_v18 = vshrl.u32 %v291_v16, 7  ;;  %s276_s23 = scalar_lea.vmem %s2781_s0, %s1659_s20  ;;  %v2185_v38 = vld [vmem:[%s2786_s5 + $0x78] sm:$0xff]   ;;  %v2187_v42 = vld [vmem:[%s2786_s5 + $0x70] sm:$0xff]   ;;  %s1599_s19 = sshll.u32 %s271_s18, 4  ;;  %s1600_s19 = int_to_ptr.vmem [resolvable:$true] %s1599_s19 }
  0x16   : > { %1945 = vmatpush3.bf16.msra.mxu0 %v2178_v2  ;;  %1958 = vmatprep.subr.bf16.mxu1 %v2309_v1  ;;  %v282_v8 = vld [vmem:[%s2783_s2] sm:$0x1]  ;;  %v285_v9 = vmul.f32 0.03125, %v281_v7  ;;  %v280_v23 = vld [vmem:[%s276_s23 + $0x8] sm:$0xff]  ;;  %v2186_v40 = vld [vmem:[%s2786_s5 + $0x58] sm:$0xff]   ;;  %s2247_s29 = scalar_lea.vmem %s1600_s19, 16  ;;  %p2254_p0 = scmp.lt.s32.totalorder %s1600_s19, %s2252_s9 }
  0x17   : > { %1946 = vmatprep.subr.bf16.mxu0 %v2309_v1  ;;  %1952 = vmatprep.mubr.msk.bf16.mxu0 %vm2310_vm0, %v2309_v1  ;;  %v286_v10 = vmul.f32 0.03125, %v282_v8  ;;  %v2183_v11 = vld [vmem:[%s2786_s5] sm:$0xff]   ;;  %v293_v19 = vsub.s32 0, %v292_v18  ;;  %v2188_v43 = vld [vmem:[%s2786_s5 + $0x50] sm:$0xff]   ;;  %v2189_v44 = vld [vmem:[%s2786_s5 + $0x68] sm:$0xff]   ;;  %p2248_p11 = scmp.ne.s32.totalorder %s1600_s19, %s2247_s29  ;;  %p2255_p1 = scmp.lt.s32.totalorder %s2253_s28, %s2247_s29 }
  0x18   : > { %v2184_v12 = vld [vmem:[%s2786_s5 + $0x20] sm:$0xff]   ;;  %v287_v13 = vmul.f32 %v285_v9, %v285_v9  ;;  %v2190_v45 = vld [vmem:[%s2786_s5 + $0x48] sm:$0xff]   ;;  %v2193_v49 = vld [vmem:[%s2786_s5 + $0xb8] sm:$0xff]  }
  0x19   : > { %1959 = vmatpush3.bf16.msra.mxu1 %v2179_v3  ;;  %v283_v20 = vld [vmem:[%s2784_s3] sm:$0x1]  ;;  %v294_v22 = vrot.slane %v285_v9, %v293_v19  ;;  %v2194_v51 = vld [vmem:[%s2786_s5 + $0x98] sm:$0xff]   ;;  %v2195_v52 = vld [vmem:[%s2786_s5 + $0xb0] sm:$0xff]   ;;  %p2249_p12 = pnand %p2248_p11, %p2390_p5  ;;  %p2256_p2 = por %p2255_p1, %p2254_p0 }
  0x1a   : > { %1947 = vmatpush3.bf16.msra.mxu0 %v2180_v4  ;;  %1960 = vmatprep.subr.bf16.mxu1 %v2309_v1  ;;  %v288_v14 = vsub.f32 %v286_v10, %v287_v13  ;;  %v279_v21 = vld [vmem:[%s276_s23] sm:$0xff]  ;;  %v2196_v53 = vld [vmem:[%s2786_s5 + $0x90] sm:$0xff]   ;;  %v2197_v54 = vld [vmem:[%s2786_s5 + $0xa8] sm:$0xff]   ;;  %s1587_s23 = scalar_lea.sflag [#allocation3], %s270_s16 }
  0x1b   : > { %1948 = vmatprep.subr.bf16.mxu0 %v2309_v1  ;;  %v296_v25 = vsub.f32 %v279_v21, %v294_v22  ;;  %v297_v26 = vsub.f32 %v280_v23, %v294_v22  ;;  %v1660_v29 = vld [vmem:[%s2785_s4] ss:$0 sm:$0xff]  ;;  %v2198_v55 = vld [vmem:[%s2786_s5 + $0x88] sm:$0xff]   ;;  %v2201_v59 = vld [vmem:[%s2786_s5 + $0xf8] sm:$0xff]   ;;  %p2250_p13 = pneg %p2249_p12 }
  0x1c   : > { %v289_v15 = vmax.f32 %v288_v14, 0.0  ;;  %v2191_v46 = vld [vmem:[%s2786_s5 + $0x60] sm:$0xff]   ;;  %v2202_v61 = vld [vmem:[%s2786_s5 + $0xd8] sm:$0xff]   ;;  %v2203_v62 = vld [vmem:[%s2786_s5 + $0xf0] sm:$0xff]  }
  0x1d   : > { %1961 = vmatpush3.bf16.msra.mxu1 %v2181_v5  ;;  %v2192_v47 = vld [vmem:[%s2786_s5 + $0x40] sm:$0xff]   ;;  %v2204_v63 = vld [vmem:[%s2786_s5 + $0xd0] sm:$0xff]   ;;  %v2205_v0 = vld [vmem:[%s2786_s5 + $0xe8] sm:$0xff]   ;;  %p2257_p3 = pnand %p2256_p2, %p2250_p13 }
  0x1e   : > { %1949 = vmatpush3.bf16.msra.mxu0 %v2182_v6  ;;  %1962 = vmatprep.subr.bf16.mxu1 %v2309_v1  ;;  %v298_v17 = vadd.f32 1e-05, %v289_v15  ;;  %v2199_v56 = vld [vmem:[%s2786_s5 + $0xa0] sm:$0xff]   ;;  %v2206_v2 = vld [vmem:[%s2786_s5 + $0xc8] sm:$0xff]   ;;  %v2209_v6 = vld [vmem:[%s2786_s5 + $0x138] sm:$0xff]  }
  0x1f   : > { %1950 = vmatprep.subr.bf16.mxu0 %v2309_v1  ;;  %v2200_v57 = vld [vmem:[%s2786_s5 + $0x80] sm:$0xff]   ;;  %v2210_v8 = vld [vmem:[%s2786_s5 + $0x118] sm:$0xff]   ;;  %v2211_v9 = vld [vmem:[%s2786_s5 + $0x130] sm:$0xff]  }
  0x20   : > { %2241 = vrsqrt.f32 %v298_v17  ;;  %v2207_v3 = vld [vmem:[%s2786_s5 + $0xe0] sm:$0xff]   ;;  %v2212_v10 = vld [vmem:[%s2786_s5 + $0x110] sm:$0xff]   ;;  %v2217_v16 = vld [vmem:[%s2786_s5 + $0x178] sm:$0xff]  }
  0x21   : > { %1963 = vmatpush3.bf16.msra.mxu1 %v2183_v11  ;;  %v2208_v4 = vld [vmem:[%s2786_s5 + $0xc0] sm:$0xff]   ;;  %v2213_v11 = vld [vmem:[%s2786_s5 + $0x128] sm:$0xff]   ;;  %v2218_v18 = vld [vmem:[%s2786_s5 + $0x158] sm:$0xff]  }
  0x22   : > { %1951 = vmatpush3.bf16.msra.mxu0 %v2184_v12  ;;  %1980 = vmatprep.subr.bf16.mxu1 %v2309_v1  ;;  %v2214_v12 = vld [vmem:[%s2786_s5 + $0x108] sm:$0xff]   ;;  %v2215_v13 = vld [vmem:[%s2786_s5 + $0x120] sm:$0xff]  }
  0x23   : > { %1968 = vmatprep.subr.bf16.mxu0 %v2309_v1  ;;  %v2216_v14 = vld [vmem:[%s2786_s5 + $0x100] sm:$0xff]   ;;  %v2221_v21 = vld [vmem:[%s2786_s5 + $0x168] sm:$0xff]  }
  0x24   : > { %v2222_v22 = vld [vmem:[%s2786_s5 + $0x148] sm:$0xff]   ;;  %v2223_v23 = vld [vmem:[%s2786_s5 + $0x160] sm:$0xff]  }
  0x2d   : > { %v2242_v24 = vpop.eup %2241 }
  0x2e   : > { %v300_v27 = vmul.f32 %v2242_v24, %v283_v20  ;;  %v2220_v20 = vld [vmem:[%s2786_s5 + $0x150] sm:$0xff]   ;;  %v2224_v24 = vld [vmem:[%s2786_s5 + $0x140] sm:$0xff]  }
  0x30   : > { %v305_v28 = vrot.slane %v300_v27, %v293_v19  ;;  %v2219_v19 = vld [vmem:[%s2786_s5 + $0x170] sm:$0xff]  }
  0x32   : > { %v307_v30 = vmul.f32 %v305_v28, %v296_v25  ;;  %v308_v31 = vmul.f32 %v305_v28, %v297_v26  ;;  %v2225_v26 = vld [vmem:[%s2786_s5 + $0x1b8] sm:$0xff]  }
  0x33   : > { %v2226_v28 = vld [vmem:[%s2786_s5 + $0x198] sm:$0xff]  }
  0x34   : > { %v315_v32 = vadd.f32 %v1660_v29, %v307_v30  ;;  %v316_v33 = vadd.f32 %v1660_v29, %v308_v31  ;;  %v2227_v29 = vld [vmem:[%s2786_s5 + $0x1b0] sm:$0xff]   ;;  %v2229_v31 = vld [vmem:[%s2786_s5 + $0x1a8] sm:$0xff]  }
  0x35   : > { %v2228_v30 = vld [vmem:[%s2786_s5 + $0x190] sm:$0xff]  }
  0x36   : > { %v317_v34 = vmul.f32 0.2, %v315_v32  ;;  %v318_v35 = vmul.f32 0.2, %v316_v33 }
  0x38   : > { %v319_v36 = vmax.f32 %v315_v32, %v317_v34  ;;  %v320_v37 = vmax.f32 %v316_v33, %v318_v35  ;;  %v2230_v32 = vld [vmem:[%s2786_s5 + $0x188] sm:$0xff]   ;;  %v2231_v33 = vld [vmem:[%s2786_s5 + $0x1a0] sm:$0xff]  }
  0x39   : > { %v2232_v34 = vld [vmem:[%s2786_s5 + $0x180] sm:$0xff]  }
  0x3a   : > { %v2457_v39 = vpack.c.bf16 %v320_v37, %v319_v36  ;;  %v2233_v36 = vld [vmem:[%s2786_s5 + $0x1f8] sm:$0xff]  }
  0x3c   : > { %1965 = vmatmul.mubr.msk.bf16.vlgmr.msra.gmra.mxu1 %vm366_vm1, %v2457_v39  ;;  %v2465_v41 = vshrl.u32 %v2457_v39, 16  ;;  %v486_v50 = vrot.slane %v2457_v39, 1  ;;  %v642_v60 = vrot.slane %v2457_v39, 2  ;;  %v798_v7 = vrot.slane %v2457_v39, 3 }
  0x3d   : > { %1981 = vmatpush3.bf16.msra.mxu1 %v2185_v38  ;;  %1988 = vmatprep.mubr.msk.bf16.mxu1 %vm2310_vm0, %v2309_v1  ;;  %v954_v17 = vrot.slane %v2457_v39, 4  ;;  %v1110_v27 = vrot.slane %v2457_v39, 5  ;;  %v1266_v37 = vrot.slane %v2457_v39, 6  ;;  %v2234_v38 = vld [vmem:[%s2786_s5 + $0x1d8] sm:$0xff]  }
  0x3e   : > { %1953 = vmatmul.mubr.msk.bf16.vlgmr.msra.gmra.mxu0 %vm366_vm1, %v2465_v41  ;;  %1982 = vmatprep.subr.bf16.mxu1 %v2309_v1  ;;  %v564_v48 = vrot.slane %v2465_v41, 1  ;;  %v720_v58 = vrot.slane %v2465_v41, 2  ;;  %v876_v5 = vrot.slane %v2465_v41, 3  ;;  %v1032_v15 = vrot.slane %v2465_v41, 4 }
  0x3f   : > { %1969 = vmatpush3.bf16.msra.mxu0 %v2186_v40  ;;  %1976 = vmatprep.mubr.msk.bf16.mxu0 %vm2310_vm0, %v2309_v1  ;;  %v1188_v25 = vrot.slane %v2465_v41, 5  ;;  %v1344_v35 = vrot.slane %v2465_v41, 6  ;;  %v2235_v40 = vld [vmem:[%s2786_s5 + $0x1f0] sm:$0xff]  }
  0x40   : > { %1970 = vmatprep.subr.bf16.mxu0 %v2309_v1 }
  0x41   : > { %1983 = vmatpush3.bf16.msra.mxu1 %v2187_v42  ;;  %v2236_v42 = vld [vmem:[%s2786_s5 + $0x1d0] sm:$0xff]  }
  0x42   : > { %1984 = vmatprep.subr.bf16.mxu1 %v2309_v1 }
  0x43   : > { %1971 = vmatpush3.bf16.msra.mxu0 %v2188_v43  ;;  %v2237_v43 = vld [vmem:[%s2786_s5 + $0x1e8] sm:$0xff]  }
  0x44   : > { %1972 = vmatprep.subr.bf16.mxu0 %v2309_v1 }
  0x45   : > { %1985 = vmatpush3.bf16.msra.mxu1 %v2189_v44  ;;  %v2238_v44 = vld [vmem:[%s2786_s5 + $0x1c8] sm:$0xff]  }
  0x46   : > { %1986 = vmatprep.subr.bf16.mxu1 %v2309_v1 }
  0x47   : > { %1973 = vmatpush3.bf16.msra.mxu0 %v2190_v45  ;;  %v2239_v45 = vld [vmem:[%s2786_s5 + $0x1e0] sm:$0xff]  }
  0x48   : > { %1974 = vmatprep.subr.bf16.mxu0 %v2309_v1 }
  0x49   : > { %1987 = vmatpush3.bf16.msra.mxu1 %v2191_v46  ;;  %v2240_v46 = vld [vmem:[%s2786_s5 + $0x1c0] sm:$0xff]  }
  0x4a   : > { %2004 = vmatprep.subr.bf16.mxu1 %v2309_v1 }
  0x4b   : > { %1975 = vmatpush3.bf16.msra.mxu0 %v2192_v47  ;;  %v1500_v47 = vrot.slane %v2465_v41, 7 }
  0x4c   : > { %1989 = vmatmul.mubr.msk.bf16.vlgmr.msra.gmra.mxu1 %vm366_vm1, %v564_v48  ;;  %1992 = vmatprep.subr.bf16.mxu0 %v2309_v1  ;;  %v1422_v48 = vrot.slane %v2457_v39, 7 }
  0x4d   : > { %2005 = vmatpush3.bf16.msra.mxu1 %v2193_v49  ;;  %2012 = vmatprep.mubr.msk.bf16.mxu1 %vm2310_vm0, %v2309_v1 }
  0x4e   : > { %1977 = vmatmul.mubr.msk.bf16.vlgmr.msra.gmra.mxu0 %vm366_vm1, %v486_v50  ;;  %2006 = vmatprep.subr.bf16.mxu1 %v2309_v1 }
  0x4f   : > { %1993 = vmatpush3.bf16.msra.mxu0 %v2194_v51  ;;  %2000 = vmatprep.mubr.msk.bf16.mxu0 %vm2310_vm0, %v2309_v1 }
  0x50   : > { %1994 = vmatprep.subr.bf16.mxu0 %v2309_v1 }
  0x51   : > { %2007 = vmatpush3.bf16.msra.mxu1 %v2195_v52 }
  0x52   : > { %2008 = vmatprep.subr.bf16.mxu1 %v2309_v1 }
  0x53   : > { %1995 = vmatpush3.bf16.msra.mxu0 %v2196_v53 }
  0x54   : > { %1996 = vmatprep.subr.bf16.mxu0 %v2309_v1 }
  0x55   : > { %2009 = vmatpush3.bf16.msra.mxu1 %v2197_v54 }
  0x56   : > { %2010 = vmatprep.subr.bf16.mxu1 %v2309_v1 }
  0x57   : > { %1997 = vmatpush3.bf16.msra.mxu0 %v2198_v55 }
  0x58   : > { %1998 = vmatprep.subr.bf16.mxu0 %v2309_v1 }
  0x59   : > { %2011 = vmatpush3.bf16.msra.mxu1 %v2199_v56 }
  0x5a   : > { %2028 = vmatprep.subr.bf16.mxu1 %v2309_v1 }
  0x5b   : > { %1999 = vmatpush3.bf16.msra.mxu0 %v2200_v57 }
  0x5c   : > { %2013 = vmatmul.mubr.msk.bf16.vlgmr.msra.gmra.mxu1 %vm366_vm1, %v720_v58  ;;  %2016 = vmatprep.subr.bf16.mxu0 %v2309_v1 }
  0x5d   : > { %2029 = vmatpush3.bf16.msra.mxu1 %v2201_v59  ;;  %2036 = vmatprep.mubr.msk.bf16.mxu1 %vm2310_vm0, %v2309_v1 }
  0x5e   : > { %2001 = vmatmul.mubr.msk.bf16.vlgmr.msra.gmra.mxu0 %vm366_vm1, %v642_v60  ;;  %2030 = vmatprep.subr.bf16.mxu1 %v2309_v1 }
  0x5f   : > { %2017 = vmatpush3.bf16.msra.mxu0 %v2202_v61  ;;  %2024 = vmatprep.mubr.msk.bf16.mxu0 %vm2310_vm0, %v2309_v1 }
  0x60   : > { %2018 = vmatprep.subr.bf16.mxu0 %v2309_v1 }
  0x61   : > { %2031 = vmatpush3.bf16.msra.mxu1 %v2203_v62 }
  0x62   : > { %2032 = vmatprep.subr.bf16.mxu1 %v2309_v1 }
  0x63   : > { %2019 = vmatpush3.bf16.msra.mxu0 %v2204_v63 }
  0x64   : > { %2020 = vmatprep.subr.bf16.mxu0 %v2309_v1 }
  0x65   : > { %2033 = vmatpush3.bf16.msra.mxu1 %v2205_v0 }
  0x66   : > { %2034 = vmatprep.subr.bf16.mxu1 %v2309_v1 }
  0x67   : > { %2021 = vmatpush3.bf16.msra.mxu0 %v2206_v2 }
  0x68   : > { %2022 = vmatprep.subr.bf16.mxu0 %v2309_v1 }
  0x69   : > { %2035 = vmatpush3.bf16.msra.mxu1 %v2207_v3 }
  0x6a   : > { %2052 = vmatprep.subr.bf16.mxu1 %v2309_v1 }
  0x6b   : > { %2023 = vmatpush3.bf16.msra.mxu0 %v2208_v4 }
  0x6c   : > { %2037 = vmatmul.mubr.msk.bf16.vlgmr.msra.gmra.mxu1 %vm366_vm1, %v876_v5  ;;  %2040 = vmatprep.subr.bf16.mxu0 %v2309_v1 }
  0x6d   : > { %2053 = vmatpush3.bf16.msra.mxu1 %v2209_v6  ;;  %2060 = vmatprep.mubr.msk.bf16.mxu1 %vm2310_vm0, %v2309_v1 }
  0x6e   : > { %2025 = vmatmul.mubr.msk.bf16.vlgmr.msra.gmra.mxu0 %vm366_vm1, %v798_v7  ;;  %2054 = vmatprep.subr.bf16.mxu1 %v2309_v1 }
  0x6f   : > { %2041 = vmatpush3.bf16.msra.mxu0 %v2210_v8  ;;  %2048 = vmatprep.mubr.msk.bf16.mxu0 %vm2310_vm0, %v2309_v1 }
  0x70   : > { %2042 = vmatprep.subr.bf16.mxu0 %v2309_v1 }
  0x71   : > { %2055 = vmatpush3.bf16.msra.mxu1 %v2211_v9 }
  0x72   : > { %2056 = vmatprep.subr.bf16.mxu1 %v2309_v1 }
  0x73   : > { %2043 = vmatpush3.bf16.msra.mxu0 %v2212_v10 }
  0x74   : > { %2044 = vmatprep.subr.bf16.mxu0 %v2309_v1 }
  0x75   : > { %2057 = vmatpush3.bf16.msra.mxu1 %v2213_v11 }
  0x76   : > { %2058 = vmatprep.subr.bf16.mxu1 %v2309_v1 }
  0x77   : > { %2045 = vmatpush3.bf16.msra.mxu0 %v2214_v12 }
  0x78   : > { %2046 = vmatprep.subr.bf16.mxu0 %v2309_v1 }
  0x79   : > { %2059 = vmatpush3.bf16.msra.mxu1 %v2215_v13 }
  0x7a   : > { %2076 = vmatprep.subr.bf16.mxu1 %v2309_v1 }
  0x7b   : > { %2047 = vmatpush3.bf16.msra.mxu0 %v2216_v14 }
  0x7c   : > { %2061 = vmatmul.mubr.msk.bf16.vlgmr.msra.gmra.mxu1 %vm366_vm1, %v1032_v15  ;;  %2064 = vmatprep.subr.bf16.mxu0 %v2309_v1 }
  0x7d   : > { %2077 = vmatpush3.bf16.msra.mxu1 %v2217_v16  ;;  %2084 = vmatprep.mubr.msk.bf16.mxu1 %vm2310_vm0, %v2309_v1 }
  0x7e   : > { %2049 = vmatmul.mubr.msk.bf16.vlgmr.msra.gmra.mxu0 %vm366_vm1, %v954_v17  ;;  %2078 = vmatprep.subr.bf16.mxu1 %v2309_v1 }
  0x7f   : > { %2065 = vmatpush3.bf16.msra.mxu0 %v2218_v18  ;;  %2072 = vmatprep.mubr.msk.bf16.mxu0 %vm2310_vm0, %v2309_v1 }
  0x80   : > { %2066 = vmatprep.subr.bf16.mxu0 %v2309_v1 }
  0x81   : > { %2079 = vmatpush3.bf16.msra.mxu1 %v2219_v19 }
  0x82   : > { %2080 = vmatprep.subr.bf16.mxu1 %v2309_v1 }
  0x83   : > { %2067 = vmatpush3.bf16.msra.mxu0 %v2220_v20 }
  0x84   : > { %2068 = vmatprep.subr.bf16.mxu0 %v2309_v1 }
  0x85   : > { %2081 = vmatpush3.bf16.msra.mxu1 %v2221_v21 }
  0x86   : > { %2082 = vmatprep.subr.bf16.mxu1 %v2309_v1 }
  0x87   : > { %2069 = vmatpush3.bf16.msra.mxu0 %v2222_v22 }
  0x88   : > { %2070 = vmatprep.subr.bf16.mxu0 %v2309_v1 }
  0x89   : > { %2083 = vmatpush3.bf16.msra.mxu1 %v2223_v23 }
  0x8a   : > { %2100 = vmatprep.subr.bf16.mxu1 %v2309_v1 }
  0x8b   : > { %2071 = vmatpush3.bf16.msra.mxu0 %v2224_v24 }
  0x8c   : > { %2085 = vmatmul.mubr.msk.bf16.vlgmr.msra.gmra.mxu1 %vm366_vm1, %v1188_v25  ;;  %2088 = vmatprep.subr.bf16.mxu0 %v2309_v1 }
  0x8d   : > { %2101 = vmatpush3.bf16.msra.mxu1 %v2225_v26  ;;  %2108 = vmatprep.mubr.msk.bf16.mxu1 %vm2310_vm0, %v2309_v1 }
  0x8e   : > { %2073 = vmatmul.mubr.msk.bf16.vlgmr.msra.gmra.mxu0 %vm366_vm1, %v1110_v27  ;;  %2102 = vmatprep.subr.bf16.mxu1 %v2309_v1 }
  0x8f   : > { %2089 = vmatpush3.bf16.msra.mxu0 %v2226_v28  ;;  %2096 = vmatprep.mubr.msk.bf16.mxu0 %vm2310_vm0, %v2309_v1 }
  0x90   : > { %2090 = vmatprep.subr.bf16.mxu0 %v2309_v1 }
  0x91   : > { %2103 = vmatpush3.bf16.msra.mxu1 %v2227_v29 }
  0x92   : > { %2104 = vmatprep.subr.bf16.mxu1 %v2309_v1 }
  0x93   : > { %2091 = vmatpush3.bf16.msra.mxu0 %v2228_v30 }
  0x94   : > { %2092 = vmatprep.subr.bf16.mxu0 %v2309_v1 }
  0x95   : > { %2105 = vmatpush3.bf16.msra.mxu1 %v2229_v31 }
  0x96   : > { %2106 = vmatprep.subr.bf16.mxu1 %v2309_v1 }
  0x97   : > { %2093 = vmatpush3.bf16.msra.mxu0 %v2230_v32 }
  0x98   : > { %2094 = vmatprep.subr.bf16.mxu0 %v2309_v1 }
  0x99   : > { %2107 = vmatpush3.bf16.msra.mxu1 %v2231_v33 }
  0x9a   : > { %2124 = vmatprep.subr.bf16.mxu1 %v2309_v1 }
  0x9b   : > { %2095 = vmatpush3.bf16.msra.mxu0 %v2232_v34 }
  0x9c   : > { %2109 = vmatmul.mubr.msk.bf16.vlgmr.msra.gmra.mxu1 %vm366_vm1, %v1344_v35  ;;  %2112 = vmatprep.subr.bf16.mxu0 %v2309_v1 }
  0x9d   : > { %2125 = vmatpush3.bf16.msra.mxu1 %v2233_v36  ;;  %2132 = vmatprep.mubr.msk.bf16.mxu1 %vm2310_vm0, %v2309_v1 }
  0x9e   : > { %2097 = vmatmul.mubr.msk.bf16.vlgmr.msra.gmra.mxu0 %vm366_vm1, %v1266_v37  ;;  %2126 = vmatprep.subr.bf16.mxu1 %v2309_v1 }
  0x9f   : > { %2113 = vmatpush3.bf16.msra.mxu0 %v2234_v38  ;;  %2120 = vmatprep.mubr.msk.bf16.mxu0 %vm2310_vm0, %v2309_v1 }
  0xa0   : > { %2114 = vmatprep.subr.bf16.mxu0 %v2309_v1 }
  0xa1   : > { %2127 = vmatpush3.bf16.msra.mxu1 %v2235_v40 }
  0xa2   : > { %2128 = vmatprep.subr.bf16.mxu1 %v2309_v1 }
  0xa3   : > { %2115 = vmatpush3.bf16.msra.mxu0 %v2236_v42 }
  0xa4   : > { %2116 = vmatprep.subr.bf16.mxu0 %v2309_v1 }
  0xa5   : > { %2129 = vmatpush3.bf16.msra.mxu1 %v2237_v43 }
  0xa6   : > { %2130 = vmatprep.subr.bf16.mxu1 %v2309_v1 }
  0xa7   : > { %2117 = vmatpush3.bf16.msra.mxu0 %v2238_v44 }
  0xa8   : > { %2118 = vmatprep.subr.bf16.mxu0 %v2309_v1 }
  0xa9   : > { %2131 = vmatpush3.bf16.msra.mxu1 %v2239_v45 }
  0xab   : > { %2119 = vmatpush3.bf16.msra.mxu0 %v2240_v46 }
  0xac   : > { %2133 = vmatmul.mubr.msk.bf16.vlgmr.msra.gmra.mxu1 %vm366_vm1, %v1500_v47 }
  0xae   : > { %2121 = vmatmul.mubr.msk.bf16.vlgmr.msra.gmra.mxu0 %vm366_vm1, %v1422_v48 }
  0xfc   : > { %v470_v49 = vpop.f32.mrf.mxu1 }
  0xfe   : > { %v404_v50 = vpop.f32.mrf.mxu0  ;;  %v1966_v51 = vpop.f32.mrf.mxu1 }
  0xff   : > { %v471_v52 = vadd.f32 %v470_v49, %v404_v50 }
 0x100   : > { %v1954_v53 = vpop.f32.mrf.mxu0  ;;  %v473_v54 = vpop.f32.mrf.mxu1 }
 0x102   : > { %v407_v55 = vpop.f32.mrf.mxu0  ;;  %v1967_v56 = vpop.f32.mrf.mxu1 }
 0x104   : > { %v1955_v57 = vpop.f32.mrf.mxu0 }
 0x10c   : > { %v626_v1 = vpop.f32.mrf.mxu1 }
 0x10e   : > { %v548_v58 = vpop.f32.mrf.mxu0  ;;  %v1990_v41 = vpop.f32.mrf.mxu1 }
 0x10f   : > { %v554_v59 = vadd.f32 %v548_v58, %v471_v52  ;;  %v1569_v41 = vld [vmem:[%s2787_s6] sm:$0x1] }
 0x110   : > { %v1978_v60 = vpop.f32.mrf.mxu0  ;;  %v629_v39 = vpop.f32.mrf.mxu1 }
 0x111   : > { %v632_v61 = vadd.f32 %v626_v1, %v554_v59 }
 0x112   : > { %v551_v62 = vpop.f32.mrf.mxu0  ;;  %v1991_v63 = vpop.f32.mrf.mxu1 }
 0x114   : > { %v1979_v0 = vpop.f32.mrf.mxu0 }
 0x11c   : > { %v782_v2 = vpop.f32.mrf.mxu1 }
 0x11e   : > { %v704_v3 = vpop.f32.mrf.mxu0  ;;  %v2014_v4 = vpop.f32.mrf.mxu1 }
 0x11f   : > { %v710_v5 = vadd.f32 %v704_v3, %v632_v61 }
 0x120   : > { %v2002_v6 = vpop.f32.mrf.mxu0  ;;  %v785_v7 = vpop.f32.mrf.mxu1 }
 0x121   : > { %v788_v8 = vadd.f32 %v782_v2, %v710_v5 }
 0x122   : > { %v707_v9 = vpop.f32.mrf.mxu0  ;;  %v2015_v10 = vpop.f32.mrf.mxu1 }
 0x124   : > { %v2003_v11 = vpop.f32.mrf.mxu0 }
 0x12c   : > { %v938_v12 = vpop.f32.mrf.mxu1 }
 0x12e   : > { %v860_v13 = vpop.f32.mrf.mxu0  ;;  %v2038_v14 = vpop.f32.mrf.mxu1 }
 0x12f   : > { %v866_v36 = vadd.f32 %v860_v13, %v788_v8 }
 0x130   : > { %v2026_v15 = vpop.f32.mrf.mxu0  ;;  %v941_v16 = vpop.f32.mrf.mxu1 }
 0x131   : > { %v944_v37 = vadd.f32 %v938_v12, %v866_v36 }
 0x132   : > { %v863_v17 = vpop.f32.mrf.mxu0  ;;  %v2039_v18 = vpop.f32.mrf.mxu1 }
 0x134   : > { %v2027_v19 = vpop.f32.mrf.mxu0 }
 0x13c   : > { %v1094_v20 = vpop.f32.mrf.mxu1 }
 0x13e   : > { %v1016_v21 = vpop.f32.mrf.mxu0  ;;  %v2062_v22 = vpop.f32.mrf.mxu1 }
 0x13f   : > { %v1022_v40 = vadd.f32 %v1016_v21, %v944_v37 }
 0x140   : > { %v2050_v23 = vpop.f32.mrf.mxu0  ;;  %v1097_v24 = vpop.f32.mrf.mxu1 }
 0x141   : > { %v1100_v46 = vadd.f32 %v1094_v20, %v1022_v40 }
 0x142   : > { %v1019_v25 = vpop.f32.mrf.mxu0  ;;  %v2063_v26 = vpop.f32.mrf.mxu1 }
 0x144   : > { %v2051_v27 = vpop.f32.mrf.mxu0 }
 0x14c   : > { %v1250_v28 = vpop.f32.mrf.mxu1 }
 0x14e   : > { %v1172_v29 = vpop.f32.mrf.mxu0  ;;  %v2086_v30 = vpop.f32.mrf.mxu1 }
 0x14f   : > { %v1178_v49 = vadd.f32 %v1172_v29, %v1100_v46 }
 0x150   : > { %v2074_v31 = vpop.f32.mrf.mxu0  ;;  %v1253_v32 = vpop.f32.mrf.mxu1 }
 0x151   : > { %v1256_v51 = vadd.f32 %v1250_v28, %v1178_v49 }
 0x152   : > { %v1175_v33 = vpop.f32.mrf.mxu0  ;;  %v2087_v34 = vpop.f32.mrf.mxu1 }
 0x154   : > { %v2075_v35 = vpop.f32.mrf.mxu0 }
 0x15c   : > { %v1406_v38 = vpop.f32.mrf.mxu1 }
 0x15e   : > { %v1328_v42 = vpop.f32.mrf.mxu0  ;;  %v2110_v43 = vpop.f32.mrf.mxu1 }
 0x15f   : > { %v1334_v52 = vadd.f32 %v1328_v42, %v1256_v51 }
 0x160   : > { %v2098_v44 = vpop.f32.mrf.mxu0  ;;  %v1409_v45 = vpop.f32.mrf.mxu1 }
 0x161   : > { %v1412_v54 = vadd.f32 %v1406_v38, %v1334_v52 }
 0x162   : > { %v1331_v47 = vpop.f32.mrf.mxu0  ;;  %v2111_v48 = vpop.f32.mrf.mxu1 }
 0x164   : > { %v2099_v50 = vpop.f32.mrf.mxu0 }
 0x16c   : > { %v1562_v53 = vpop.f32.mrf.mxu1 }
 0x16e   : > { %v1484_v55 = vpop.f32.mrf.mxu0  ;;  %v2134_v56 = vpop.f32.mrf.mxu1 }
 0x16f   : > { %v1490_v57 = vadd.f32 %v1484_v55, %v1412_v54 }
 0x170   : > { %v2122_v1 = vpop.f32.mrf.mxu0  ;;  %v1565_v58 = vpop.f32.mrf.mxu1 }
 0x171   : > { %v1568_v59 = vadd.f32 %v1562_v53, %v1490_v57 }
 0x172   : > { %v1487_v60 = vpop.f32.mrf.mxu0  ;;  %v2135_v39 = vpop.f32.mrf.mxu1 }
 0x173   : > { %v1570_v61 = vadd.f32 %v1569_v41, %v1568_v59 }
 0x174   : > { %v2123_v62 = vpop.f32.mrf.mxu0 }
 0x175   : > { %v1572_v63 = vsel %vm1571_vm2, %v1570_v61, -inf }
 0x176   : > { %1573 = vmax.xlane.f32.xlu0 %v1572_v63 }
 0x1ff   : > { %v1574_v0 = vpop.xlane.xlu0 %1573 }
 0x200   : > { %v1575_v2 = vsub.f32 %v1570_v61, %v1574_v0 }
 0x202   : > { %v1576_v3 = vmul.f32 1.442695, %v1575_v2 }
 0x204   : > { %2243 = vpow2.f32 %v1576_v3 }
 0x211   : > { %v2244_v4 = vpop.eup %2243 }
 0x212   : > { %v1578_v5 = vsel %vm1571_vm2, %v2244_v4, 0.0 }
 0x213   : > { %1579 = vadd.xlane.f32.xlu0 %v1578_v5 }
 0x29c   : > { %v1580_v6 = vpop.xlane.xlu0 %1579 }
 0x29d   : > { %2245 = vlog2.f32 %v1580_v6 }
 0x2aa   : > { %v2246_v7 = vpop.eup %2245 }
 0x2ab   : > { %v1582_v8 = vmul.f32 0.6931472, %v2246_v7 }
 0x2ad   : > { %v1583_v9 = vadd.f32 %v1582_v8, %v1574_v0 }
 0x2af   : > { %v1584_v10 = vsub.f32 %v1570_v61, %v1583_v9 }
 0x2b1   : > { %1585 = vst.msk [vmem:[%s271_s18] sm:$0x1] %vm1571_vm2, %v1584_v10 }
 0x2b2   : > { %2260 = shalt.err (!%p2257_p3)
}
 0x2b3   : > { %s2261_s13 = scalar_lea.hbm %s1597_s22, 16  ;;  %s2265_s16 = scalar_lea.hbm %s2788_s7, 32 }
 0x2b4   : > { %p2262_p4 = scmp.ne.s32.totalorder %s1597_s22, %s2261_s13  ;;  %p2266_p9 = scmp.lt.s32.totalorder %s1597_s22, %s2788_s7 }
 0x2b5   : > { %p2267_p10 = scmp.lt.s32.totalorder %s2265_s16, %s2261_s13 }
 0x2b6   : > { %p2263_p7 = pnand %p2262_p4, %p2390_p5 }
 0x2b7   : > { %p2268_p11 = por %p2267_p10, %p2266_p9 }
 0x2b8   : > { %p2264_p8 = pneg %p2263_p7 }
 0x2ba   : > { %p2269_p12 = pnand %p2268_p11, %p2264_p8 }
 0x2bc   : > { %2272 = shalt.err (!%p2269_p12)
}
 0x2bd   : > { %2136 = dma.vmem_to_hbm [thread:$0]  (%p2390_p5), %s1600_s19, 16, %s1597_s22, %s1587_s23  }
 0x2be PF: > { %p2142_p13 = scmp.ge.s32.totalorder %s2307_s27, 2  ;;  %s1611_s20 = sand.u32 1, %s2295_s24  }
 0x2bf   : > { %s1612_s21 = scalar_lea.sflag [#allocation3], %s1611_s20 }
 0x2c0   : > { %p2139_p0 = pnand %p2142_p13, %p2394_p6 }
 0x2c2   : > { %p2140_p1 = pneg %p2139_p0 }
 0x2c4   : > { %2290 = dma.done.wait (%p2140_p1), %s1612_s21, 16  }
 0x2c5   : > { %2292 = vsyncadd (%p2140_p1), %s1612_s21, 4294967280  ;;  %p17_p2 = scmp.ge.s32.totalorder %s2377_s30, 4   ;;  %s2791_s24 = smov %s2299_s25 }
 0x2c6   : > { %s2792_s25 = smov %s2303_s26  ;;  %s2793_s26 = smov %s2388_s10 }
 0x2c7   : > { %s2794_s27 = smov %s2377_s30  ;;  %19 = sbr.rel (!%p17_p2) target bundleno = 3 (0x3), region = 98 }
 0x2cc   :  { %1616 = vsyncpa [#allocation3], 1 }
 0x2cd   :  { %1618 = vsyncpa [#allocation3 + $0x1], 1 }

</bundles_post_ra>
